<compile_context>
chip_gen: v5e
topology: v5e:2x2
jax: 0.10.0
libtpu: 0.0.40
codegen_flags: <defaults>
</compile_context>

<pallas_src>
import numpy as np
import jax
import jax.numpy as jnp
from jax.experimental import pallas as pl
from jax.experimental.pallas import tpu as pltpu


def _round_up(x, m):
    return (x + m - 1) // m * m


# ----------------------------------------------------------------------------
# Pallas kernel (one feature-pyramid level; grid = (batch, hw-tile))
# ----------------------------------------------------------------------------
def _make_level_kernel(A, NC, H, W, ignore_thresh, scale_x_y, num_gt,
                       match_score, rows_tile, n_hw, need_valid,
                       anchor_wn, anchor_hn):
    sxy_is_one = abs(scale_x_y - 1.0) < 1e-10
    inv_w = 1.0 / float(W)
    inv_h = 1.0 / float(H)
    off = -0.5 * (scale_x_y - 1.0)
    aw = [float(v) for v in anchor_wn]       # per-anchor compile-time constants
    ah = [float(v) for v in anchor_hn]

    def kernel(gt_ref, hp_ref, out_ref, tgt_ref, grid_ref, res_ref,
               acc_xy, acc_wh, acc_obj, acc_cls):
        # gt_ref   : SMEM (B, G*4)                   gt boxes xywh, normalized
        # hp_ref   : SMEM (B, n_hw) int32            tile-has-positive flags
        # out_ref  : VMEM (A, 5+NC, rows_tile, 128)  pred logits (one sample/tile)
        # tgt_ref  : VMEM (A, 6+NC, rows_tile, 128)  targets
        # grid_ref : VMEM (3, rows_tile, 128)        rows: x-off, y-off, lane-valid
        # res_ref  : VMEM (1, 4)                     [loss_xy, loss_wh, loss_obj, loss_cls]
        # acc_*    : VMEM (rows_tile, 128)           per-loss deferred-reduction accumulators
        b = pl.program_id(0)
        ti = pl.program_id(1)

        @pl.when(ti == 0)
        def _init():
            acc_xy[...] = jnp.zeros_like(acc_xy)
            acc_wh[...] = jnp.zeros_like(acc_wh)
            acc_obj[...] = jnp.zeros_like(acc_obj)
            acc_cls[...] = jnp.zeros_like(acc_cls)

        # Head channels: dense (A, rows_tile, 128) minor layout, static channel
        # index on a non-minor axis -> tile-aligned loads, no relayout.
        x = out_ref[:, 0]
        y = out_ref[:, 1]
        w = out_ref[:, 2]
        hh = out_ref[:, 3]
        obj = out_ref[:, 4]

        tx = tgt_ref[:, 0]
        ty = tgt_ref[:, 1]
        tw = tgt_ref[:, 2]
        th = tgt_ref[:, 3]
        tscale = tgt_ref[:, 4]
        tobj = tgt_ref[:, 5]

        tscale_tobj = tscale * tobj

        # Shared exp between sigmoid (box decode) and softplus (logits BCE):
        #   e = exp(-|z|); sigmoid(z) = where(z>=0, 1/(1+e), e/(1+e))
        #   softplus(z)   = relu(z) + log(1+e)   (log1p-equivalent at fp32 here)
        ex = jnp.exp(-jnp.abs(x))
        ey = jnp.exp(-jnp.abs(y))
        rx = 1.0 / (1.0 + ex)
        ry = 1.0 / (1.0 + ey)
        sx = jnp.where(x >= 0.0, rx, ex * rx)
        sy = jnp.where(y >= 0.0, ry, ey * ry)

        # ------------------------------- xy loss ----------------------------
        if sxy_is_one:
            sp_x = jnp.maximum(x, 0.0) + jnp.log(1.0 + ex)
            sp_y = jnp.maximum(y, 0.0) + jnp.log(1.0 + ey)
            bce_xy = (sp_x - x * tx) + (sp_y - y * ty)       # bce_with_logits
        else:
            # TODO(synk): scale_x_y != 1 path (L1 |dx - tx|) is untested vs. Paddle.
            bce_xy = (jnp.abs(scale_x_y * sx + off - tx) +
                      jnp.abs(scale_x_y * sy + off - ty))
        acc_xy[...] += jnp.sum(bce_xy * tscale_tobj, axis=0)

        # ------------------------------- wh loss ----------------------------
        acc_wh[...] += jnp.sum((jnp.abs(w - tw) + jnp.abs(hh - th)) * tscale_tobj,
                               axis=0)

        # ------------------------------- obj loss ---------------------------
        e_obj = jnp.exp(-jnp.abs(obj))
        sp_obj = jnp.maximum(obj, 0.0) + jnp.log(1.0 + e_obj)   # softplus(obj)

        if match_score:
            r_obj = 1.0 / (1.0 + e_obj)
            sobj = jnp.where(obj >= 0.0, r_obj, e_obj * r_obj)
            mx = out_ref[:, 5]
            for c in range(1, NC):
                mx = jnp.maximum(mx, out_ref[:, 5 + c])
            # max over classes of sigmoid(cls) == sigmoid(max(cls)) (monotone)
            prob_ok = (sobj * jax.nn.sigmoid(mx) <= 0.25).astype(jnp.float32)

        gxo = grid_ref[0]                     # (rows_tile, 128) cell x offsets
        gyo = grid_ref[1]                     # (rows_tile, 128) cell y offsets
        ew = jnp.exp(w)
        eh = jnp.exp(hh)
        objm = (tobj > 0.0).astype(jnp.float32)

        # gt boxes -> scalar corners (SMEM reads, hoisted out of the anchor loop)
        gt_corners = []
        for g in range(num_gt):
            gcx = gt_ref[b, 4 * g + 0]
            gcy = gt_ref[b, 4 * g + 1]
            gw = gt_ref[b, 4 * g + 2]
            gh = gt_ref[b, 4 * g + 3]
            gt_corners.append((gcx - 0.5 * gw, gcx + 0.5 * gw,
                               gcy - 0.5 * gh, gcy + 0.5 * gh, gw * gh))

        pos_term = jnp.sum(tobj * (sp_obj - obj), axis=0)    # softplus(-z) = sp(z)-z
        neg_term = jnp.zeros_like(pos_term)
        # Per-anchor decode + IoU ignore mask: loop-carried arrays are small
        # (rows_tile, 128) tiles -> no vreg spills; anchors are float constants.
        for a in range(A):
            if sxy_is_one:
                cxn = (sx[a] + gxo) * inv_w
                cyn = (sy[a] + gyo) * inv_h
            else:
                cxn = (scale_x_y * sx[a] + gxo + off) * inv_w
                cyn = (scale_x_y * sy[a] + gyo + off) * inv_h
            # TODO(synk): exp(w)/exp(h) can overflow for extreme logits (same as ref).
            pwn = ew[a] * aw[a]
            phn = eh[a] * ah[a]
            px0 = cxn - 0.5 * pwn
            px1 = cxn + 0.5 * pwn
            py0 = cyn - 0.5 * phn
            py1 = cyn + 0.5 * phn
            parea = pwn * phn
            worst = jnp.full_like(parea, -1.0)
            for (gx0, gx1, gy0, gy1, garea) in gt_corners:
                iw = jnp.maximum(jnp.minimum(px1, gx1) - jnp.maximum(px0, gx0), 0.0)
                ih = jnp.maximum(jnp.minimum(py1, gy1) - jnp.maximum(py0, gy0), 0.0)
                inter = iw * ih
                # divide-free: max_iou <= thr  <=>  inter - thr*(pa+ga-inter) <= 0 for all gt
                worst = jnp.maximum(
                    worst, inter - ignore_thresh * (parea + garea - inter))
            iou_ok = (worst <= 0.0).astype(jnp.float32)
            if match_score:
                iou_ok = iou_ok * prob_ok[a]
            neg_term = neg_term + (1.0 - objm[a]) * iou_ok * sp_obj[a]
        if need_valid:
            neg_term = neg_term * grid_ref[2]   # zero out padded lanes/rows
        acc_obj[...] += pos_term + neg_term

        # --------------- cls loss (skipped on positive-free tiles) ----------
        @pl.when(hp_ref[b, ti] > 0)
        def _cls():
            csum = jnp.zeros_like(tobj)
            for c in range(NC):
                zc = out_ref[:, 5 + c]
                tc = tgt_ref[:, 6 + c]
                csum = csum + (jnp.maximum(zc, 0.0) +
                               jnp.log(1.0 + jnp.exp(-jnp.abs(zc))) - zc * tc)
            acc_cls[...] += jnp.sum(csum * tobj, axis=0)

        # ------------------------------- finalize ---------------------------
        @pl.when(ti == n_hw - 1)
        def _fin():
            res_ref[...] = jnp.concatenate(
                [jnp.sum(acc_xy[...]).reshape(1, 1),
                 jnp.sum(acc_wh[...]).reshape(1, 1),
                 jnp.sum(acc_obj[...]).reshape(1, 1),
                 jnp.sum(acc_cls[...]).reshape(1, 1)], axis=1)

    return kernel


# ----------------------------------------------------------------------------
# Per-level wrapper: layout plumbing + pallas_call
# ----------------------------------------------------------------------------
def _level_loss(output, target, gt_box, anchors, downsample, num_classes,
                ignore_thresh, scale_x_y, match_score):
    """Per-level loss.  Returns (B, 4) per-sample sums [xy, wh, obj, cls]."""
    B, C, H, W = output.shape
    A = len(anchors) // 2
    NC = num_classes
    assert C == A * (5 + NC)
    HW = H * W
    G = gt_box.shape[1]
    stride = float(downsample)

    output = output.astype(jnp.float32)
    target = target.astype(jnp.float32)

    # Spatial axis -> (rows, 128) minor tile; rows blocked along "arbitrary" axis.
    R_raw = (HW + 127) // 128
    if R_raw <= 32:                  # up to 4096 positions -> single tile
        rows_tile = R_raw
    else:
        rows_tile = 16               # 2048 positions per tile
    R_total = _round_up(R_raw, rows_tile)
    n_hw = R_total // rows_tile
    HWp = R_total * 128
    pad_hw = HWp - HW
    need_valid = pad_hw > 0

    out_r = output.reshape(B, A, 5 + NC, HW)
    tgt_r = target.reshape(B, A, 6 + NC, HW)
    if pad_hw:
        padw = ((0, 0), (0, 0), (0, 0), (0, pad_hw))
        out_r = jnp.pad(out_r, padw)
        tgt_r = jnp.pad(tgt_r, padw)
    out_r = out_r.reshape(B, A, 5 + NC, R_total, 128)
    tgt_r = tgt_r.reshape(B, A, 6 + NC, R_total, 128)

    # Per-(sample, hw-tile) "contains a positive" flags -> skip cls work on
    # positive-free tiles (exact: loss_cls carries a tobj factor).
    tobj_plane = tgt_r[:, :, 5].reshape(B, A, n_hw, rows_tile * 128)
    has_pos = (jnp.max(tobj_plane, axis=(1, 3)) > 0.0).astype(jnp.int32)   # (B, n_hw)

    # Grid-cell offsets + lane-validity plane (tiny (3, rows, 128) input).
    goff = np.zeros((3, HWp), np.float32)
    goff[0, :HW] = np.tile(np.arange(W, dtype=np.float32), H)
    goff[1, :HW] = np.repeat(np.arange(H, dtype=np.float32), W)
    goff[2, :HW] = 1.0
    grid_off = jnp.asarray(goff.reshape(3, R_total, 128))

    # Anchors pre-normalized by image size -> compile-time per-anchor floats.
    anc_np = np.asarray(anchors, np.float32).reshape(A, 2)
    awn = (anc_np[:, 0] / (W * stride)).tolist()
    ahn = (anc_np[:, 1] / (H * stride)).tolist()

    gt_flat = gt_box.astype(jnp.float32).reshape(B, G * 4)

    kernel = _make_level_kernel(A, NC, H, W, float(ignore_thresh),
                                float(scale_x_y), G, match_score,
                                rows_tile, n_hw, need_valid, awn, ahn)

    # Advisory cost estimate: elementwise / transcendental + HBM-bound, no MXU.
    work = B * A * HWp
    cost = pl.CostEstimate(
        flops=int(work * (12 * G + 6 * NC + 70)),
        transcendentals=int(work * (NC + 6)),
        bytes_accessed=int(4 * (B * A * (11 + 2 * NC) * HWp + 3 * HWp
                                + B * G * 4 + B * 4)),
    )

    res = pl.pallas_call(
        kernel,
        out_shape=jax.ShapeDtypeStruct((B, 1, 4), jnp.float32),
        grid_spec=pltpu.PrefetchScalarGridSpec(
            num_scalar_prefetch=2,            # gt boxes + has_pos flags -> SMEM
            grid=(B, n_hw),
            in_specs=[
                pl.BlockSpec((None, A, 5 + NC, rows_tile, 128),
                             lambda b, t, gt, hp: (b, 0, 0, t, 0)),
                pl.BlockSpec((None, A, 6 + NC, rows_tile, 128),
                             lambda b, t, gt, hp: (b, 0, 0, t, 0)),
                pl.BlockSpec((3, rows_tile, 128),
                             lambda b, t, gt, hp: (0, t, 0)),
            ],
            out_specs=pl.BlockSpec((None, 1, 4), lambda b, t, gt, hp: (b, 0, 0)),
            scratch_shapes=[pltpu.VMEM((rows_tile, 128), jnp.float32)
                            for _ in range(4)],
        ),
        compiler_params=pltpu.CompilerParams(
            dimension_semantics=("parallel", "arbitrary"),
            vmem_limit_bytes=32 * 1024 * 1024),
        cost_estimate=cost,
    )(gt_flat, has_pos, out_r, tgt_r, grid_off)
    return res.reshape(B, 4)


# ----------------------------------------------------------------------------
# Module wrapper (mirrors YOLOv3Loss2.forward)
# ----------------------------------------------------------------------------
class YOLOv3Loss2:
    def __init__(self, ignore_thresh=0.7, label_smooth=True,
                 use_fine_grained_loss=False, iou_loss=None, iou_aware_loss=None,
                 downsample=(32, 16, 8), scale_x_y=1.0, match_score=False):
        self._ignore_thresh = ignore_thresh
        self._label_smooth = label_smooth          # unused in fine-grained path
        self._use_fine_grained_loss = use_fine_grained_loss
        self._iou_loss = iou_loss
        self._iou_aware_loss = iou_aware_loss
        self.downsample = downsample
        self.scale_x_y = scale_x_y
        self.match_score = match_score

    def __call__(self, outputs, gt_box, targets, anchors, anchor_masks,
                 mask_anchors, num_classes):
        assert len(outputs) == len(targets), 'output / target level mismatch'
        if self._iou_loss is not None or self._iou_aware_loss is not None:
            raise NotImplementedError("iou_loss / iou_aware_loss not supported")
        loss_xys = loss_whs = loss_objs = loss_clss = 0.0
        for i, (output, target, anc) in enumerate(zip(outputs, targets, mask_anchors)):
            sxy = (self.scale_x_y if not isinstance(self.scale_x_y, (list, tuple))
                   else self.scale_x_y[i])
            per = _level_loss(output, target, gt_box, anc, self.downsample[i],
                              num_classes, self._ignore_thresh, sxy,
                              self.match_score)                       # (B, 4)
            per_mean = jnp.mean(per, axis=0)
            loss_xys = loss_xys + per_mean[0]
            loss_whs = loss_whs + per_mean[1]
            loss_objs = loss_objs + per_mean[2]
            loss_clss = loss_clss + per_mean[3]
        total_loss = loss_xys + loss_whs + loss_objs + loss_clss
        return {'loss_xy': loss_xys, 'loss_wh': loss_whs, 'loss_obj': loss_objs,
                'loss_cls': loss_clss, 'total_loss': total_loss}


# ----------------------------------------------------------------------------
# Pure-JAX reference (scale_x_y == 1.0), mirrors the PyTorch module (eps-log BCE)
# ----------------------------------------------------------------------------
def _reference_loss(outputs, gt_box, targets, mask_anchors, num_classes,
                    downsample, ignore_thresh):
    eps = 1e-9
    B = gt_box.shape[0]
    lxy = lwh = lobj = lcls = 0.0
    bce = lambda p, tt: tt * (-jnp.log(p + eps)) + (1 - tt) * (-jnp.log(1 - p + eps))
    for i, (o5, t, anc) in enumerate(zip(outputs, targets, mask_anchors)):
        stride = float(downsample[i])
        A = len(anc) // 2
        _, C, H, W = o5.shape
        o = o5.reshape(B, A, 5 + num_classes, H, W)
        x, y, w, h, obj = o[:, :, 0], o[:, :, 1], o[:, :, 2], o[:, :, 3], o[:, :, 4]
        cls = o[:, :, 5:]
        tx, ty, tw, th = t[:, :, 0], t[:, :, 1], t[:, :, 2], t[:, :, 3]
        tscale, tobj, tcls = t[:, :, 4], t[:, :, 5], t[:, :, 6:]
        tsto = tscale * tobj
        sx, sy = jax.nn.sigmoid(x), jax.nn.sigmoid(y)
        loss_x = (bce(sx, tx) * tsto).sum((1, 2, 3))
        loss_y = (bce(sy, ty) * tsto).sum((1, 2, 3))
        loss_w = (jnp.abs(w - tw) * tsto).sum((1, 2, 3))
        loss_h = (jnp.abs(h - th) * tsto).sum((1, 2, 3))
        loss_c = ((bce(jax.nn.sigmoid(cls), tcls)).sum(2) * tobj).sum((1, 2, 3))
        anc_np = np.asarray(anc, np.float32).reshape(-1, 2)
        gx = jnp.arange(W, dtype=jnp.float32)[None, None, None, :]
        gy = jnp.arange(H, dtype=jnp.float32)[None, None, :, None]
        cxn, cyn = (sx + gx) / W, (sy + gy) / H
        pwn = jnp.exp(w) * anc_np[:, 0][None, :, None, None] / (W * stride)
        phn = jnp.exp(h) * anc_np[:, 1][None, :, None, None] / (H * stride)
        pb = jnp.stack([cxn - pwn / 2, cyn - phn / 2,
                        cxn + pwn / 2, cyn + phn / 2], -1).reshape(B, -1, 4)
        g = gt_box
        gb = jnp.stack([g[..., 0] - g[..., 2] / 2, g[..., 1] - g[..., 3] / 2,
                        g[..., 0] + g[..., 2] / 2, g[..., 1] + g[..., 3] / 2], -1)
        ix0 = jnp.maximum(pb[:, :, None, 0], gb[:, None, :, 0])
        iy0 = jnp.maximum(pb[:, :, None, 1], gb[:, None, :, 1])
        ix1 = jnp.minimum(pb[:, :, None, 2], gb[:, None, :, 2])
        iy1 = jnp.minimum(pb[:, :, None, 3], gb[:, None, :, 3])
        inter = jnp.maximum(ix1 - ix0, 0) * jnp.maximum(iy1 - iy0, 0)
        ap = (pb[:, :, 2] - pb[:, :, 0]) * (pb[:, :, 3] - pb[:, :, 1])
        ag = (gb[:, :, 2] - gb[:, :, 0]) * (gb[:, :, 3] - gb[:, :, 1])
        iou = inter / (ap[:, :, None] + ag[:, None, :] - inter)
        iou_mask = (iou.max(-1) <= ignore_thresh).astype(jnp.float32).reshape(B, A, H, W)
        noobj = (1.0 - (tobj > 0).astype(jnp.float32)) * iou_mask
        sobj = jax.nn.sigmoid(obj)
        lop = (tobj * (-jnp.log(sobj + eps))).sum((1, 2, 3))
        lon = (noobj * (-jnp.log(1 - sobj + eps))).sum((1, 2, 3))
        lxy += (loss_x + loss_y).mean()
        lwh += (loss_w + loss_h).mean()
        lobj += (lop + lon).mean()
        lcls += loss_c.mean()
    return {'loss_xy': lxy, 'loss_wh': lwh, 'loss_obj': lobj, 'loss_cls': lcls,
            'total_loss': lxy + lwh + lobj + lcls}


# ----------------------------------------------------------------------------
if __name__ == "__main__":
    key = jax.random.PRNGKey(0)
    B, num_classes, an_num, G = 2, 4, 3, 8
    downsample = [32, 16, 8]
    spatial = [4, 8, 16]
    mask_anchors = [
        [116.0, 90.0, 156.0, 198.0, 373.0, 326.0],
        [30.0, 61.0, 62.0, 45.0, 59.0, 119.0],
        [10.0, 13.0, 16.0, 30.0, 33.0, 23.0],
    ]
    C = an_num * (5 + num_classes)

    keys = jax.random.split(key, len(spatial) + 1)
    outputs, targets = [], []
    for i, hw in enumerate(spatial):
        ko, k1, k2, k3, k4, k5 = jax.random.split(keys[i], 6)
        outputs.append(jax.random.normal(ko, (B, C, hw, hw), jnp.float32))
        txy = jax.random.uniform(k1, (B, an_num, 2, hw, hw), jnp.float32)
        twh = 0.5 * jax.random.normal(k2, (B, an_num, 2, hw, hw), jnp.float32)
        tscale = jax.random.uniform(k3, (B, an_num, 1, hw, hw), jnp.float32)
        tobj = (jax.random.uniform(k4, (B, an_num, 1, hw, hw)) > 0.9).astype(jnp.float32)
        tcls = (jax.random.uniform(k5, (B, an_num, num_classes, hw, hw)) > 0.8).astype(jnp.float32)
        targets.append(jnp.concatenate([txy, twh, tscale, tobj, tcls], axis=2))

    kb1, kb2 = jax.random.split(keys[-1])
    gt_xy = jax.random.uniform(kb1, (B, G, 2), minval=0.2, maxval=0.8)
    gt_wh = jax.random.uniform(kb2, (B, G, 2), minval=0.05, maxval=0.3)
    gt_box = jnp.concatenate([gt_xy, gt_wh], axis=-1).astype(jnp.float32)

    loss_mod = YOLOv3Loss2(downsample=downsample)
    losses = loss_mod(outputs, gt_box, targets, None, None, mask_anchors, num_classes)
    jax.block_until_ready(losses['total_loss'])

    ref = _reference_loss(outputs, gt_box, targets, mask_anchors, num_classes,
                          downsample, loss_mod._ignore_thresh)
    for k in ('loss_xy', 'loss_wh', 'loss_obj', 'loss_cls', 'total_loss'):
        np.testing.assert_allclose(np.asarray(losses[k]), np.asarray(ref[k]),
                                   rtol=5e-3, atol=5e-2)

    # Extra check: multi-tile (n_hw > 1) path with lane padding + cls gating.
    Hb = Wb = 80     # HW = 6400 -> 50 rows -> rows_tile 16, n_hw = 4 (with pad)
    kb = jax.random.split(jax.random.PRNGKey(1), 5)
    out_big = jax.random.normal(kb[0], (B, C, Hb, Wb), jnp.float32)
    txy = jax.random.uniform(kb[1], (B, an_num, 2, Hb, Wb), jnp.float32)
    twh = 0.5 * jax.random.normal(kb[2], (B, an_num, 2, Hb, Wb), jnp.float32)
    tscale = jax.random.uniform(kb[3], (B, an_num, 1, Hb, Wb), jnp.float32)
    tobj = jnp.zeros((B, an_num, 1, Hb, Wb), jnp.float32).at[:, :, :, :2, :4].set(1.0)
    tcls = (jax.random.uniform(kb[4], (B, an_num, num_classes, Hb, Wb)) > 0.8).astype(jnp.float32)
    tgt_big = jnp.concatenate([txy, twh, tscale, tobj, tcls], axis=2)

    big_mod = YOLOv3Loss2(downsample=[8])
    big_losses = big_mod([out_big], gt_box, [tgt_big], None, None,
                         [mask_anchors[2]], num_classes)
    jax.block_until_ready(big_losses['total_loss'])
    big_ref = _reference_loss([out_big], gt_box, [tgt_big], [mask_anchors[2]],
                              num_classes, [8], loss_mod._ignore_thresh)
    for k in ('loss_xy', 'loss_wh', 'loss_obj', 'loss_cls', 'total_loss'):
        np.testing.assert_allclose(np.asarray(big_losses[k]), np.asarray(big_ref[k]),
                                   rtol=5e-3, atol=5e-2)

    print("KERNEL_OK")
</pallas_src>

<mosaic_0001>
module attributes {stable_mosaic.version = 11 : i64} {
  func.func @kernel(%arg0: i32, %arg1: i32, %arg2: memref<2x32xf32, #tpu.memory_space<smem>>, %arg3: memref<2x1xi32, #tpu.memory_space<smem>>, %arg4: memref<1x3x9x1x128xf32, #tpu.memory_space<vmem>>, %arg5: memref<1x3x10x1x128xf32, #tpu.memory_space<vmem>>, %arg6: memref<3x1x128xf32, #tpu.memory_space<vmem>>, %arg7: memref<1x1x4xf32, #tpu.memory_space<vmem>>, %arg8: memref<1x128xf32, #tpu.memory_space<vmem>>, %arg9: memref<1x128xf32, #tpu.memory_space<vmem>>, %arg10: memref<1x128xf32, #tpu.memory_space<vmem>>, %arg11: memref<1x128xf32, #tpu.memory_space<vmem>>) attributes {dimension_semantics = [#tpu.dimension_semantics<parallel>, #tpu.dimension_semantics<arbitrary>], iteration_bounds = array<i64: 2, 1>, scalar_prefetch = 2 : i64, scratch_operands = 4 : i64, tpu.core_type = #tpu.core_type<tc>, window_params = [{transform_indices = @transform_0, window_bounds = array<i64: 1, 3, 9, 1, 128>}, {transform_indices = @transform_1, window_bounds = array<i64: 1, 3, 10, 1, 128>}, {transform_indices = @transform_2, window_bounds = array<i64: 3, 1, 128>}, {transform_indices = @transform_3, window_bounds = array<i64: 1, 1, 4>}]} {
    %c0_i32 = arith.constant 0 : i32
    %0 = arith.cmpi eq, %arg1, %c0_i32 : i32
    %1 = arith.extui %0 : i1 to i32
    %c0_i32_0 = arith.constant 0 : i32
    %2 = arith.cmpi ne, %1, %c0_i32_0 : i32
    scf.if %2 {
      %cst_237 = arith.constant 0.000000e+00 : f32
      %921 = vector.broadcast %cst_237 : f32 to vector<1x128xf32>
      %c0_238 = arith.constant 0 : index
      %c0_239 = arith.constant 0 : index
      %922 = vector.load %arg8[%c0_238, %c0_239] : memref<1x128xf32, #tpu.memory_space<vmem>>, vector<1x128xf32>
      tpu.vector_store %arg8[%c0_238, %c0_239], %921 {strides = array<i32>} : memref<1x128xf32, #tpu.memory_space<vmem>>, vector<1x128xf32>,
      %cst_240 = arith.constant 0.000000e+00 : f32
      %923 = vector.broadcast %cst_240 : f32 to vector<1x128xf32>
      %c0_241 = arith.constant 0 : index
      %c0_242 = arith.constant 0 : index
      %924 = vector.load %arg9[%c0_241, %c0_242] : memref<1x128xf32, #tpu.memory_space<vmem>>, vector<1x128xf32>
      tpu.vector_store %arg9[%c0_241, %c0_242], %923 {strides = array<i32>} : memref<1x128xf32, #tpu.memory_space<vmem>>, vector<1x128xf32>,
      %cst_243 = arith.constant 0.000000e+00 : f32
      %925 = vector.broadcast %cst_243 : f32 to vector<1x128xf32>
      %c0_244 = arith.constant 0 : index
      %c0_245 = arith.constant 0 : index
      %926 = vector.load %arg10[%c0_244, %c0_245] : memref<1x128xf32, #tpu.memory_space<vmem>>, vector<1x128xf32>
      tpu.vector_store %arg10[%c0_244, %c0_245], %925 {strides = array<i32>} : memref<1x128xf32, #tpu.memory_space<vmem>>, vector<1x128xf32>,
      %cst_246 = arith.constant 0.000000e+00 : f32
      %927 = vector.broadcast %cst_246 : f32 to vector<1x128xf32>
      %c0_247 = arith.constant 0 : index
      %c0_248 = arith.constant 0 : index
      %928 = vector.load %arg11[%c0_247, %c0_248] : memref<1x128xf32, #tpu.memory_space<vmem>>, vector<1x128xf32>
      tpu.vector_store %arg11[%c0_247, %c0_248], %927 {strides = array<i32>} : memref<1x128xf32, #tpu.memory_space<vmem>>, vector<1x128xf32>,
    } else {
    }
    %c0 = arith.constant 0 : index
    %c0_1 = arith.constant 0 : index
    %c0_2 = arith.constant 0 : index
    %c0_3 = arith.constant 0 : index
    %c0_4 = arith.constant 0 : index
    %3 = vector.load %arg4[%c0, %c0_1, %c0_2, %c0_3, %c0_4] : memref<1x3x9x1x128xf32, #tpu.memory_space<vmem>>, vector<1x3x1x1x128xf32>
    %4 = vector.shape_cast %3 : vector<1x3x1x1x128xf32> to vector<3x1x128xf32>
    %c0_5 = arith.constant 0 : index
    %c0_6 = arith.constant 0 : index
    %c1 = arith.constant 1 : index
    %c0_7 = arith.constant 0 : index
    %c0_8 = arith.constant 0 : index
    %5 = vector.load %arg4[%c0_5, %c0_6, %c1, %c0_7, %c0_8] : memref<1x3x9x1x128xf32, #tpu.memory_space<vmem>>, vector<1x3x1x1x128xf32>
    %6 = vector.shape_cast %5 : vector<1x3x1x1x128xf32> to vector<3x1x128xf32>
    %c0_9 = arith.constant 0 : index
    %c0_10 = arith.constant 0 : index
    %c2 = arith.constant 2 : index
    %c0_11 = arith.constant 0 : index
    %c0_12 = arith.constant 0 : index
    %7 = vector.load %arg4[%c0_9, %c0_10, %c2, %c0_11, %c0_12] : memref<1x3x9x1x128xf32, #tpu.memory_space<vmem>>, vector<1x3x1x1x128xf32>
    %8 = vector.shape_cast %7 : vector<1x3x1x1x128xf32> to vector<3x1x128xf32>
    %c0_13 = arith.constant 0 : index
    %c0_14 = arith.constant 0 : index
    %c3 = arith.constant 3 : index
    %c0_15 = arith.constant 0 : index
    %c0_16 = arith.constant 0 : index
    %9 = vector.load %arg4[%c0_13, %c0_14, %c3, %c0_15, %c0_16] : memref<1x3x9x1x128xf32, #tpu.memory_space<vmem>>, vector<1x3x1x1x128xf32>
    %10 = vector.shape_cast %9 : vector<1x3x1x1x128xf32> to vector<3x1x128xf32>
    %c0_17 = arith.constant 0 : index
    %c0_18 = arith.constant 0 : index
    %c4 = arith.constant 4 : index
    %c0_19 = arith.constant 0 : index
    %c0_20 = arith.constant 0 : index
    %11 = vector.load %arg4[%c0_17, %c0_18, %c4, %c0_19, %c0_20] : memref<1x3x9x1x128xf32, #tpu.memory_space<vmem>>, vector<1x3x1x1x128xf32>
    %12 = vector.shape_cast %11 : vector<1x3x1x1x128xf32> to vector<3x1x128xf32>
    %c0_21 = arith.constant 0 : index
    %c0_22 = arith.constant 0 : index
    %c0_23 = arith.constant 0 : index
    %c0_24 = arith.constant 0 : index
    %c0_25 = arith.constant 0 : index
    %13 = vector.load %arg5[%c0_21, %c0_22, %c0_23, %c0_24, %c0_25] : memref<1x3x10x1x128xf32, #tpu.memory_space<vmem>>, vector<1x3x1x1x128xf32>
    %14 = vector.shape_cast %13 : vector<1x3x1x1x128xf32> to vector<3x1x128xf32>
    %c0_26 = arith.constant 0 : index
    %c0_27 = arith.constant 0 : index
    %c1_28 = arith.constant 1 : index
    %c0_29 = arith.constant 0 : index
    %c0_30 = arith.constant 0 : index
    %15 = vector.load %arg5[%c0_26, %c0_27, %c1_28, %c0_29, %c0_30] : memref<1x3x10x1x128xf32, #tpu.memory_space<vmem>>, vector<1x3x1x1x128xf32>
    %16 = vector.shape_cast %15 : vector<1x3x1x1x128xf32> to vector<3x1x128xf32>
    %c0_31 = arith.constant 0 : index
    %c0_32 = arith.constant 0 : index
    %c2_33 = arith.constant 2 : index
    %c0_34 = arith.constant 0 : index
    %c0_35 = arith.constant 0 : index
    %17 = vector.load %arg5[%c0_31, %c0_32, %c2_33, %c0_34, %c0_35] : memref<1x3x10x1x128xf32, #tpu.memory_space<vmem>>, vector<1x3x1x1x128xf32>
    %18 = vector.shape_cast %17 : vector<1x3x1x1x128xf32> to vector<3x1x128xf32>
    %c0_36 = arith.constant 0 : index
    %c0_37 = arith.constant 0 : index
    %c3_38 = arith.constant 3 : index
    %c0_39 = arith.constant 0 : index
    %c0_40 = arith.constant 0 : index
    %19 = vector.load %arg5[%c0_36, %c0_37, %c3_38, %c0_39, %c0_40] : memref<1x3x10x1x128xf32, #tpu.memory_space<vmem>>, vector<1x3x1x1x128xf32>
    %20 = vector.shape_cast %19 : vector<1x3x1x1x128xf32> to vector<3x1x128xf32>
    %c0_41 = arith.constant 0 : index
    %c0_42 = arith.constant 0 : index
    %c4_43 = arith.constant 4 : index
    %c0_44 = arith.constant 0 : index
    %c0_45 = arith.constant 0 : index
    %21 = vector.load %arg5[%c0_41, %c0_42, %c4_43, %c0_44, %c0_45] : memref<1x3x10x1x128xf32, #tpu.memory_space<vmem>>, vector<1x3x1x1x128xf32>
    %22 = vector.shape_cast %21 : vector<1x3x1x1x128xf32> to vector<3x1x128xf32>
    %c0_46 = arith.constant 0 : index
    %c0_47 = arith.constant 0 : index
    %c5 = arith.constant 5 : index
    %c0_48 = arith.constant 0 : index
    %c0_49 = arith.constant 0 : index
    %23 = vector.load %arg5[%c0_46, %c0_47, %c5, %c0_48, %c0_49] : memref<1x3x10x1x128xf32, #tpu.memory_space<vmem>>, vector<1x3x1x1x128xf32>
    %24 = vector.shape_cast %23 : vector<1x3x1x1x128xf32> to vector<3x1x128xf32>
    %25 = arith.mulf %22, %24 : vector<3x1x128xf32>
    %26 = math.absf %4 : vector<3x1x128xf32>
    %cst = arith.constant 0.000000e+00 : f32
    %27 = vector.broadcast %cst : f32 to vector<3x1x128xf32>
    %28 = arith.subf %27, %26 : vector<3x1x128xf32>
    %29 = math.exp %28 : vector<3x1x128xf32>
    %30 = math.absf %6 : vector<3x1x128xf32>
    %cst_50 = arith.constant 0.000000e+00 : f32
    %31 = vector.broadcast %cst_50 : f32 to vector<3x1x128xf32>
    %32 = arith.subf %31, %30 : vector<3x1x128xf32>
    %33 = math.exp %32 : vector<3x1x128xf32>
    %cst_51 = arith.constant 1.000000e+00 : f32
    %34 = vector.broadcast %cst_51 : f32 to vector<3x1x128xf32>
    %35 = arith.addf %34, %29 : vector<3x1x128xf32>
    %cst_52 = arith.constant 1.000000e+00 : f32
    %36 = vector.broadcast %cst_52 : f32 to vector<3x1x128xf32>
    %37 = arith.divf %36, %35 : vector<3x1x128xf32>
    %cst_53 = arith.constant 1.000000e+00 : f32
    %38 = vector.broadcast %cst_53 : f32 to vector<3x1x128xf32>
    %39 = arith.addf %38, %33 : vector<3x1x128xf32>
    %cst_54 = arith.constant 1.000000e+00 : f32
    %40 = vector.broadcast %cst_54 : f32 to vector<3x1x128xf32>
    %41 = arith.divf %40, %39 : vector<3x1x128xf32>
    %cst_55 = arith.constant 0.000000e+00 : f32
    %42 = vector.broadcast %cst_55 : f32 to vector<3x1x128xf32>
    %43 = arith.cmpf oge, %4, %42 : vector<3x1x128xf32>
    %44 = arith.mulf %29, %37 : vector<3x1x128xf32>
    %45 = arith.select %43, %37, %44 : vector<3x1x128xi1>, vector<3x1x128xf32>
    %cst_56 = arith.constant 0.000000e+00 : f32
    %46 = vector.broadcast %cst_56 : f32 to vector<3x1x128xf32>
    %47 = arith.cmpf oge, %6, %46 : vector<3x1x128xf32>
    %48 = arith.mulf %33, %41 : vector<3x1x128xf32>
    %49 = arith.select %47, %41, %48 : vector<3x1x128xi1>, vector<3x1x128xf32>
    %cst_57 = arith.constant 0.000000e+00 : f32
    %50 = vector.broadcast %cst_57 : f32 to vector<3x1x128xf32>
    %51 = arith.maximumf %4, %50 : vector<3x1x128xf32>
    %cst_58 = arith.constant 1.000000e+00 : f32
    %52 = vector.broadcast %cst_58 : f32 to vector<3x1x128xf32>
    %53 = arith.addf %52, %29 : vector<3x1x128xf32>
    %54 = math.log %53 : vector<3x1x128xf32>
    %55 = arith.addf %51, %54 : vector<3x1x128xf32>
    %cst_59 = arith.constant 0.000000e+00 : f32
    %56 = vector.broadcast %cst_59 : f32 to vector<3x1x128xf32>
    %57 = arith.maximumf %6, %56 : vector<3x1x128xf32>
    %cst_60 = arith.constant 1.000000e+00 : f32
    %58 = vector.broadcast %cst_60 : f32 to vector<3x1x128xf32>
    %59 = arith.addf %58, %33 : vector<3x1x128xf32>
    %60 = math.log %59 : vector<3x1x128xf32>
    %61 = arith.addf %57, %60 : vector<3x1x128xf32>
    %62 = arith.mulf %4, %14 : vector<3x1x128xf32>
    %63 = arith.subf %55, %62 : vector<3x1x128xf32>
    %64 = arith.mulf %6, %16 : vector<3x1x128xf32>
    %65 = arith.subf %61, %64 : vector<3x1x128xf32>
    %66 = arith.addf %63, %65 : vector<3x1x128xf32>
    %c0_61 = arith.constant 0 : index
    %c0_62 = arith.constant 0 : index
    %67 = vector.load %arg8[%c0_61, %c0_62] : memref<1x128xf32, #tpu.memory_space<vmem>>, vector<1x128xf32>
    %68 = arith.mulf %66, %25 : vector<3x1x128xf32>
    %cst_63 = arith.constant dense<0.000000e+00> : vector<1x128xf32>
    %69 = vector.multi_reduction <add>, %68, %cst_63 [0] : vector<3x1x128xf32> to vector<1x128xf32>
    %70 = arith.addf %67, %69 : vector<1x128xf32>
    %c0_64 = arith.constant 0 : index
    %c0_65 = arith.constant 0 : index
    %71 = vector.load %arg8[%c0_64, %c0_65] : memref<1x128xf32, #tpu.memory_space<vmem>>, vector<1x128xf32>
    tpu.vector_store %arg8[%c0_64, %c0_65], %70 {strides = array<i32>} : memref<1x128xf32, #tpu.memory_space<vmem>>, vector<1x128xf32>,
    %c0_66 = arith.constant 0 : index
    %c0_67 = arith.constant 0 : index
    %72 = vector.load %arg9[%c0_66, %c0_67] : memref<1x128xf32, #tpu.memory_space<vmem>>, vector<1x128xf32>
    %73 = arith.subf %8, %18 : vector<3x1x128xf32>
    %74 = math.absf %73 : vector<3x1x128xf32>
    %75 = arith.subf %10, %20 : vector<3x1x128xf32>
    %76 = math.absf %75 : vector<3x1x128xf32>
    %77 = arith.addf %74, %76 : vector<3x1x128xf32>
    %78 = arith.mulf %77, %25 : vector<3x1x128xf32>
    %cst_68 = arith.constant dense<0.000000e+00> : vector<1x128xf32>
    %79 = vector.multi_reduction <add>, %78, %cst_68 [0] : vector<3x1x128xf32> to vector<1x128xf32>
    %80 = arith.addf %72, %79 : vector<1x128xf32>
    %c0_69 = arith.constant 0 : index
    %c0_70 = arith.constant 0 : index
    %81 = vector.load %arg9[%c0_69, %c0_70] : memref<1x128xf32, #tpu.memory_space<vmem>>, vector<1x128xf32>
    tpu.vector_store %arg9[%c0_69, %c0_70], %80 {strides = array<i32>} : memref<1x128xf32, #tpu.memory_space<vmem>>, vector<1x128xf32>,
    %82 = math.absf %12 : vector<3x1x128xf32>
    %cst_71 = arith.constant 0.000000e+00 : f32
    %83 = vector.broadcast %cst_71 : f32 to vector<3x1x128xf32>
    %84 = arith.subf %83, %82 : vector<3x1x128xf32>
    %85 = math.exp %84 : vector<3x1x128xf32>
    %cst_72 = arith.constant 0.000000e+00 : f32
    %86 = vector.broadcast %cst_72 : f32 to vector<3x1x128xf32>
    %87 = arith.maximumf %12, %86 : vector<3x1x128xf32>
    %cst_73 = arith.constant 1.000000e+00 : f32
    %88 = vector.broadcast %cst_73 : f32 to vector<3x1x128xf32>
    %89 = arith.addf %88, %85 : vector<3x1x128xf32>
    %90 = math.log %89 : vector<3x1x128xf32>
    %91 = arith.addf %87, %90 : vector<3x1x128xf32>
    %c0_74 = arith.constant 0 : index
    %c0_75 = arith.constant 0 : index
    %c0_76 = arith.constant 0 : index
    %92 = vector.load %arg6[%c0_74, %c0_75, %c0_76] : memref<3x1x128xf32, #tpu.memory_space<vmem>>, vector<1x1x128xf32>
    %93 = vector.shape_cast %92 : vector<1x1x128xf32> to vector<1x128xf32>
    %c1_77 = arith.constant 1 : index
    %c0_78 = arith.constant 0 : index
    %c0_79 = arith.constant 0 : index
    %94 = vector.load %arg6[%c1_77, %c0_78, %c0_79] : memref<3x1x128xf32, #tpu.memory_space<vmem>>, vector<1x1x128xf32>
    %95 = vector.shape_cast %94 : vector<1x1x128xf32> to vector<1x128xf32>
    %96 = math.exp %8 : vector<3x1x128xf32>
    %97 = math.exp %10 : vector<3x1x128xf32>
    %cst_80 = arith.constant 0.000000e+00 : f32
    %98 = vector.broadcast %cst_80 : f32 to vector<3x1x128xf32>
    %99 = arith.cmpf ogt, %24, %98 : vector<3x1x128xf32>
    %100 = arith.extui %99 : vector<3x1x128xi1> to vector<3x1x128xi32>
    %101 = arith.sitofp %100 : vector<3x1x128xi32> to vector<3x1x128xf32>
    %102 = arith.index_cast %arg0 : i32 to index
    %c0_81 = arith.constant 0 : index
    %103 = memref.load %arg2[%102, %c0_81] : memref<2x32xf32, #tpu.memory_space<smem>>
    %104 = arith.index_cast %arg0 : i32 to index
    %c1_82 = arith.constant 1 : index
    %105 = memref.load %arg2[%104, %c1_82] : memref<2x32xf32, #tpu.memory_space<smem>>
    %106 = arith.index_cast %arg0 : i32 to index
    %c2_83 = arith.constant 2 : index
    %107 = memref.load %arg2[%106, %c2_83] : memref<2x32xf32, #tpu.memory_space<smem>>
    %108 = arith.index_cast %arg0 : i32 to index
    %c3_84 = arith.constant 3 : index
    %109 = memref.load %arg2[%108, %c3_84] : memref<2x32xf32, #tpu.memory_space<smem>>
    %cst_85 = arith.constant 5.000000e-01 : f32
    %110 = arith.mulf %cst_85, %107 : f32
    %111 = arith.subf %103, %110 : f32
    %cst_86 = arith.constant 5.000000e-01 : f32
    %112 = arith.mulf %cst_86, %107 : f32
    %113 = arith.addf %103, %112 : f32
    %cst_87 = arith.constant 5.000000e-01 : f32
    %114 = arith.mulf %cst_87, %109 : f32
    %115 = arith.subf %105, %114 : f32
    %cst_88 = arith.constant 5.000000e-01 : f32
    %116 = arith.mulf %cst_88, %109 : f32
    %117 = arith.addf %105, %116 : f32
    %118 = arith.mulf %107, %109 : f32
    %119 = arith.index_cast %arg0 : i32 to index
    %c4_89 = arith.constant 4 : index
    %120 = memref.load %arg2[%119, %c4_89] : memref<2x32xf32, #tpu.memory_space<smem>>
    %121 = arith.index_cast %arg0 : i32 to index
    %c5_90 = arith.constant 5 : index
    %122 = memref.load %arg2[%121, %c5_90] : memref<2x32xf32, #tpu.memory_space<smem>>
    %123 = arith.index_cast %arg0 : i32 to index
    %c6 = arith.constant 6 : index
    %124 = memref.load %arg2[%123, %c6] : memref<2x32xf32, #tpu.memory_space<smem>>
    %125 = arith.index_cast %arg0 : i32 to index
    %c7 = arith.constant 7 : index
    %126 = memref.load %arg2[%125, %c7] : memref<2x32xf32, #tpu.memory_space<smem>>
    %cst_91 = arith.constant 5.000000e-01 : f32
    %127 = arith.mulf %cst_91, %124 : f32
    %128 = arith.subf %120, %127 : f32
    %cst_92 = arith.constant 5.000000e-01 : f32
    %129 = arith.mulf %cst_92, %124 : f32
    %130 = arith.addf %120, %129 : f32
    %cst_93 = arith.constant 5.000000e-01 : f32
    %131 = arith.mulf %cst_93, %126 : f32
    %132 = arith.subf %122, %131 : f32
    %cst_94 = arith.constant 5.000000e-01 : f32
    %133 = arith.mulf %cst_94, %126 : f32
    %134 = arith.addf %122, %133 : f32
    %135 = arith.mulf %124, %126 : f32
    %136 = arith.index_cast %arg0 : i32 to index
    %c8 = arith.constant 8 : index
    %137 = memref.load %arg2[%136, %c8] : memref<2x32xf32, #tpu.memory_space<smem>>
    %138 = arith.index_cast %arg0 : i32 to index
    %c9 = arith.constant 9 : index
    %139 = memref.load %arg2[%138, %c9] : memref<2x32xf32, #tpu.memory_space<smem>>
    %140 = arith.index_cast %arg0 : i32 to index
    %c10 = arith.constant 10 : index
    %141 = memref.load %arg2[%140, %c10] : memref<2x32xf32, #tpu.memory_space<smem>>
    %142 = arith.index_cast %arg0 : i32 to index
    %c11 = arith.constant 11 : index
    %143 = memref.load %arg2[%142, %c11] : memref<2x32xf32, #tpu.memory_space<smem>>
    %cst_95 = arith.constant 5.000000e-01 : f32
    %144 = arith.mulf %cst_95, %141 : f32
    %145 = arith.subf %137, %144 : f32
    %cst_96 = arith.constant 5.000000e-01 : f32
    %146 = arith.mulf %cst_96, %141 : f32
    %147 = arith.addf %137, %146 : f32
    %cst_97 = arith.constant 5.000000e-01 : f32
    %148 = arith.mulf %cst_97, %143 : f32
    %149 = arith.subf %139, %148 : f32
    %cst_98 = arith.constant 5.000000e-01 : f32
    %150 = arith.mulf %cst_98, %143 : f32
    %151 = arith.addf %139, %150 : f32
    %152 = arith.mulf %141, %143 : f32
    %153 = arith.index_cast %arg0 : i32 to index
    %c12 = arith.constant 12 : index
    %154 = memref.load %arg2[%153, %c12] : memref<2x32xf32, #tpu.memory_space<smem>>
    %155 = arith.index_cast %arg0 : i32 to index
    %c13 = arith.constant 13 : index
    %156 = memref.load %arg2[%155, %c13] : memref<2x32xf32, #tpu.memory_space<smem>>
    %157 = arith.index_cast %arg0 : i32 to index
    %c14 = arith.constant 14 : index
    %158 = memref.load %arg2[%157, %c14] : memref<2x32xf32, #tpu.memory_space<smem>>
    %159 = arith.index_cast %arg0 : i32 to index
    %c15 = arith.constant 15 : index
    %160 = memref.load %arg2[%159, %c15] : memref<2x32xf32, #tpu.memory_space<smem>>
    %cst_99 = arith.constant 5.000000e-01 : f32
    %161 = arith.mulf %cst_99, %158 : f32
    %162 = arith.subf %154, %161 : f32
    %cst_100 = arith.constant 5.000000e-01 : f32
    %163 = arith.mulf %cst_100, %158 : f32
    %164 = arith.addf %154, %163 : f32
    %cst_101 = arith.constant 5.000000e-01 : f32
    %165 = arith.mulf %cst_101, %160 : f32
    %166 = arith.subf %156, %165 : f32
    %cst_102 = arith.constant 5.000000e-01 : f32
    %167 = arith.mulf %cst_102, %160 : f32
    %168 = arith.addf %156, %167 : f32
    %169 = arith.mulf %158, %160 : f32
    %170 = arith.index_cast %arg0 : i32 to index
    %c16 = arith.constant 16 : index
    %171 = memref.load %arg2[%170, %c16] : memref<2x32xf32, #tpu.memory_space<smem>>
    %172 = arith.index_cast %arg0 : i32 to index
    %c17 = arith.constant 17 : index
    %173 = memref.load %arg2[%172, %c17] : memref<2x32xf32, #tpu.memory_space<smem>>
    %174 = arith.index_cast %arg0 : i32 to index
    %c18 = arith.constant 18 : index
    %175 = memref.load %arg2[%174, %c18] : memref<2x32xf32, #tpu.memory_space<smem>>
    %176 = arith.index_cast %arg0 : i32 to index
    %c19 = arith.constant 19 : index
    %177 = memref.load %arg2[%176, %c19] : memref<2x32xf32, #tpu.memory_space<smem>>
    %cst_103 = arith.constant 5.000000e-01 : f32
    %178 = arith.mulf %cst_103, %175 : f32
    %179 = arith.subf %171, %178 : f32
    %cst_104 = arith.constant 5.000000e-01 : f32
    %180 = arith.mulf %cst_104, %175 : f32
    %181 = arith.addf %171, %180 : f32
    %cst_105 = arith.constant 5.000000e-01 : f32
    %182 = arith.mulf %cst_105, %177 : f32
    %183 = arith.subf %173, %182 : f32
    %cst_106 = arith.constant 5.000000e-01 : f32
    %184 = arith.mulf %cst_106, %177 : f32
    %185 = arith.addf %173, %184 : f32
    %186 = arith.mulf %175, %177 : f32
    %187 = arith.index_cast %arg0 : i32 to index
    %c20 = arith.constant 20 : index
    %188 = memref.load %arg2[%187, %c20] : memref<2x32xf32, #tpu.memory_space<smem>>
    %189 = arith.index_cast %arg0 : i32 to index
    %c21 = arith.constant 21 : index
    %190 = memref.load %arg2[%189, %c21] : memref<2x32xf32, #tpu.memory_space<smem>>
    %191 = arith.index_cast %arg0 : i32 to index
    %c22 = arith.constant 22 : index
    %192 = memref.load %arg2[%191, %c22] : memref<2x32xf32, #tpu.memory_space<smem>>
    %193 = arith.index_cast %arg0 : i32 to index
    %c23 = arith.constant 23 : index
    %194 = memref.load %arg2[%193, %c23] : memref<2x32xf32, #tpu.memory_space<smem>>
    %cst_107 = arith.constant 5.000000e-01 : f32
    %195 = arith.mulf %cst_107, %192 : f32
    %196 = arith.subf %188, %195 : f32
    %cst_108 = arith.constant 5.000000e-01 : f32
    %197 = arith.mulf %cst_108, %192 : f32
    %198 = arith.addf %188, %197 : f32
    %cst_109 = arith.constant 5.000000e-01 : f32
    %199 = arith.mulf %cst_109, %194 : f32
    %200 = arith.subf %190, %199 : f32
    %cst_110 = arith.constant 5.000000e-01 : f32
    %201 = arith.mulf %cst_110, %194 : f32
    %202 = arith.addf %190, %201 : f32
    %203 = arith.mulf %192, %194 : f32
    %204 = arith.index_cast %arg0 : i32 to index
    %c24 = arith.constant 24 : index
    %205 = memref.load %arg2[%204, %c24] : memref<2x32xf32, #tpu.memory_space<smem>>
    %206 = arith.index_cast %arg0 : i32 to index
    %c25 = arith.constant 25 : index
    %207 = memref.load %arg2[%206, %c25] : memref<2x32xf32, #tpu.memory_space<smem>>
    %208 = arith.index_cast %arg0 : i32 to index
    %c26 = arith.constant 26 : index
    %209 = memref.load %arg2[%208, %c26] : memref<2x32xf32, #tpu.memory_space<smem>>
    %210 = arith.index_cast %arg0 : i32 to index
    %c27 = arith.constant 27 : index
    %211 = memref.load %arg2[%210, %c27] : memref<2x32xf32, #tpu.memory_space<smem>>
    %cst_111 = arith.constant 5.000000e-01 : f32
    %212 = arith.mulf %cst_111, %209 : f32
    %213 = arith.subf %205, %212 : f32
    %cst_112 = arith.constant 5.000000e-01 : f32
    %214 = arith.mulf %cst_112, %209 : f32
    %215 = arith.addf %205, %214 : f32
    %cst_113 = arith.constant 5.000000e-01 : f32
    %216 = arith.mulf %cst_113, %211 : f32
    %217 = arith.subf %207, %216 : f32
    %cst_114 = arith.constant 5.000000e-01 : f32
    %218 = arith.mulf %cst_114, %211 : f32
    %219 = arith.addf %207, %218 : f32
    %220 = arith.mulf %209, %211 : f32
    %221 = arith.index_cast %arg0 : i32 to index
    %c28 = arith.constant 28 : index
    %222 = memref.load %arg2[%221, %c28] : memref<2x32xf32, #tpu.memory_space<smem>>
    %223 = arith.index_cast %arg0 : i32 to index
    %c29 = arith.constant 29 : index
    %224 = memref.load %arg2[%223, %c29] : memref<2x32xf32, #tpu.memory_space<smem>>
    %225 = arith.index_cast %arg0 : i32 to index
    %c30 = arith.constant 30 : index
    %226 = memref.load %arg2[%225, %c30] : memref<2x32xf32, #tpu.memory_space<smem>>
    %227 = arith.index_cast %arg0 : i32 to index
    %c31 = arith.constant 31 : index
    %228 = memref.load %arg2[%227, %c31] : memref<2x32xf32, #tpu.memory_space<smem>>
    %cst_115 = arith.constant 5.000000e-01 : f32
    %229 = arith.mulf %cst_115, %226 : f32
    %230 = arith.subf %222, %229 : f32
    %cst_116 = arith.constant 5.000000e-01 : f32
    %231 = arith.mulf %cst_116, %226 : f32
    %232 = arith.addf %222, %231 : f32
    %cst_117 = arith.constant 5.000000e-01 : f32
    %233 = arith.mulf %cst_117, %228 : f32
    %234 = arith.subf %224, %233 : f32
    %cst_118 = arith.constant 5.000000e-01 : f32
    %235 = arith.mulf %cst_118, %228 : f32
    %236 = arith.addf %224, %235 : f32
    %237 = arith.mulf %226, %228 : f32
    %238 = arith.subf %91, %12 : vector<3x1x128xf32>
    %239 = arith.mulf %24, %238 : vector<3x1x128xf32>
    %cst_119 = arith.constant dense<0.000000e+00> : vector<1x128xf32>
    %240 = vector.multi_reduction <add>, %239, %cst_119 [0] : vector<3x1x128xf32> to vector<1x128xf32>
    %cst_120 = arith.constant 0.000000e+00 : f32
    %241 = vector.broadcast %cst_120 : f32 to vector<1x128xf32>
    %242 = vector.extract_strided_slice %45 {offsets = [0, 0, 0], sizes = [1, 1, 128], strides = [1, 1, 1]} : vector<3x1x128xf32> to vector<1x1x128xf32>
    %243 = vector.shape_cast %242 : vector<1x1x128xf32> to vector<1x128xf32>
    %244 = arith.addf %243, %93 : vector<1x128xf32>
    %cst_121 = arith.constant 2.500000e-01 : f32
    %245 = vector.broadcast %cst_121 : f32 to vector<1x128xf32>
    %246 = arith.mulf %244, %245 : vector<1x128xf32>
    %247 = vector.extract_strided_slice %49 {offsets = [0, 0, 0], sizes = [1, 1, 128], strides = [1, 1, 1]} : vector<3x1x128xf32> to vector<1x1x128xf32>
    %248 = vector.shape_cast %247 : vector<1x1x128xf32> to vector<1x128xf32>
    %249 = arith.addf %248, %95 : vector<1x128xf32>
    %cst_122 = arith.constant 2.500000e-01 : f32
    %250 = vector.broadcast %cst_122 : f32 to vector<1x128xf32>
    %251 = arith.mulf %249, %250 : vector<1x128xf32>
    %252 = vector.extract_strided_slice %96 {offsets = [0, 0, 0], sizes = [1, 1, 128], strides = [1, 1, 1]} : vector<3x1x128xf32> to vector<1x1x128xf32>
    %253 = vector.shape_cast %252 : vector<1x1x128xf32> to vector<1x128xf32>
    %cst_123 = arith.constant 9.062500e-01 : f32
    %254 = vector.broadcast %cst_123 : f32 to vector<1x128xf32>
    %255 = arith.mulf %253, %254 : vector<1x128xf32>
    %256 = vector.extract_strided_slice %97 {offsets = [0, 0, 0], sizes = [1, 1, 128], strides = [1, 1, 1]} : vector<3x1x128xf32> to vector<1x1x128xf32>
    %257 = vector.shape_cast %256 : vector<1x1x128xf32> to vector<1x128xf32>
    %cst_124 = arith.constant 7.031250e-01 : f32
    %258 = vector.broadcast %cst_124 : f32 to vector<1x128xf32>
    %259 = arith.mulf %257, %258 : vector<1x128xf32>
    %cst_125 = arith.constant 5.000000e-01 : f32
    %260 = vector.broadcast %cst_125 : f32 to vector<1x128xf32>
    %261 = arith.mulf %260, %255 : vector<1x128xf32>
    %262 = arith.subf %246, %261 : vector<1x128xf32>
    %cst_126 = arith.constant 5.000000e-01 : f32
    %263 = vector.broadcast %cst_126 : f32 to vector<1x128xf32>
    %264 = arith.mulf %263, %255 : vector<1x128xf32>
    %265 = arith.addf %246, %264 : vector<1x128xf32>
    %cst_127 = arith.constant 5.000000e-01 : f32
    %266 = vector.broadcast %cst_127 : f32 to vector<1x128xf32>
    %267 = arith.mulf %266, %259 : vector<1x128xf32>
    %268 = arith.subf %251, %267 : vector<1x128xf32>
    %cst_128 = arith.constant 5.000000e-01 : f32
    %269 = vector.broadcast %cst_128 : f32 to vector<1x128xf32>
    %270 = arith.mulf %269, %259 : vector<1x128xf32>
    %271 = arith.addf %251, %270 : vector<1x128xf32>
    %272 = arith.mulf %255, %259 : vector<1x128xf32>
    %cst_129 = arith.constant -1.000000e+00 : f32
    %273 = vector.broadcast %cst_129 : f32 to vector<1x128xf32>
    %274 = vector.broadcast %113 : f32 to vector<1x128xf32>
    %275 = arith.minimumf %265, %274 : vector<1x128xf32>
    %276 = vector.broadcast %111 : f32 to vector<1x128xf32>
    %277 = arith.maximumf %262, %276 : vector<1x128xf32>
    %278 = arith.subf %275, %277 : vector<1x128xf32>
    %cst_130 = arith.constant 0.000000e+00 : f32
    %279 = vector.broadcast %cst_130 : f32 to vector<1x128xf32>
    %280 = arith.maximumf %278, %279 : vector<1x128xf32>
    %281 = vector.broadcast %117 : f32 to vector<1x128xf32>
    %282 = arith.minimumf %271, %281 : vector<1x128xf32>
    %283 = vector.broadcast %115 : f32 to vector<1x128xf32>
    %284 = arith.maximumf %268, %283 : vector<1x128xf32>
    %285 = arith.subf %282, %284 : vector<1x128xf32>
    %cst_131 = arith.constant 0.000000e+00 : f32
    %286 = vector.broadcast %cst_131 : f32 to vector<1x128xf32>
    %287 = arith.maximumf %285, %286 : vector<1x128xf32>
    %288 = arith.mulf %280, %287 : vector<1x128xf32>
    %289 = vector.broadcast %118 : f32 to vector<1x128xf32>
    %290 = arith.addf %272, %289 : vector<1x128xf32>
    %291 = arith.subf %290, %288 : vector<1x128xf32>
    %cst_132 = arith.constant 0.699999988 : f32
    %292 = vector.broadcast %cst_132 : f32 to vector<1x128xf32>
    %293 = arith.mulf %292, %291 : vector<1x128xf32>
    %294 = arith.subf %288, %293 : vector<1x128xf32>
    %295 = arith.maximumf %273, %294 : vector<1x128xf32>
    %296 = vector.broadcast %130 : f32 to vector<1x128xf32>
    %297 = arith.minimumf %265, %296 : vector<1x128xf32>
    %298 = vector.broadcast %128 : f32 to vector<1x128xf32>
    %299 = arith.maximumf %262, %298 : vector<1x128xf32>
    %300 = arith.subf %297, %299 : vector<1x128xf32>
    %cst_133 = arith.constant 0.000000e+00 : f32
    %301 = vector.broadcast %cst_133 : f32 to vector<1x128xf32>
    %302 = arith.maximumf %300, %301 : vector<1x128xf32>
    %303 = vector.broadcast %134 : f32 to vector<1x128xf32>
    %304 = arith.minimumf %271, %303 : vector<1x128xf32>
    %305 = vector.broadcast %132 : f32 to vector<1x128xf32>
    %306 = arith.maximumf %268, %305 : vector<1x128xf32>
    %307 = arith.subf %304, %306 : vector<1x128xf32>
    %cst_134 = arith.constant 0.000000e+00 : f32
    %308 = vector.broadcast %cst_134 : f32 to vector<1x128xf32>
    %309 = arith.maximumf %307, %308 : vector<1x128xf32>
    %310 = arith.mulf %302, %309 : vector<1x128xf32>
    %311 = vector.broadcast %135 : f32 to vector<1x128xf32>
    %312 = arith.addf %272, %311 : vector<1x128xf32>
    %313 = arith.subf %312, %310 : vector<1x128xf32>
    %cst_135 = arith.constant 0.699999988 : f32
    %314 = vector.broadcast %cst_135 : f32 to vector<1x128xf32>
    %315 = arith.mulf %314, %313 : vector<1x128xf32>
    %316 = arith.subf %310, %315 : vector<1x128xf32>
    %317 = arith.maximumf %295, %316 : vector<1x128xf32>
    %318 = vector.broadcast %147 : f32 to vector<1x128xf32>
    %319 = arith.minimumf %265, %318 : vector<1x128xf32>
    %320 = vector.broadcast %145 : f32 to vector<1x128xf32>
    %321 = arith.maximumf %262, %320 : vector<1x128xf32>
    %322 = arith.subf %319, %321 : vector<1x128xf32>
    %cst_136 = arith.constant 0.000000e+00 : f32
    %323 = vector.broadcast %cst_136 : f32 to vector<1x128xf32>
    %324 = arith.maximumf %322, %323 : vector<1x128xf32>
    %325 = vector.broadcast %151 : f32 to vector<1x128xf32>
    %326 = arith.minimumf %271, %325 : vector<1x128xf32>
    %327 = vector.broadcast %149 : f32 to vector<1x128xf32>
    %328 = arith.maximumf %268, %327 : vector<1x128xf32>
    %329 = arith.subf %326, %328 : vector<1x128xf32>
    %cst_137 = arith.constant 0.000000e+00 : f32
    %330 = vector.broadcast %cst_137 : f32 to vector<1x128xf32>
    %331 = arith.maximumf %329, %330 : vector<1x128xf32>
    %332 = arith.mulf %324, %331 : vector<1x128xf32>
    %333 = vector.broadcast %152 : f32 to vector<1x128xf32>
    %334 = arith.addf %272, %333 : vector<1x128xf32>
    %335 = arith.subf %334, %332 : vector<1x128xf32>
    %cst_138 = arith.constant 0.699999988 : f32
    %336 = vector.broadcast %cst_138 : f32 to vector<1x128xf32>
    %337 = arith.mulf %336, %335 : vector<1x128xf32>
    %338 = arith.subf %332, %337 : vector<1x128xf32>
    %339 = arith.maximumf %317, %338 : vector<1x128xf32>
    %340 = vector.broadcast %164 : f32 to vector<1x128xf32>
    %341 = arith.minimumf %265, %340 : vector<1x128xf32>
    %342 = vector.broadcast %162 : f32 to vector<1x128xf32>
    %343 = arith.maximumf %262, %342 : vector<1x128xf32>
    %344 = arith.subf %341, %343 : vector<1x128xf32>
    %cst_139 = arith.constant 0.000000e+00 : f32
    %345 = vector.broadcast %cst_139 : f32 to vector<1x128xf32>
    %346 = arith.maximumf %344, %345 : vector<1x128xf32>
    %347 = vector.broadcast %168 : f32 to vector<1x128xf32>
    %348 = arith.minimumf %271, %347 : vector<1x128xf32>
    %349 = vector.broadcast %166 : f32 to vector<1x128xf32>
    %350 = arith.maximumf %268, %349 : vector<1x128xf32>
    %351 = arith.subf %348, %350 : vector<1x128xf32>
    %cst_140 = arith.constant 0.000000e+00 : f32
    %352 = vector.broadcast %cst_140 : f32 to vector<1x128xf32>
    %353 = arith.maximumf %351, %352 : vector<1x128xf32>
    %354 = arith.mulf %346, %353 : vector<1x128xf32>
    %355 = vector.broadcast %169 : f32 to vector<1x128xf32>
    %356 = arith.addf %272, %355 : vector<1x128xf32>
    %357 = arith.subf %356, %354 : vector<1x128xf32>
    %cst_141 = arith.constant 0.699999988 : f32
    %358 = vector.broadcast %cst_141 : f32 to vector<1x128xf32>
    %359 = arith.mulf %358, %357 : vector<1x128xf32>
    %360 = arith.subf %354, %359 : vector<1x128xf32>
    %361 = arith.maximumf %339, %360 : vector<1x128xf32>
    %362 = vector.broadcast %181 : f32 to vector<1x128xf32>
    %363 = arith.minimumf %265, %362 : vector<1x128xf32>
    %364 = vector.broadcast %179 : f32 to vector<1x128xf32>
    %365 = arith.maximumf %262, %364 : vector<1x128xf32>
    %366 = arith.subf %363, %365 : vector<1x128xf32>
    %cst_142 = arith.constant 0.000000e+00 : f32
    %367 = vector.broadcast %cst_142 : f32 to vector<1x128xf32>
    %368 = arith.maximumf %366, %367 : vector<1x128xf32>
    %369 = vector.broadcast %185 : f32 to vector<1x128xf32>
    %370 = arith.minimumf %271, %369 : vector<1x128xf32>
    %371 = vector.broadcast %183 : f32 to vector<1x128xf32>
    %372 = arith.maximumf %268, %371 : vector<1x128xf32>
    %373 = arith.subf %370, %372 : vector<1x128xf32>
    %cst_143 = arith.constant 0.000000e+00 : f32
    %374 = vector.broadcast %cst_143 : f32 to vector<1x128xf32>
    %375 = arith.maximumf %373, %374 : vector<1x128xf32>
    %376 = arith.mulf %368, %375 : vector<1x128xf32>
    %377 = vector.broadcast %186 : f32 to vector<1x128xf32>
    %378 = arith.addf %272, %377 : vector<1x128xf32>
    %379 = arith.subf %378, %376 : vector<1x128xf32>
    %cst_144 = arith.constant 0.699999988 : f32
    %380 = vector.broadcast %cst_144 : f32 to vector<1x128xf32>
    %381 = arith.mulf %380, %379 : vector<1x128xf32>
    %382 = arith.subf %376, %381 : vector<1x128xf32>
    %383 = arith.maximumf %361, %382 : vector<1x128xf32>
    %384 = vector.broadcast %198 : f32 to vector<1x128xf32>
    %385 = arith.minimumf %265, %384 : vector<1x128xf32>
    %386 = vector.broadcast %196 : f32 to vector<1x128xf32>
    %387 = arith.maximumf %262, %386 : vector<1x128xf32>
    %388 = arith.subf %385, %387 : vector<1x128xf32>
    %cst_145 = arith.constant 0.000000e+00 : f32
    %389 = vector.broadcast %cst_145 : f32 to vector<1x128xf32>
    %390 = arith.maximumf %388, %389 : vector<1x128xf32>
    %391 = vector.broadcast %202 : f32 to vector<1x128xf32>
    %392 = arith.minimumf %271, %391 : vector<1x128xf32>
    %393 = vector.broadcast %200 : f32 to vector<1x128xf32>
    %394 = arith.maximumf %268, %393 : vector<1x128xf32>
    %395 = arith.subf %392, %394 : vector<1x128xf32>
    %cst_146 = arith.constant 0.000000e+00 : f32
    %396 = vector.broadcast %cst_146 : f32 to vector<1x128xf32>
    %397 = arith.maximumf %395, %396 : vector<1x128xf32>
    %398 = arith.mulf %390, %397 : vector<1x128xf32>
    %399 = vector.broadcast %203 : f32 to vector<1x128xf32>
    %400 = arith.addf %272, %399 : vector<1x128xf32>
    %401 = arith.subf %400, %398 : vector<1x128xf32>
    %cst_147 = arith.constant 0.699999988 : f32
    %402 = vector.broadcast %cst_147 : f32 to vector<1x128xf32>
    %403 = arith.mulf %402, %401 : vector<1x128xf32>
    %404 = arith.subf %398, %403 : vector<1x128xf32>
    %405 = arith.maximumf %383, %404 : vector<1x128xf32>
    %406 = vector.broadcast %215 : f32 to vector<1x128xf32>
    %407 = arith.minimumf %265, %406 : vector<1x128xf32>
    %408 = vector.broadcast %213 : f32 to vector<1x128xf32>
    %409 = arith.maximumf %262, %408 : vector<1x128xf32>
    %410 = arith.subf %407, %409 : vector<1x128xf32>
    %cst_148 = arith.constant 0.000000e+00 : f32
    %411 = vector.broadcast %cst_148 : f32 to vector<1x128xf32>
    %412 = arith.maximumf %410, %411 : vector<1x128xf32>
    %413 = vector.broadcast %219 : f32 to vector<1x128xf32>
    %414 = arith.minimumf %271, %413 : vector<1x128xf32>
    %415 = vector.broadcast %217 : f32 to vector<1x128xf32>
    %416 = arith.maximumf %268, %415 : vector<1x128xf32>
    %417 = arith.subf %414, %416 : vector<1x128xf32>
    %cst_149 = arith.constant 0.000000e+00 : f32
    %418 = vector.broadcast %cst_149 : f32 to vector<1x128xf32>
    %419 = arith.maximumf %417, %418 : vector<1x128xf32>
    %420 = arith.mulf %412, %419 : vector<1x128xf32>
    %421 = vector.broadcast %220 : f32 to vector<1x128xf32>
    %422 = arith.addf %272, %421 : vector<1x128xf32>
    %423 = arith.subf %422, %420 : vector<1x128xf32>
    %cst_150 = arith.constant 0.699999988 : f32
    %424 = vector.broadcast %cst_150 : f32 to vector<1x128xf32>
    %425 = arith.mulf %424, %423 : vector<1x128xf32>
    %426 = arith.subf %420, %425 : vector<1x128xf32>
    %427 = arith.maximumf %405, %426 : vector<1x128xf32>
    %428 = vector.broadcast %232 : f32 to vector<1x128xf32>
    %429 = arith.minimumf %265, %428 : vector<1x128xf32>
    %430 = vector.broadcast %230 : f32 to vector<1x128xf32>
    %431 = arith.maximumf %262, %430 : vector<1x128xf32>
    %432 = arith.subf %429, %431 : vector<1x128xf32>
    %cst_151 = arith.constant 0.000000e+00 : f32
    %433 = vector.broadcast %cst_151 : f32 to vector<1x128xf32>
    %434 = arith.maximumf %432, %433 : vector<1x128xf32>
    %435 = vector.broadcast %236 : f32 to vector<1x128xf32>
    %436 = arith.minimumf %271, %435 : vector<1x128xf32>
    %437 = vector.broadcast %234 : f32 to vector<1x128xf32>
    %438 = arith.maximumf %268, %437 : vector<1x128xf32>
    %439 = arith.subf %436, %438 : vector<1x128xf32>
    %cst_152 = arith.constant 0.000000e+00 : f32
    %440 = vector.broadcast %cst_152 : f32 to vector<1x128xf32>
    %441 = arith.maximumf %439, %440 : vector<1x128xf32>
    %442 = arith.mulf %434, %441 : vector<1x128xf32>
    %443 = vector.broadcast %237 : f32 to vector<1x128xf32>
    %444 = arith.addf %272, %443 : vector<1x128xf32>
    %445 = arith.subf %444, %442 : vector<1x128xf32>
    %cst_153 = arith.constant 0.699999988 : f32
    %446 = vector.broadcast %cst_153 : f32 to vector<1x128xf32>
    %447 = arith.mulf %446, %445 : vector<1x128xf32>
    %448 = arith.subf %442, %447 : vector<1x128xf32>
    %449 = arith.maximumf %427, %448 : vector<1x128xf32>
    %cst_154 = arith.constant 0.000000e+00 : f32
    %450 = vector.broadcast %cst_154 : f32 to vector<1x128xf32>
    %451 = arith.cmpf ole, %449, %450 : vector<1x128xf32>
    %452 = arith.extui %451 : vector<1x128xi1> to vector<1x128xi32>
    %453 = arith.sitofp %452 : vector<1x128xi32> to vector<1x128xf32>
    %454 = vector.extract_strided_slice %101 {offsets = [0, 0, 0], sizes = [1, 1, 128], strides = [1, 1, 1]} : vector<3x1x128xf32> to vector<1x1x128xf32>
    %455 = vector.shape_cast %454 : vector<1x1x128xf32> to vector<1x128xf32>
    %cst_155 = arith.constant 1.000000e+00 : f32
    %456 = vector.broadcast %cst_155 : f32 to vector<1x128xf32>
    %457 = arith.subf %456, %455 : vector<1x128xf32>
    %458 = arith.mulf %457, %453 : vector<1x128xf32>
    %459 = vector.extract_strided_slice %91 {offsets = [0, 0, 0], sizes = [1, 1, 128], strides = [1, 1, 1]} : vector<3x1x128xf32> to vector<1x1x128xf32>
    %460 = vector.shape_cast %459 : vector<1x1x128xf32> to vector<1x128xf32>
    %461 = arith.mulf %458, %460 : vector<1x128xf32>
    %462 = arith.addf %241, %461 : vector<1x128xf32>
    %463 = vector.extract_strided_slice %45 {offsets = [1, 0, 0], sizes = [1, 1, 128], strides = [1, 1, 1]} : vector<3x1x128xf32> to vector<1x1x128xf32>
    %464 = vector.shape_cast %463 : vector<1x1x128xf32> to vector<1x128xf32>
    %465 = arith.addf %464, %93 : vector<1x128xf32>
    %cst_156 = arith.constant 2.500000e-01 : f32
    %466 = vector.broadcast %cst_156 : f32 to vector<1x128xf32>
    %467 = arith.mulf %465, %466 : vector<1x128xf32>
    %468 = vector.extract_strided_slice %49 {offsets = [1, 0, 0], sizes = [1, 1, 128], strides = [1, 1, 1]} : vector<3x1x128xf32> to vector<1x1x128xf32>
    %469 = vector.shape_cast %468 : vector<1x1x128xf32> to vector<1x128xf32>
    %470 = arith.addf %469, %95 : vector<1x128xf32>
    %cst_157 = arith.constant 2.500000e-01 : f32
    %471 = vector.broadcast %cst_157 : f32 to vector<1x128xf32>
    %472 = arith.mulf %470, %471 : vector<1x128xf32>
    %473 = vector.extract_strided_slice %96 {offsets = [1, 0, 0], sizes = [1, 1, 128], strides = [1, 1, 1]} : vector<3x1x128xf32> to vector<1x1x128xf32>
    %474 = vector.shape_cast %473 : vector<1x1x128xf32> to vector<1x128xf32>
    %cst_158 = arith.constant 1.218750e+00 : f32
    %475 = vector.broadcast %cst_158 : f32 to vector<1x128xf32>
    %476 = arith.mulf %474, %475 : vector<1x128xf32>
    %477 = vector.extract_strided_slice %97 {offsets = [1, 0, 0], sizes = [1, 1, 128], strides = [1, 1, 1]} : vector<3x1x128xf32> to vector<1x1x128xf32>
    %478 = vector.shape_cast %477 : vector<1x1x128xf32> to vector<1x128xf32>
    %cst_159 = arith.constant 1.546875 : f32
    %479 = vector.broadcast %cst_159 : f32 to vector<1x128xf32>
    %480 = arith.mulf %478, %479 : vector<1x128xf32>
    %cst_160 = arith.constant 5.000000e-01 : f32
    %481 = vector.broadcast %cst_160 : f32 to vector<1x128xf32>
    %482 = arith.mulf %481, %476 : vector<1x128xf32>
    %483 = arith.subf %467, %482 : vector<1x128xf32>
    %cst_161 = arith.constant 5.000000e-01 : f32
    %484 = vector.broadcast %cst_161 : f32 to vector<1x128xf32>
    %485 = arith.mulf %484, %476 : vector<1x128xf32>
    %486 = arith.addf %467, %485 : vector<1x128xf32>
    %cst_162 = arith.constant 5.000000e-01 : f32
    %487 = vector.broadcast %cst_162 : f32 to vector<1x128xf32>
    %488 = arith.mulf %487, %480 : vector<1x128xf32>
    %489 = arith.subf %472, %488 : vector<1x128xf32>
    %cst_163 = arith.constant 5.000000e-01 : f32
    %490 = vector.broadcast %cst_163 : f32 to vector<1x128xf32>
    %491 = arith.mulf %490, %480 : vector<1x128xf32>
    %492 = arith.addf %472, %491 : vector<1x128xf32>
    %493 = arith.mulf %476, %480 : vector<1x128xf32>
    %cst_164 = arith.constant -1.000000e+00 : f32
    %494 = vector.broadcast %cst_164 : f32 to vector<1x128xf32>
    %495 = vector.broadcast %113 : f32 to vector<1x128xf32>
    %496 = arith.minimumf %486, %495 : vector<1x128xf32>
    %497 = vector.broadcast %111 : f32 to vector<1x128xf32>
    %498 = arith.maximumf %483, %497 : vector<1x128xf32>
    %499 = arith.subf %496, %498 : vector<1x128xf32>
    %cst_165 = arith.constant 0.000000e+00 : f32
    %500 = vector.broadcast %cst_165 : f32 to vector<1x128xf32>
    %501 = arith.maximumf %499, %500 : vector<1x128xf32>
    %502 = vector.broadcast %117 : f32 to vector<1x128xf32>
    %503 = arith.minimumf %492, %502 : vector<1x128xf32>
    %504 = vector.broadcast %115 : f32 to vector<1x128xf32>
    %505 = arith.maximumf %489, %504 : vector<1x128xf32>
    %506 = arith.subf %503, %505 : vector<1x128xf32>
    %cst_166 = arith.constant 0.000000e+00 : f32
    %507 = vector.broadcast %cst_166 : f32 to vector<1x128xf32>
    %508 = arith.maximumf %506, %507 : vector<1x128xf32>
    %509 = arith.mulf %501, %508 : vector<1x128xf32>
    %510 = vector.broadcast %118 : f32 to vector<1x128xf32>
    %511 = arith.addf %493, %510 : vector<1x128xf32>
    %512 = arith.subf %511, %509 : vector<1x128xf32>
    %cst_167 = arith.constant 0.699999988 : f32
    %513 = vector.broadcast %cst_167 : f32 to vector<1x128xf32>
    %514 = arith.mulf %513, %512 : vector<1x128xf32>
    %515 = arith.subf %509, %514 : vector<1x128xf32>
    %516 = arith.maximumf %494, %515 : vector<1x128xf32>
    %517 = vector.broadcast %130 : f32 to vector<1x128xf32>
    %518 = arith.minimumf %486, %517 : vector<1x128xf32>
    %519 = vector.broadcast %128 : f32 to vector<1x128xf32>
    %520 = arith.maximumf %483, %519 : vector<1x128xf32>
    %521 = arith.subf %518, %520 : vector<1x128xf32>
    %cst_168 = arith.constant 0.000000e+00 : f32
    %522 = vector.broadcast %cst_168 : f32 to vector<1x128xf32>
    %523 = arith.maximumf %521, %522 : vector<1x128xf32>
    %524 = vector.broadcast %134 : f32 to vector<1x128xf32>
    %525 = arith.minimumf %492, %524 : vector<1x128xf32>
    %526 = vector.broadcast %132 : f32 to vector<1x128xf32>
    %527 = arith.maximumf %489, %526 : vector<1x128xf32>
    %528 = arith.subf %525, %527 : vector<1x128xf32>
    %cst_169 = arith.constant 0.000000e+00 : f32
    %529 = vector.broadcast %cst_169 : f32 to vector<1x128xf32>
    %530 = arith.maximumf %528, %529 : vector<1x128xf32>
    %531 = arith.mulf %523, %530 : vector<1x128xf32>
    %532 = vector.broadcast %135 : f32 to vector<1x128xf32>
    %533 = arith.addf %493, %532 : vector<1x128xf32>
    %534 = arith.subf %533, %531 : vector<1x128xf32>
    %cst_170 = arith.constant 0.699999988 : f32
    %535 = vector.broadcast %cst_170 : f32 to vector<1x128xf32>
    %536 = arith.mulf %535, %534 : vector<1x128xf32>
    %537 = arith.subf %531, %536 : vector<1x128xf32>
    %538 = arith.maximumf %516, %537 : vector<1x128xf32>
    %539 = vector.broadcast %147 : f32 to vector<1x128xf32>
    %540 = arith.minimumf %486, %539 : vector<1x128xf32>
    %541 = vector.broadcast %145 : f32 to vector<1x128xf32>
    %542 = arith.maximumf %483, %541 : vector<1x128xf32>
    %543 = arith.subf %540, %542 : vector<1x128xf32>
    %cst_171 = arith.constant 0.000000e+00 : f32
    %544 = vector.broadcast %cst_171 : f32 to vector<1x128xf32>
    %545 = arith.maximumf %543, %544 : vector<1x128xf32>
    %546 = vector.broadcast %151 : f32 to vector<1x128xf32>
    %547 = arith.minimumf %492, %546 : vector<1x128xf32>
    %548 = vector.broadcast %149 : f32 to vector<1x128xf32>
    %549 = arith.maximumf %489, %548 : vector<1x128xf32>
    %550 = arith.subf %547, %549 : vector<1x128xf32>
    %cst_172 = arith.constant 0.000000e+00 : f32
    %551 = vector.broadcast %cst_172 : f32 to vector<1x128xf32>
    %552 = arith.maximumf %550, %551 : vector<1x128xf32>
    %553 = arith.mulf %545, %552 : vector<1x128xf32>
    %554 = vector.broadcast %152 : f32 to vector<1x128xf32>
    %555 = arith.addf %493, %554 : vector<1x128xf32>
    %556 = arith.subf %555, %553 : vector<1x128xf32>
    %cst_173 = arith.constant 0.699999988 : f32
    %557 = vector.broadcast %cst_173 : f32 to vector<1x128xf32>
    %558 = arith.mulf %557, %556 : vector<1x128xf32>
    %559 = arith.subf %553, %558 : vector<1x128xf32>
    %560 = arith.maximumf %538, %559 : vector<1x128xf32>
    %561 = vector.broadcast %164 : f32 to vector<1x128xf32>
    %562 = arith.minimumf %486, %561 : vector<1x128xf32>
    %563 = vector.broadcast %162 : f32 to vector<1x128xf32>
    %564 = arith.maximumf %483, %563 : vector<1x128xf32>
    %565 = arith.subf %562, %564 : vector<1x128xf32>
    %cst_174 = arith.constant 0.000000e+00 : f32
    %566 = vector.broadcast %cst_174 : f32 to vector<1x128xf32>
    %567 = arith.maximumf %565, %566 : vector<1x128xf32>
    %568 = vector.broadcast %168 : f32 to vector<1x128xf32>
    %569 = arith.minimumf %492, %568 : vector<1x128xf32>
    %570 = vector.broadcast %166 : f32 to vector<1x128xf32>
    %571 = arith.maximumf %489, %570 : vector<1x128xf32>
    %572 = arith.subf %569, %571 : vector<1x128xf32>
    %cst_175 = arith.constant 0.000000e+00 : f32
    %573 = vector.broadcast %cst_175 : f32 to vector<1x128xf32>
    %574 = arith.maximumf %572, %573 : vector<1x128xf32>
    %575 = arith.mulf %567, %574 : vector<1x128xf32>
    %576 = vector.broadcast %169 : f32 to vector<1x128xf32>
    %577 = arith.addf %493, %576 : vector<1x128xf32>
    %578 = arith.subf %577, %575 : vector<1x128xf32>
    %cst_176 = arith.constant 0.699999988 : f32
    %579 = vector.broadcast %cst_176 : f32 to vector<1x128xf32>
    %580 = arith.mulf %579, %578 : vector<1x128xf32>
    %581 = arith.subf %575, %580 : vector<1x128xf32>
    %582 = arith.maximumf %560, %581 : vector<1x128xf32>
    %583 = vector.broadcast %181 : f32 to vector<1x128xf32>
    %584 = arith.minimumf %486, %583 : vector<1x128xf32>
    %585 = vector.broadcast %179 : f32 to vector<1x128xf32>
    %586 = arith.maximumf %483, %585 : vector<1x128xf32>
    %587 = arith.subf %584, %586 : vector<1x128xf32>
    %cst_177 = arith.constant 0.000000e+00 : f32
    %588 = vector.broadcast %cst_177 : f32 to vector<1x128xf32>
    %589 = arith.maximumf %587, %588 : vector<1x128xf32>
    %590 = vector.broadcast %185 : f32 to vector<1x128xf32>
    %591 = arith.minimumf %492, %590 : vector<1x128xf32>
    %592 = vector.broadcast %183 : f32 to vector<1x128xf32>
    %593 = arith.maximumf %489, %592 : vector<1x128xf32>
    %594 = arith.subf %591, %593 : vector<1x128xf32>
    %cst_178 = arith.constant 0.000000e+00 : f32
    %595 = vector.broadcast %cst_178 : f32 to vector<1x128xf32>
    %596 = arith.maximumf %594, %595 : vector<1x128xf32>
    %597 = arith.mulf %589, %596 : vector<1x128xf32>
    %598 = vector.broadcast %186 : f32 to vector<1x128xf32>
    %599 = arith.addf %493, %598 : vector<1x128xf32>
    %600 = arith.subf %599, %597 : vector<1x128xf32>
    %cst_179 = arith.constant 0.699999988 : f32
    %601 = vector.broadcast %cst_179 : f32 to vector<1x128xf32>
    %602 = arith.mulf %601, %600 : vector<1x128xf32>
    %603 = arith.subf %597, %602 : vector<1x128xf32>
    %604 = arith.maximumf %582, %603 : vector<1x128xf32>
    %605 = vector.broadcast %198 : f32 to vector<1x128xf32>
    %606 = arith.minimumf %486, %605 : vector<1x128xf32>
    %607 = vector.broadcast %196 : f32 to vector<1x128xf32>
    %608 = arith.maximumf %483, %607 : vector<1x128xf32>
    %609 = arith.subf %606, %608 : vector<1x128xf32>
    %cst_180 = arith.constant 0.000000e+00 : f32
    %610 = vector.broadcast %cst_180 : f32 to vector<1x128xf32>
    %611 = arith.maximumf %609, %610 : vector<1x128xf32>
    %612 = vector.broadcast %202 : f32 to vector<1x128xf32>
    %613 = arith.minimumf %492, %612 : vector<1x128xf32>
    %614 = vector.broadcast %200 : f32 to vector<1x128xf32>
    %615 = arith.maximumf %489, %614 : vector<1x128xf32>
    %616 = arith.subf %613, %615 : vector<1x128xf32>
    %cst_181 = arith.constant 0.000000e+00 : f32
    %617 = vector.broadcast %cst_181 : f32 to vector<1x128xf32>
    %618 = arith.maximumf %616, %617 : vector<1x128xf32>
    %619 = arith.mulf %611, %618 : vector<1x128xf32>
    %620 = vector.broadcast %203 : f32 to vector<1x128xf32>
    %621 = arith.addf %493, %620 : vector<1x128xf32>
    %622 = arith.subf %621, %619 : vector<1x128xf32>
    %cst_182 = arith.constant 0.699999988 : f32
    %623 = vector.broadcast %cst_182 : f32 to vector<1x128xf32>
    %624 = arith.mulf %623, %622 : vector<1x128xf32>
    %625 = arith.subf %619, %624 : vector<1x128xf32>
    %626 = arith.maximumf %604, %625 : vector<1x128xf32>
    %627 = vector.broadcast %215 : f32 to vector<1x128xf32>
    %628 = arith.minimumf %486, %627 : vector<1x128xf32>
    %629 = vector.broadcast %213 : f32 to vector<1x128xf32>
    %630 = arith.maximumf %483, %629 : vector<1x128xf32>
    %631 = arith.subf %628, %630 : vector<1x128xf32>
    %cst_183 = arith.constant 0.000000e+00 : f32
    %632 = vector.broadcast %cst_183 : f32 to vector<1x128xf32>
    %633 = arith.maximumf %631, %632 : vector<1x128xf32>
    %634 = vector.broadcast %219 : f32 to vector<1x128xf32>
    %635 = arith.minimumf %492, %634 : vector<1x128xf32>
    %636 = vector.broadcast %217 : f32 to vector<1x128xf32>
    %637 = arith.maximumf %489, %636 : vector<1x128xf32>
    %638 = arith.subf %635, %637 : vector<1x128xf32>
    %cst_184 = arith.constant 0.000000e+00 : f32
    %639 = vector.broadcast %cst_184 : f32 to vector<1x128xf32>
    %640 = arith.maximumf %638, %639 : vector<1x128xf32>
    %641 = arith.mulf %633, %640 : vector<1x128xf32>
    %642 = vector.broadcast %220 : f32 to vector<1x128xf32>
    %643 = arith.addf %493, %642 : vector<1x128xf32>
    %644 = arith.subf %643, %641 : vector<1x128xf32>
    %cst_185 = arith.constant 0.699999988 : f32
    %645 = vector.broadcast %cst_185 : f32 to vector<1x128xf32>
    %646 = arith.mulf %645, %644 : vector<1x128xf32>
    %647 = arith.subf %641, %646 : vector<1x128xf32>
    %648 = arith.maximumf %626, %647 : vector<1x128xf32>
    %649 = vector.broadcast %232 : f32 to vector<1x128xf32>
    %650 = arith.minimumf %486, %649 : vector<1x128xf32>
    %651 = vector.broadcast %230 : f32 to vector<1x128xf32>
    %652 = arith.maximumf %483, %651 : vector<1x128xf32>
    %653 = arith.subf %650, %652 : vector<1x128xf32>
    %cst_186 = arith.constant 0.000000e+00 : f32
    %654 = vector.broadcast %cst_186 : f32 to vector<1x128xf32>
    %655 = arith.maximumf %653, %654 : vector<1x128xf32>
    %656 = vector.broadcast %236 : f32 to vector<1x128xf32>
    %657 = arith.minimumf %492, %656 : vector<1x128xf32>
    %658 = vector.broadcast %234 : f32 to vector<1x128xf32>
    %659 = arith.maximumf %489, %658 : vector<1x128xf32>
    %660 = arith.subf %657, %659 : vector<1x128xf32>
    %cst_187 = arith.constant 0.000000e+00 : f32
    %661 = vector.broadcast %cst_187 : f32 to vector<1x128xf32>
    %662 = arith.maximumf %660, %661 : vector<1x128xf32>
    %663 = arith.mulf %655, %662 : vector<1x128xf32>
    %664 = vector.broadcast %237 : f32 to vector<1x128xf32>
    %665 = arith.addf %493, %664 : vector<1x128xf32>
    %666 = arith.subf %665, %663 : vector<1x128xf32>
    %cst_188 = arith.constant 0.699999988 : f32
    %667 = vector.broadcast %cst_188 : f32 to vector<1x128xf32>
    %668 = arith.mulf %667, %666 : vector<1x128xf32>
    %669 = arith.subf %663, %668 : vector<1x128xf32>
    %670 = arith.maximumf %648, %669 : vector<1x128xf32>
    %cst_189 = arith.constant 0.000000e+00 : f32
    %671 = vector.broadcast %cst_189 : f32 to vector<1x128xf32>
    %672 = arith.cmpf ole, %670, %671 : vector<1x128xf32>
    %673 = arith.extui %672 : vector<1x128xi1> to vector<1x128xi32>
    %674 = arith.sitofp %673 : vector<1x128xi32> to vector<1x128xf32>
    %675 = vector.extract_strided_slice %101 {offsets = [1, 0, 0], sizes = [1, 1, 128], strides = [1, 1, 1]} : vector<3x1x128xf32> to vector<1x1x128xf32>
    %676 = vector.shape_cast %675 : vector<1x1x128xf32> to vector<1x128xf32>
    %cst_190 = arith.constant 1.000000e+00 : f32
    %677 = vector.broadcast %cst_190 : f32 to vector<1x128xf32>
    %678 = arith.subf %677, %676 : vector<1x128xf32>
    %679 = arith.mulf %678, %674 : vector<1x128xf32>
    %680 = vector.extract_strided_slice %91 {offsets = [1, 0, 0], sizes = [1, 1, 128], strides = [1, 1, 1]} : vector<3x1x128xf32> to vector<1x1x128xf32>
    %681 = vector.shape_cast %680 : vector<1x1x128xf32> to vector<1x128xf32>
    %682 = arith.mulf %679, %681 : vector<1x128xf32>
    %683 = arith.addf %462, %682 : vector<1x128xf32>
    %684 = vector.extract_strided_slice %45 {offsets = [2, 0, 0], sizes = [1, 1, 128], strides = [1, 1, 1]} : vector<3x1x128xf32> to vector<1x1x128xf32>
    %685 = vector.shape_cast %684 : vector<1x1x128xf32> to vector<1x128xf32>
    %686 = arith.addf %685, %93 : vector<1x128xf32>
    %cst_191 = arith.constant 2.500000e-01 : f32
    %687 = vector.broadcast %cst_191 : f32 to vector<1x128xf32>
    %688 = arith.mulf %686, %687 : vector<1x128xf32>
    %689 = vector.extract_strided_slice %49 {offsets = [2, 0, 0], sizes = [1, 1, 128], strides = [1, 1, 1]} : vector<3x1x128xf32> to vector<1x1x128xf32>
    %690 = vector.shape_cast %689 : vector<1x1x128xf32> to vector<1x128xf32>
    %691 = arith.addf %690, %95 : vector<1x128xf32>
    %cst_192 = arith.constant 2.500000e-01 : f32
    %692 = vector.broadcast %cst_192 : f32 to vector<1x128xf32>
    %693 = arith.mulf %691, %692 : vector<1x128xf32>
    %694 = vector.extract_strided_slice %96 {offsets = [2, 0, 0], sizes = [1, 1, 128], strides = [1, 1, 1]} : vector<3x1x128xf32> to vector<1x1x128xf32>
    %695 = vector.shape_cast %694 : vector<1x1x128xf32> to vector<1x128xf32>
    %cst_193 = arith.constant 2.9140625 : f32
    %696 = vector.broadcast %cst_193 : f32 to vector<1x128xf32>
    %697 = arith.mulf %695, %696 : vector<1x128xf32>
    %698 = vector.extract_strided_slice %97 {offsets = [2, 0, 0], sizes = [1, 1, 128], strides = [1, 1, 1]} : vector<3x1x128xf32> to vector<1x1x128xf32>
    %699 = vector.shape_cast %698 : vector<1x1x128xf32> to vector<1x128xf32>
    %cst_194 = arith.constant 2.546875 : f32
    %700 = vector.broadcast %cst_194 : f32 to vector<1x128xf32>
    %701 = arith.mulf %699, %700 : vector<1x128xf32>
    %cst_195 = arith.constant 5.000000e-01 : f32
    %702 = vector.broadcast %cst_195 : f32 to vector<1x128xf32>
    %703 = arith.mulf %702, %697 : vector<1x128xf32>
    %704 = arith.subf %688, %703 : vector<1x128xf32>
    %cst_196 = arith.constant 5.000000e-01 : f32
    %705 = vector.broadcast %cst_196 : f32 to vector<1x128xf32>
    %706 = arith.mulf %705, %697 : vector<1x128xf32>
    %707 = arith.addf %688, %706 : vector<1x128xf32>
    %cst_197 = arith.constant 5.000000e-01 : f32
    %708 = vector.broadcast %cst_197 : f32 to vector<1x128xf32>
    %709 = arith.mulf %708, %701 : vector<1x128xf32>
    %710 = arith.subf %693, %709 : vector<1x128xf32>
    %cst_198 = arith.constant 5.000000e-01 : f32
    %711 = vector.broadcast %cst_198 : f32 to vector<1x128xf32>
    %712 = arith.mulf %711, %701 : vector<1x128xf32>
    %713 = arith.addf %693, %712 : vector<1x128xf32>
    %714 = arith.mulf %697, %701 : vector<1x128xf32>
    %cst_199 = arith.constant -1.000000e+00 : f32
    %715 = vector.broadcast %cst_199 : f32 to vector<1x128xf32>
    %716 = vector.broadcast %113 : f32 to vector<1x128xf32>
    %717 = arith.minimumf %707, %716 : vector<1x128xf32>
    %718 = vector.broadcast %111 : f32 to vector<1x128xf32>
    %719 = arith.maximumf %704, %718 : vector<1x128xf32>
    %720 = arith.subf %717, %719 : vector<1x128xf32>
    %cst_200 = arith.constant 0.000000e+00 : f32
    %721 = vector.broadcast %cst_200 : f32 to vector<1x128xf32>
    %722 = arith.maximumf %720, %721 : vector<1x128xf32>
    %723 = vector.broadcast %117 : f32 to vector<1x128xf32>
    %724 = arith.minimumf %713, %723 : vector<1x128xf32>
    %725 = vector.broadcast %115 : f32 to vector<1x128xf32>
    %726 = arith.maximumf %710, %725 : vector<1x128xf32>
    %727 = arith.subf %724, %726 : vector<1x128xf32>
    %cst_201 = arith.constant 0.000000e+00 : f32
    %728 = vector.broadcast %cst_201 : f32 to vector<1x128xf32>
    %729 = arith.maximumf %727, %728 : vector<1x128xf32>
    %730 = arith.mulf %722, %729 : vector<1x128xf32>
    %731 = vector.broadcast %118 : f32 to vector<1x128xf32>
    %732 = arith.addf %714, %731 : vector<1x128xf32>
    %733 = arith.subf %732, %730 : vector<1x128xf32>
    %cst_202 = arith.constant 0.699999988 : f32
    %734 = vector.broadcast %cst_202 : f32 to vector<1x128xf32>
    %735 = arith.mulf %734, %733 : vector<1x128xf32>
    %736 = arith.subf %730, %735 : vector<1x128xf32>
    %737 = arith.maximumf %715, %736 : vector<1x128xf32>
    %738 = vector.broadcast %130 : f32 to vector<1x128xf32>
    %739 = arith.minimumf %707, %738 : vector<1x128xf32>
    %740 = vector.broadcast %128 : f32 to vector<1x128xf32>
    %741 = arith.maximumf %704, %740 : vector<1x128xf32>
    %742 = arith.subf %739, %741 : vector<1x128xf32>
    %cst_203 = arith.constant 0.000000e+00 : f32
    %743 = vector.broadcast %cst_203 : f32 to vector<1x128xf32>
    %744 = arith.maximumf %742, %743 : vector<1x128xf32>
    %745 = vector.broadcast %134 : f32 to vector<1x128xf32>
    %746 = arith.minimumf %713, %745 : vector<1x128xf32>
    %747 = vector.broadcast %132 : f32 to vector<1x128xf32>
    %748 = arith.maximumf %710, %747 : vector<1x128xf32>
    %749 = arith.subf %746, %748 : vector<1x128xf32>
    %cst_204 = arith.constant 0.000000e+00 : f32
    %750 = vector.broadcast %cst_204 : f32 to vector<1x128xf32>
    %751 = arith.maximumf %749, %750 : vector<1x128xf32>
    %752 = arith.mulf %744, %751 : vector<1x128xf32>
    %753 = vector.broadcast %135 : f32 to vector<1x128xf32>
    %754 = arith.addf %714, %753 : vector<1x128xf32>
    %755 = arith.subf %754, %752 : vector<1x128xf32>
    %cst_205 = arith.constant 0.699999988 : f32
    %756 = vector.broadcast %cst_205 : f32 to vector<1x128xf32>
    %757 = arith.mulf %756, %755 : vector<1x128xf32>
    %758 = arith.subf %752, %757 : vector<1x128xf32>
    %759 = arith.maximumf %737, %758 : vector<1x128xf32>
    %760 = vector.broadcast %147 : f32 to vector<1x128xf32>
    %761 = arith.minimumf %707, %760 : vector<1x128xf32>
    %762 = vector.broadcast %145 : f32 to vector<1x128xf32>
    %763 = arith.maximumf %704, %762 : vector<1x128xf32>
    %764 = arith.subf %761, %763 : vector<1x128xf32>
    %cst_206 = arith.constant 0.000000e+00 : f32
    %765 = vector.broadcast %cst_206 : f32 to vector<1x128xf32>
    %766 = arith.maximumf %764, %765 : vector<1x128xf32>
    %767 = vector.broadcast %151 : f32 to vector<1x128xf32>
    %768 = arith.minimumf %713, %767 : vector<1x128xf32>
    %769 = vector.broadcast %149 : f32 to vector<1x128xf32>
    %770 = arith.maximumf %710, %769 : vector<1x128xf32>
    %771 = arith.subf %768, %770 : vector<1x128xf32>
    %cst_207 = arith.constant 0.000000e+00 : f32
    %772 = vector.broadcast %cst_207 : f32 to vector<1x128xf32>
    %773 = arith.maximumf %771, %772 : vector<1x128xf32>
    %774 = arith.mulf %766, %773 : vector<1x128xf32>
    %775 = vector.broadcast %152 : f32 to vector<1x128xf32>
    %776 = arith.addf %714, %775 : vector<1x128xf32>
    %777 = arith.subf %776, %774 : vector<1x128xf32>
    %cst_208 = arith.constant 0.699999988 : f32
    %778 = vector.broadcast %cst_208 : f32 to vector<1x128xf32>
    %779 = arith.mulf %778, %777 : vector<1x128xf32>
    %780 = arith.subf %774, %779 : vector<1x128xf32>
    %781 = arith.maximumf %759, %780 : vector<1x128xf32>
    %782 = vector.broadcast %164 : f32 to vector<1x128xf32>
    %783 = arith.minimumf %707, %782 : vector<1x128xf32>
    %784 = vector.broadcast %162 : f32 to vector<1x128xf32>
    %785 = arith.maximumf %704, %784 : vector<1x128xf32>
    %786 = arith.subf %783, %785 : vector<1x128xf32>
    %cst_209 = arith.constant 0.000000e+00 : f32
    %787 = vector.broadcast %cst_209 : f32 to vector<1x128xf32>
    %788 = arith.maximumf %786, %787 : vector<1x128xf32>
    %789 = vector.broadcast %168 : f32 to vector<1x128xf32>
    %790 = arith.minimumf %713, %789 : vector<1x128xf32>
    %791 = vector.broadcast %166 : f32 to vector<1x128xf32>
    %792 = arith.maximumf %710, %791 : vector<1x128xf32>
    %793 = arith.subf %790, %792 : vector<1x128xf32>
    %cst_210 = arith.constant 0.000000e+00 : f32
    %794 = vector.broadcast %cst_210 : f32 to vector<1x128xf32>
    %795 = arith.maximumf %793, %794 : vector<1x128xf32>
    %796 = arith.mulf %788, %795 : vector<1x128xf32>
    %797 = vector.broadcast %169 : f32 to vector<1x128xf32>
    %798 = arith.addf %714, %797 : vector<1x128xf32>
    %799 = arith.subf %798, %796 : vector<1x128xf32>
    %cst_211 = arith.constant 0.699999988 : f32
    %800 = vector.broadcast %cst_211 : f32 to vector<1x128xf32>
    %801 = arith.mulf %800, %799 : vector<1x128xf32>
    %802 = arith.subf %796, %801 : vector<1x128xf32>
    %803 = arith.maximumf %781, %802 : vector<1x128xf32>
    %804 = vector.broadcast %181 : f32 to vector<1x128xf32>
    %805 = arith.minimumf %707, %804 : vector<1x128xf32>
    %806 = vector.broadcast %179 : f32 to vector<1x128xf32>
    %807 = arith.maximumf %704, %806 : vector<1x128xf32>
    %808 = arith.subf %805, %807 : vector<1x128xf32>
    %cst_212 = arith.constant 0.000000e+00 : f32
    %809 = vector.broadcast %cst_212 : f32 to vector<1x128xf32>
    %810 = arith.maximumf %808, %809 : vector<1x128xf32>
    %811 = vector.broadcast %185 : f32 to vector<1x128xf32>
    %812 = arith.minimumf %713, %811 : vector<1x128xf32>
    %813 = vector.broadcast %183 : f32 to vector<1x128xf32>
    %814 = arith.maximumf %710, %813 : vector<1x128xf32>
    %815 = arith.subf %812, %814 : vector<1x128xf32>
    %cst_213 = arith.constant 0.000000e+00 : f32
    %816 = vector.broadcast %cst_213 : f32 to vector<1x128xf32>
    %817 = arith.maximumf %815, %816 : vector<1x128xf32>
    %818 = arith.mulf %810, %817 : vector<1x128xf32>
    %819 = vector.broadcast %186 : f32 to vector<1x128xf32>
    %820 = arith.addf %714, %819 : vector<1x128xf32>
    %821 = arith.subf %820, %818 : vector<1x128xf32>
    %cst_214 = arith.constant 0.699999988 : f32
    %822 = vector.broadcast %cst_214 : f32 to vector<1x128xf32>
    %823 = arith.mulf %822, %821 : vector<1x128xf32>
    %824 = arith.subf %818, %823 : vector<1x128xf32>
    %825 = arith.maximumf %803, %824 : vector<1x128xf32>
    %826 = vector.broadcast %198 : f32 to vector<1x128xf32>
    %827 = arith.minimumf %707, %826 : vector<1x128xf32>
    %828 = vector.broadcast %196 : f32 to vector<1x128xf32>
    %829 = arith.maximumf %704, %828 : vector<1x128xf32>
    %830 = arith.subf %827, %829 : vector<1x128xf32>
    %cst_215 = arith.constant 0.000000e+00 : f32
    %831 = vector.broadcast %cst_215 : f32 to vector<1x128xf32>
    %832 = arith.maximumf %830, %831 : vector<1x128xf32>
    %833 = vector.broadcast %202 : f32 to vector<1x128xf32>
    %834 = arith.minimumf %713, %833 : vector<1x128xf32>
    %835 = vector.broadcast %200 : f32 to vector<1x128xf32>
    %836 = arith.maximumf %710, %835 : vector<1x128xf32>
    %837 = arith.subf %834, %836 : vector<1x128xf32>
    %cst_216 = arith.constant 0.000000e+00 : f32
    %838 = vector.broadcast %cst_216 : f32 to vector<1x128xf32>
    %839 = arith.maximumf %837, %838 : vector<1x128xf32>
    %840 = arith.mulf %832, %839 : vector<1x128xf32>
    %841 = vector.broadcast %203 : f32 to vector<1x128xf32>
    %842 = arith.addf %714, %841 : vector<1x128xf32>
    %843 = arith.subf %842, %840 : vector<1x128xf32>
    %cst_217 = arith.constant 0.699999988 : f32
    %844 = vector.broadcast %cst_217 : f32 to vector<1x128xf32>
    %845 = arith.mulf %844, %843 : vector<1x128xf32>
    %846 = arith.subf %840, %845 : vector<1x128xf32>
    %847 = arith.maximumf %825, %846 : vector<1x128xf32>
    %848 = vector.broadcast %215 : f32 to vector<1x128xf32>
    %849 = arith.minimumf %707, %848 : vector<1x128xf32>
    %850 = vector.broadcast %213 : f32 to vector<1x128xf32>
    %851 = arith.maximumf %704, %850 : vector<1x128xf32>
    %852 = arith.subf %849, %851 : vector<1x128xf32>
    %cst_218 = arith.constant 0.000000e+00 : f32
    %853 = vector.broadcast %cst_218 : f32 to vector<1x128xf32>
    %854 = arith.maximumf %852, %853 : vector<1x128xf32>
    %855 = vector.broadcast %219 : f32 to vector<1x128xf32>
    %856 = arith.minimumf %713, %855 : vector<1x128xf32>
    %857 = vector.broadcast %217 : f32 to vector<1x128xf32>
    %858 = arith.maximumf %710, %857 : vector<1x128xf32>
    %859 = arith.subf %856, %858 : vector<1x128xf32>
    %cst_219 = arith.constant 0.000000e+00 : f32
    %860 = vector.broadcast %cst_219 : f32 to vector<1x128xf32>
    %861 = arith.maximumf %859, %860 : vector<1x128xf32>
    %862 = arith.mulf %854, %861 : vector<1x128xf32>
    %863 = vector.broadcast %220 : f32 to vector<1x128xf32>
    %864 = arith.addf %714, %863 : vector<1x128xf32>
    %865 = arith.subf %864, %862 : vector<1x128xf32>
    %cst_220 = arith.constant 0.699999988 : f32
    %866 = vector.broadcast %cst_220 : f32 to vector<1x128xf32>
    %867 = arith.mulf %866, %865 : vector<1x128xf32>
    %868 = arith.subf %862, %867 : vector<1x128xf32>
    %869 = arith.maximumf %847, %868 : vector<1x128xf32>
    %870 = vector.broadcast %232 : f32 to vector<1x128xf32>
    %871 = arith.minimumf %707, %870 : vector<1x128xf32>
    %872 = vector.broadcast %230 : f32 to vector<1x128xf32>
    %873 = arith.maximumf %704, %872 : vector<1x128xf32>
    %874 = arith.subf %871, %873 : vector<1x128xf32>
    %cst_221 = arith.constant 0.000000e+00 : f32
    %875 = vector.broadcast %cst_221 : f32 to vector<1x128xf32>
    %876 = arith.maximumf %874, %875 : vector<1x128xf32>
    %877 = vector.broadcast %236 : f32 to vector<1x128xf32>
    %878 = arith.minimumf %713, %877 : vector<1x128xf32>
    %879 = vector.broadcast %234 : f32 to vector<1x128xf32>
    %880 = arith.maximumf %710, %879 : vector<1x128xf32>
    %881 = arith.subf %878, %880 : vector<1x128xf32>
    %cst_222 = arith.constant 0.000000e+00 : f32
    %882 = vector.broadcast %cst_222 : f32 to vector<1x128xf32>
    %883 = arith.maximumf %881, %882 : vector<1x128xf32>
    %884 = arith.mulf %876, %883 : vector<1x128xf32>
    %885 = vector.broadcast %237 : f32 to vector<1x128xf32>
    %886 = arith.addf %714, %885 : vector<1x128xf32>
    %887 = arith.subf %886, %884 : vector<1x128xf32>
    %cst_223 = arith.constant 0.699999988 : f32
    %888 = vector.broadcast %cst_223 : f32 to vector<1x128xf32>
    %889 = arith.mulf %888, %887 : vector<1x128xf32>
    %890 = arith.subf %884, %889 : vector<1x128xf32>
    %891 = arith.maximumf %869, %890 : vector<1x128xf32>
    %cst_224 = arith.constant 0.000000e+00 : f32
    %892 = vector.broadcast %cst_224 : f32 to vector<1x128xf32>
    %893 = arith.cmpf ole, %891, %892 : vector<1x128xf32>
    %894 = arith.extui %893 : vector<1x128xi1> to vector<1x128xi32>
    %895 = arith.sitofp %894 : vector<1x128xi32> to vector<1x128xf32>
    %896 = vector.extract_strided_slice %101 {offsets = [2, 0, 0], sizes = [1, 1, 128], strides = [1, 1, 1]} : vector<3x1x128xf32> to vector<1x1x128xf32>
    %897 = vector.shape_cast %896 : vector<1x1x128xf32> to vector<1x128xf32>
    %cst_225 = arith.constant 1.000000e+00 : f32
    %898 = vector.broadcast %cst_225 : f32 to vector<1x128xf32>
    %899 = arith.subf %898, %897 : vector<1x128xf32>
    %900 = arith.mulf %899, %895 : vector<1x128xf32>
    %901 = vector.extract_strided_slice %91 {offsets = [2, 0, 0], sizes = [1, 1, 128], strides = [1, 1, 1]} : vector<3x1x128xf32> to vector<1x1x128xf32>
    %902 = vector.shape_cast %901 : vector<1x1x128xf32> to vector<1x128xf32>
    %903 = arith.mulf %900, %902 : vector<1x128xf32>
    %904 = arith.addf %683, %903 : vector<1x128xf32>
    %c2_226 = arith.constant 2 : index
    %c0_227 = arith.constant 0 : index
    %c0_228 = arith.constant 0 : index
    %905 = vector.load %arg6[%c2_226, %c0_227, %c0_228] : memref<3x1x128xf32, #tpu.memory_space<vmem>>, vector<1x1x128xf32>
    %906 = vector.shape_cast %905 : vector<1x1x128xf32> to vector<1x128xf32>
    %907 = arith.mulf %904, %906 : vector<1x128xf32>
    %c0_229 = arith.constant 0 : index
    %c0_230 = arith.constant 0 : index
    %908 = vector.load %arg10[%c0_229, %c0_230] : memref<1x128xf32, #tpu.memory_space<vmem>>, vector<1x128xf32>
    %909 = arith.addf %240, %907 : vector<1x128xf32>
    %910 = arith.addf %908, %909 : vector<1x128xf32>
    %c0_231 = arith.constant 0 : index
    %c0_232 = arith.constant 0 : index
    %911 = vector.load %arg10[%c0_231, %c0_232] : memref<1x128xf32, #tpu.memory_space<vmem>>, vector<1x128xf32>
    tpu.vector_store %arg10[%c0_231, %c0_232], %910 {strides = array<i32>} : memref<1x128xf32, #tpu.memory_space<vmem>>, vector<1x128xf32>,
    %912 = arith.index_cast %arg0 : i32 to index
    %913 = arith.index_cast %arg1 : i32 to index
    %914 = memref.load %arg3[%912, %913] : memref<2x1xi32, #tpu.memory_space<smem>>
    %c0_i32_233 = arith.constant 0 : i32
    %915 = arith.cmpi sgt, %914, %c0_i32_233 : i32
    %916 = arith.extui %915 : i1 to i32
    %c0_i32_234 = arith.constant 0 : i32
    %917 = arith.cmpi ne, %916, %c0_i32_234 : i32
    scf.if %917 {
      %cst_237 = arith.constant 0.000000e+00 : f32
      %921 = vector.broadcast %cst_237 : f32 to vector<3x1x128xf32>
      %c0_238 = arith.constant 0 : index
      %c0_239 = arith.constant 0 : index
      %c5_240 = arith.constant 5 : index
      %c0_241 = arith.constant 0 : index
      %c0_242 = arith.constant 0 : index
      %922 = vector.load %arg4[%c0_238, %c0_239, %c5_240, %c0_241, %c0_242] : memref<1x3x9x1x128xf32, #tpu.memory_space<vmem>>, vector<1x3x1x1x128xf32>
      %923 = vector.shape_cast %922 : vector<1x3x1x1x128xf32> to vector<3x1x128xf32>
      %c0_243 = arith.constant 0 : index
      %c0_244 = arith.constant 0 : index
      %c6_245 = arith.constant 6 : index
      %c0_246 = arith.constant 0 : index
      %c0_247 = arith.constant 0 : index
      %924 = vector.load %arg5[%c0_243, %c0_244, %c6_245, %c0_246, %c0_247] : memref<1x3x10x1x128xf32, #tpu.memory_space<vmem>>, vector<1x3x1x1x128xf32>
      %925 = vector.shape_cast %924 : vector<1x3x1x1x128xf32> to vector<3x1x128xf32>
      %cst_248 = arith.constant 0.000000e+00 : f32
      %926 = vector.broadcast %cst_248 : f32 to vector<3x1x128xf32>
      %927 = arith.maximumf %923, %926 : vector<3x1x128xf32>
      %928 = math.absf %923 : vector<3x1x128xf32>
      %cst_249 = arith.constant 0.000000e+00 : f32
      %929 = vector.broadcast %cst_249 : f32 to vector<3x1x128xf32>
      %930 = arith.subf %929, %928 : vector<3x1x128xf32>
      %931 = math.exp %930 : vector<3x1x128xf32>
      %cst_250 = arith.constant 1.000000e+00 : f32
      %932 = vector.broadcast %cst_250 : f32 to vector<3x1x128xf32>
      %933 = arith.addf %932, %931 : vector<3x1x128xf32>
      %934 = math.log %933 : vector<3x1x128xf32>
      %935 = arith.addf %927, %934 : vector<3x1x128xf32>
      %936 = arith.mulf %923, %925 : vector<3x1x128xf32>
      %937 = arith.subf %935, %936 : vector<3x1x128xf32>
      %938 = arith.addf %921, %937 : vector<3x1x128xf32>
      %c0_251 = arith.constant 0 : index
      %c0_252 = arith.constant 0 : index
      %c6_253 = arith.constant 6 : index
      %c0_254 = arith.constant 0 : index
      %c0_255 = arith.constant 0 : index
      %939 = vector.load %arg4[%c0_251, %c0_252, %c6_253, %c0_254, %c0_255] : memref<1x3x9x1x128xf32, #tpu.memory_space<vmem>>, vector<1x3x1x1x128xf32>
      %940 = vector.shape_cast %939 : vector<1x3x1x1x128xf32> to vector<3x1x128xf32>
      %c0_256 = arith.constant 0 : index
      %c0_257 = arith.constant 0 : index
      %c7_258 = arith.constant 7 : index
      %c0_259 = arith.constant 0 : index
      %c0_260 = arith.constant 0 : index
      %941 = vector.load %arg5[%c0_256, %c0_257, %c7_258, %c0_259, %c0_260] : memref<1x3x10x1x128xf32, #tpu.memory_space<vmem>>, vector<1x3x1x1x128xf32>
      %942 = vector.shape_cast %941 : vector<1x3x1x1x128xf32> to vector<3x1x128xf32>
      %cst_261 = arith.constant 0.000000e+00 : f32
      %943 = vector.broadcast %cst_261 : f32 to vector<3x1x128xf32>
      %944 = arith.maximumf %940, %943 : vector<3x1x128xf32>
      %945 = math.absf %940 : vector<3x1x128xf32>
      %cst_262 = arith.constant 0.000000e+00 : f32
      %946 = vector.broadcast %cst_262 : f32 to vector<3x1x128xf32>
      %947 = arith.subf %946, %945 : vector<3x1x128xf32>
      %948 = math.exp %947 : vector<3x1x128xf32>
      %cst_263 = arith.constant 1.000000e+00 : f32
      %949 = vector.broadcast %cst_263 : f32 to vector<3x1x128xf32>
      %950 = arith.addf %949, %948 : vector<3x1x128xf32>
      %951 = math.log %950 : vector<3x1x128xf32>
      %952 = arith.addf %944, %951 : vector<3x1x128xf32>
      %953 = arith.mulf %940, %942 : vector<3x1x128xf32>
      %954 = arith.subf %952, %953 : vector<3x1x128xf32>
      %955 = arith.addf %938, %954 : vector<3x1x128xf32>
      %c0_264 = arith.constant 0 : index
      %c0_265 = arith.constant 0 : index
      %c7_266 = arith.constant 7 : index
      %c0_267 = arith.constant 0 : index
      %c0_268 = arith.constant 0 : index
      %956 = vector.load %arg4[%c0_264, %c0_265, %c7_266, %c0_267, %c0_268] : memref<1x3x9x1x128xf32, #tpu.memory_space<vmem>>, vector<1x3x1x1x128xf32>
      %957 = vector.shape_cast %956 : vector<1x3x1x1x128xf32> to vector<3x1x128xf32>
      %c0_269 = arith.constant 0 : index
      %c0_270 = arith.constant 0 : index
      %c8_271 = arith.constant 8 : index
      %c0_272 = arith.constant 0 : index
      %c0_273 = arith.constant 0 : index
      %958 = vector.load %arg5[%c0_269, %c0_270, %c8_271, %c0_272, %c0_273] : memref<1x3x10x1x128xf32, #tpu.memory_space<vmem>>, vector<1x3x1x1x128xf32>
      %959 = vector.shape_cast %958 : vector<1x3x1x1x128xf32> to vector<3x1x128xf32>
      %cst_274 = arith.constant 0.000000e+00 : f32
      %960 = vector.broadcast %cst_274 : f32 to vector<3x1x128xf32>
      %961 = arith.maximumf %957, %960 : vector<3x1x128xf32>
      %962 = math.absf %957 : vector<3x1x128xf32>
      %cst_275 = arith.constant 0.000000e+00 : f32
      %963 = vector.broadcast %cst_275 : f32 to vector<3x1x128xf32>
      %964 = arith.subf %963, %962 : vector<3x1x128xf32>
      %965 = math.exp %964 : vector<3x1x128xf32>
      %cst_276 = arith.constant 1.000000e+00 : f32
      %966 = vector.broadcast %cst_276 : f32 to vector<3x1x128xf32>
      %967 = arith.addf %966, %965 : vector<3x1x128xf32>
      %968 = math.log %967 : vector<3x1x128xf32>
      %969 = arith.addf %961, %968 : vector<3x1x128xf32>
      %970 = arith.mulf %957, %959 : vector<3x1x128xf32>
      %971 = arith.subf %969, %970 : vector<3x1x128xf32>
      %972 = arith.addf %955, %971 : vector<3x1x128xf32>
      %c0_277 = arith.constant 0 : index
      %c0_278 = arith.constant 0 : index
      %c8_279 = arith.constant 8 : index
      %c0_280 = arith.constant 0 : index
      %c0_281 = arith.constant 0 : index
      %973 = vector.load %arg4[%c0_277, %c0_278, %c8_279, %c0_280, %c0_281] : memref<1x3x9x1x128xf32, #tpu.memory_space<vmem>>, vector<1x3x1x1x128xf32>
      %974 = vector.shape_cast %973 : vector<1x3x1x1x128xf32> to vector<3x1x128xf32>
      %c0_282 = arith.constant 0 : index
      %c0_283 = arith.constant 0 : index
      %c9_284 = arith.constant 9 : index
      %c0_285 = arith.constant 0 : index
      %c0_286 = arith.constant 0 : index
      %975 = vector.load %arg5[%c0_282, %c0_283, %c9_284, %c0_285, %c0_286] : memref<1x3x10x1x128xf32, #tpu.memory_space<vmem>>, vector<1x3x1x1x128xf32>
      %976 = vector.shape_cast %975 : vector<1x3x1x1x128xf32> to vector<3x1x128xf32>
      %cst_287 = arith.constant 0.000000e+00 : f32
      %977 = vector.broadcast %cst_287 : f32 to vector<3x1x128xf32>
      %978 = arith.maximumf %974, %977 : vector<3x1x128xf32>
      %979 = math.absf %974 : vector<3x1x128xf32>
      %cst_288 = arith.constant 0.000000e+00 : f32
      %980 = vector.broadcast %cst_288 : f32 to vector<3x1x128xf32>
      %981 = arith.subf %980, %979 : vector<3x1x128xf32>
      %982 = math.exp %981 : vector<3x1x128xf32>
      %cst_289 = arith.constant 1.000000e+00 : f32
      %983 = vector.broadcast %cst_289 : f32 to vector<3x1x128xf32>
      %984 = arith.addf %983, %982 : vector<3x1x128xf32>
      %985 = math.log %984 : vector<3x1x128xf32>
      %986 = arith.addf %978, %985 : vector<3x1x128xf32>
      %987 = arith.mulf %974, %976 : vector<3x1x128xf32>
      %988 = arith.subf %986, %987 : vector<3x1x128xf32>
      %989 = arith.addf %972, %988 : vector<3x1x128xf32>
      %c0_290 = arith.constant 0 : index
      %c0_291 = arith.constant 0 : index
      %990 = vector.load %arg11[%c0_290, %c0_291] : memref<1x128xf32, #tpu.memory_space<vmem>>, vector<1x128xf32>
      %991 = arith.mulf %989, %24 : vector<3x1x128xf32>
      %cst_292 = arith.constant dense<0.000000e+00> : vector<1x128xf32>
      %992 = vector.multi_reduction <add>, %991, %cst_292 [0] : vector<3x1x128xf32> to vector<1x128xf32>
      %993 = arith.addf %990, %992 : vector<1x128xf32>
      %c0_293 = arith.constant 0 : index
      %c0_294 = arith.constant 0 : index
      %994 = vector.load %arg11[%c0_293, %c0_294] : memref<1x128xf32, #tpu.memory_space<vmem>>, vector<1x128xf32>
      tpu.vector_store %arg11[%c0_293, %c0_294], %993 {strides = array<i32>} : memref<1x128xf32, #tpu.memory_space<vmem>>, vector<1x128xf32>,
    } else {
    }
    %c0_i32_235 = arith.constant 0 : i32
    %918 = arith.cmpi eq, %arg1, %c0_i32_235 : i32
    %919 = arith.extui %918 : i1 to i32
    %c0_i32_236 = arith.constant 0 : i32
    %920 = arith.cmpi ne, %919, %c0_i32_236 : i32
    scf.if %920 {
      %c0_237 = arith.constant 0 : index
      %c0_238 = arith.constant 0 : index
      %921 = vector.load %arg8[%c0_237, %c0_238] : memref<1x128xf32, #tpu.memory_space<vmem>>, vector<1x128xf32>
      %922 = vector.shape_cast %921 : vector<1x128xf32> to vector<1x1x128xf32>
      %cst_239 = arith.constant dense<0.000000e+00> : vector<1xf32>
      %923 = vector.multi_reduction <add>, %922, %cst_239 [1, 2] : vector<1x1x128xf32> to vector<1xf32>
      %924 = vector.shape_cast %923 : vector<1xf32> to vector<1x1x1xf32>
      %925 = vector.extract %924[0, 0, 0] : f32 from vector<1x1x1xf32>
      %926 = vector.broadcast %925 : f32 to vector<1x1xf32>
      %c0_240 = arith.constant 0 : index
      %c0_241 = arith.constant 0 : index
      %927 = vector.load %arg9[%c0_240, %c0_241] : memref<1x128xf32, #tpu.memory_space<vmem>>, vector<1x128xf32>
      %928 = vector.shape_cast %927 : vector<1x128xf32> to vector<1x1x128xf32>
      %cst_242 = arith.constant dense<0.000000e+00> : vector<1xf32>
      %929 = vector.multi_reduction <add>, %928, %cst_242 [1, 2] : vector<1x1x128xf32> to vector<1xf32>
      %930 = vector.shape_cast %929 : vector<1xf32> to vector<1x1x1xf32>
      %931 = vector.extract %930[0, 0, 0] : f32 from vector<1x1x1xf32>
      %932 = vector.broadcast %931 : f32 to vector<1x1xf32>
      %c0_243 = arith.constant 0 : index
      %c0_244 = arith.constant 0 : index
      %933 = vector.load %arg10[%c0_243, %c0_244] : memref<1x128xf32, #tpu.memory_space<vmem>>, vector<1x128xf32>
      %934 = vector.shape_cast %933 : vector<1x128xf32> to vector<1x1x128xf32>
      %cst_245 = arith.constant dense<0.000000e+00> : vector<1xf32>
      %935 = vector.multi_reduction <add>, %934, %cst_245 [1, 2] : vector<1x1x128xf32> to vector<1xf32>
      %936 = vector.shape_cast %935 : vector<1xf32> to vector<1x1x1xf32>
      %937 = vector.extract %936[0, 0, 0] : f32 from vector<1x1x1xf32>
      %938 = vector.broadcast %937 : f32 to vector<1x1xf32>
      %c0_246 = arith.constant 0 : index
      %c0_247 = arith.constant 0 : index
      %939 = vector.load %arg11[%c0_246, %c0_247] : memref<1x128xf32, #tpu.memory_space<vmem>>, vector<1x128xf32>
      %940 = vector.shape_cast %939 : vector<1x128xf32> to vector<1x1x128xf32>
      %cst_248 = arith.constant dense<0.000000e+00> : vector<1xf32>
      %941 = vector.multi_reduction <add>, %940, %cst_248 [1, 2] : vector<1x1x128xf32> to vector<1xf32>
      %942 = vector.shape_cast %941 : vector<1xf32> to vector<1x1x1xf32>
      %943 = vector.extract %942[0, 0, 0] : f32 from vector<1x1x1xf32>
      %944 = vector.broadcast %943 : f32 to vector<1x1xf32>
      %945 = tpu.concatenate %926, %932, %938, %944 in 1 : vector<1x1xf32>, vector<1x1xf32>, vector<1x1xf32>, vector<1x1xf32> -> vector<1x4xf32>
      %c0_249 = arith.constant 0 : index
      %c0_250 = arith.constant 0 : index
      %c0_251 = arith.constant 0 : index
      %946 = vector.load %arg7[%c0_249, %c0_250, %c0_251] : memref<1x1x4xf32, #tpu.memory_space<vmem>>, vector<1x1x4xf32>
      %947 = vector.shape_cast %946 : vector<1x1x4xf32> to vector<1x4xf32>
      %948 = vector.shape_cast %945 : vector<1x4xf32> to vector<1x1x4xf32>
      tpu.vector_store %arg7[%c0_249, %c0_250, %c0_251], %948 {strides = array<i32>} : memref<1x1x4xf32, #tpu.memory_space<vmem>>, vector<1x1x4xf32>,
    } else {
    }
    return
  }
  func.func @transform_0(%arg0: i32, %arg1: i32, %arg2: memref<2x32xf32, #tpu.memory_space<smem>>, %arg3: memref<2x1xi32, #tpu.memory_space<smem>>) -> (i32, i32, i32, i32, i32) {
    %c0_i32 = arith.constant 0 : i32
    %c0_i32_0 = arith.constant 0 : i32
    %c0_i32_1 = arith.constant 0 : i32
    %c0_i32_2 = arith.constant 0 : i32
    return %arg0, %c0_i32, %c0_i32_0, %arg1, %c0_i32_1 : i32, i32, i32, i32, i32
  }
  func.func @transform_1(%arg0: i32, %arg1: i32, %arg2: memref<2x32xf32, #tpu.memory_space<smem>>, %arg3: memref<2x1xi32, #tpu.memory_space<smem>>) -> (i32, i32, i32, i32, i32) {
    %c0_i32 = arith.constant 0 : i32
    %c0_i32_0 = arith.constant 0 : i32
    %c0_i32_1 = arith.constant 0 : i32
    %c0_i32_2 = arith.constant 0 : i32
    return %arg0, %c0_i32, %c0_i32_0, %arg1, %c0_i32_1 : i32, i32, i32, i32, i32
  }
  func.func @transform_2(%arg0: i32, %arg1: i32, %arg2: memref<2x32xf32, #tpu.memory_space<smem>>, %arg3: memref<2x1xi32, #tpu.memory_space<smem>>) -> (i32, i32, i32) {
    %c0_i32 = arith.constant 0 : i32
    %c0_i32_0 = arith.constant 0 : i32
    %c0_i32_1 = arith.constant 0 : i32
    return %c0_i32, %arg1, %c0_i32_0 : i32, i32, i32
  }
  func.func @transform_3(%arg0: i32, %arg1: i32, %arg2: memref<2x32xf32, #tpu.memory_space<smem>>, %arg3: memref<2x1xi32, #tpu.memory_space<smem>>) -> (i32, i32, i32) {
    %c0_i32 = arith.constant 0 : i32
    %c0_i32_0 = arith.constant 0 : i32
    %c0_i32_1 = arith.constant 0 : i32
    return %arg0, %c0_i32, %c0_i32_0 : i32, i32, i32
  }
}

</mosaic_0001>

<bundles_post_ra>
// kernel: tpu_custom_call.1
= control target key start
LH: loop header
LB: loop body
LE: loop exit
PB: predicated region body
PF: predicated region fallthrough
CT: control target
= control target key end

     0   :  { %s1996_s24 = smov [#allocation7]   ;;  %s1997_s25 = smov [#allocation8]   ;;  %s3458_s0 = inlined_call_operand.vmem [shape: f32[2,32], index: 0, kind: input, shape index: {}]   ;;  %s3459_s2 = inlined_call_operand.hbm [shape: f32[2,3,9,1,128], index: 2, kind: input, shape index: {}]   ;;  %s3460_s3 = inlined_call_operand.hbm [shape: f32[2,3,10,1,128], index: 3, kind: input, shape index: {}]   ;;  %s3461_s4 = inlined_call_operand.vmem [shape: f32[3,1,128], index: 4, kind: input, shape index: {}]   ;;  %s3462_s5 = inlined_call_operand.hbm [shape: f32[2,1,4], index: 5, kind: output, shape index: {}]   ;;  %s3463_s1 = inlined_call_operand.vmem [shape: s32[2,1], index: 1, kind: input, shape index: {}]  }
   0x1   :  { %3522 = sst [smem:[#allocation57_spill]] %s3459_s2  ;;  %s11_s20 = sshll.u32 %s3458_s0, 4  ;;  %s12_s20 = int_to_ptr.vmem [resolvable:$true] %s11_s20 }
   0x2   :  { %3523 = sst [smem:[#allocation58_spill]] %s3460_s3  ;;  %s16_s23 = sshll.u32 %s3463_s1, 4  ;;  %s17_s23 = int_to_ptr.vmem [resolvable:$true] %s16_s23 }
   0x3   :  { %3524 = sst [smem:[#allocation59_spill]] %s3461_s4 }
   0x4   :  { %3525 = sst [smem:[#allocation60_spill]] %s3462_s5 }
   0x5   :  { %14 = dma.vmem_to_smem %s12_s20, 32, %s1996_s24, [#allocation6] }
   0x6   :  { %19 = dma.vmem_to_smem %s17_s23, 32, %s1997_s25, [#allocation6] }
   0x7   :  { %1958 = dma.done.wait [#allocation6], 64 }
   0x8   :  { %1959 = vsyncadd [#allocation6], 4294967232 }
   0x9   :  { %22 = sfence }
   0xa   :  { %23 = vsyncpa [#allocation10], 0 }
   0xb   :  { %25 = vsyncpa [#allocation10 + $0x1], 0 }
   0xc   :  { %26 = vsyncpa [#allocation13], 0 }
   0xd   :  { %28 = vsyncpa [#allocation13 + $0x1], 0 }
   0xe   :  { %29 = vsyncpa [#allocation11], 0 }
   0xf   :  { %31 = vsyncpa [#allocation11 + $0x1], 0  ;;  %s2037_s0 = smov 0   ;;  %s2039_s26 = smov 0  }
  0x10   :  { %s2041_s1 = smov 0   ;;  %s2043_s27 = smov 0  }
  0x11   :  { %s2045_s28 = smov 0   ;;  %s2047_s29 = smov 0  }
  0x12 LB: > { %3526 = sst [smem:[#allocation19_spill]] %s1974_s0  ;;  %s1552_s30 = sadd.s32 4294967295, %s1994_s29   ;;  %s1994_s29 = sphi %s2047_s29, %s37_s29   ;;  %s1990_s28 = sphi %s2045_s28, %s3659_s28   ;;  %s1986_s27 = sphi %s2043_s27, %s3658_s27   ;;  %s1982_s1 = sphi %s2041_s1, %s3657_s1   ;;  %s1978_s26 = sphi %s2039_s26, %s3656_s26   ;;  %s1974_s0 = sphi %s2037_s0, %s3655_s0  }
  0x13   : > { %3527 = sst [smem:[#allocation20_spill]] %s1978_s26  ;;  %s1553_s6 = sadd.s32 4294967294, %s1994_s29  }
  0x14   : > { %3528 = sst [smem:[#allocation21_spill]] %s1982_s1  ;;  %s49_s7 = sadd.s32 1, %s1990_s28 }
  0x15   : > { %3529 = sst [smem:[#allocation22_spill]] %s1986_s27  ;;  %s58_s8 = sadd.s32 1, %s1982_s1 }
  0x16   : > { %3530 = sst [smem:[#allocation23_spill]] %s1990_s28  ;;  %p51_p0 = scmp.ge.s32.totalorder %s49_s7, 2 }
  0x17   : > { %3531 = sst [smem:[#allocation24_spill]] %s1994_s29  ;;  %p65_p1 = scmp.ne.s32.totalorder %s1982_s1, %s1978_s26 }
  0x18   : > { %p66_p2 = scmp.eq.s32.totalorder %s1994_s29, 0  ;;  %p71_p3 = scmp.ne.s32.totalorder %s1978_s26, %s1974_s0 }
  0x19   : > { %s3661_s7 = smov (%p51_p0, %s49_s7), 0  ;;  %p72_p5 = scmp.eq.s32.totalorder %s1552_s30, 0 }
  0x1a   : > { %3532 = sst [smem:[#allocation25_spill]] %s3661_s7  ;;  %p2078_p4 = por %p66_p2, %p65_p1 }
  0x1b   : > { %s53_s10 = ssub.s32 %s1990_s28, %s3661_s7  ;;  %p149_p6 = scmp.eq.s32.totalorder %s1552_s30, 1 }
  0x1c   : > { %p56_p7 = scmp.eq.s32.totalorder %s53_s10, 0  ;;  %p2084_p8 = por %p72_p5, %p71_p3 }
  0x1d   : > { %p2088_p9 = por %p149_p6, %p65_p1  ;;  %p155_p10 = scmp.eq.s32.totalorder %s1553_s6, 1 }
  0x1e   : > { %s2093_s13 = scalar_select %p56_p7, %s1982_s1, %s58_s8  }
  0x1f   : > { %s3535_s12 = scalar_select %p2088_p9, 1, 0 }
  0x20   : > { %3537 = sst [smem:[#allocation27_spill]] %s2093_s13  ;;  %p2095_p11 = por %p155_p10, %p71_p3 }
  0x21   : > { %3536 = sst [smem:[#allocation26_spill]] %s3535_s12  ;;  %p1556_p12 = scmp.ge.s32.totalorder %s1994_s29, 2 }
  0x22   : > { %s3538_s14 = scalar_select %p2095_p11, 1, 0 }
  0x23   : > { %p1653_p13 = scmp.lt.s32.totalorder %s1994_s29, 2  ;;  %s2102_s15 = sand.u32 1, %s1982_s1  }
  0x24   : > { %3539 = sst [smem:[#allocation28_spill]] %s3538_s14  ;;  %s1622_s16 = smul.u32 27, %s2102_s15 }
  0x25   : > { %s1623_s17 = smul.u32 27, %s1990_s28  ;;  %p2108_p0 = pnand %p1653_p13, %p2078_p4 }
  0x26   : > { %s3541_s2 = sld [smem:[#allocation57_spill]]  ;;  %s185_s22 = scalar_lea.vmem [#allocation9], %s1622_s16 }
  0x27   : > { %s193_s23 = sshll.u32 %s185_s22, 4  ;;  %p1557_p1 = scmp.ge.s32.totalorder %s1994_s29, 1  ;;  %s194_s23 = int_to_ptr.vmem [resolvable:$true] %s193_s23 }
  0x28   : > { %s182_s25 = scalar_lea.sflag [#allocation10], %s2102_s15  ;;  %s1998_s30 = smov 16  }
  0x29   : > { %s1999_s6 = smov 1   ;;  %p223_p2 = scmp.lt.s32.totalorder %s1994_s29, 3 }
  0x2a   : > { %s1624_s8 = smul.u32 30, %s2102_s15  ;;  %s3542_s3 = sld [smem:[#allocation58_spill]] }
  0x2b   : > { %p224_p3 = pnand %p1557_p1, %p223_p2  ;;  %s1625_s9 = smul.u32 30, %s1990_s28 }
  0x2c   : > { %s190_s21 = scalar_lea.hbm %s3541_s2, %s1623_s17  ;;  %s207_s17 = scalar_lea.vmem [#allocation12], %s1624_s8 }
  0x2d   : > { %s191_s24 = sshll.u32 %s190_s21, 4  ;;  %s215_s20 = sshll.u32 %s207_s17, 4  ;;  %s192_s24 = int_to_ptr.hbm [resolvable:$true] %s191_s24  ;;  %s216_s20 = int_to_ptr.vmem [resolvable:$true] %s215_s20 }
  0x2e   : > { %1645 = dma.hbm_to_vmem [thread:$0]  (!%p2108_p0), %s192_s24, 432, %s194_s23, %s182_s25, %s1998_s30, %s1998_s30, %s1999_s6  }
  0x2f   : > { %s204_s22 = scalar_lea.sflag [#allocation13], %s2102_s15  ;;  %227 = sbr.rel (%p224_p3) target bundleno = 523 (0x20b), region = 32 }
  0x30   : > { %s212_s16 = scalar_lea.hbm %s3542_s3, %s1625_s9 }
  0x31   : > { %s213_s21 = sshll.u32 %s212_s16, 4  ;;  %s214_s21 = int_to_ptr.hbm [resolvable:$true] %s213_s21 }
  0x32   : > { %1648 = dma.hbm_to_vmem [thread:$0]  (!%p2108_p0), %s214_s21, 480, %s216_s20, %s204_s22, %s1998_s30, %s1998_s30, %s1999_s6  }
  0x34   : > { %s2129_s23 = sand.u32 1, %s1978_s26  }
  0x35   : > { %3543 = sst [smem:[#allocation29_spill]] %s2129_s23  ;;  %s1626_s24 = smul.u32 27, %s2129_s23 }
  0x36   : > { %s230_s25 = scalar_lea.sflag [#allocation10], %s2129_s23 }
  0x37   : > { %s2133_s2 = scalar_lea.vmem [#allocation9], %s1626_s24 }
  0x38   : > { %3544 = sst [smem:[#allocation30_spill]] %s2133_s2 }
  0x39   : > { %1961 = dma.done.wait (%p2084_p8), %s230_s25, 432  }
  0x3a   : > { %1963 = vsyncadd (%p2084_p8), %s230_s25, 4294966864  ;;  %s1627_s15 = smul.u32 30, %s2129_s23  ;;  %s240_s18 = scalar_lea.sflag [#allocation13], %s2129_s23 }
  0x3c   : > { %s2141_s30 = scalar_lea.vmem [#allocation12], %s1627_s15 }
  0x3d   : > { %3545 = sst [smem:[#allocation31_spill]] %s2141_s30 }
  0x3e   : > { %1965 = dma.done.wait (%p2084_p8), %s240_s18, 480  }
  0x3f   : > { %1967 = vsyncadd (%p2084_p8), %s240_s18, 4294966816  ;;  %v3464_v0 = vmov 0.0   ;;  %v2152_v1 = vld [vmem:[%s2133_s2] sm:$0x1]  ;;  %v2155_v2 = vld [vmem:[%s2133_s2 + $0x9] sm:$0x1] }
  0x40   : > { %281 = vst [vmem:[#allocation2] sm:$0x1] %v3464_v0  ;;  %v2158_v3 = vld [vmem:[%s2133_s2 + $0x12] sm:$0x1]  ;;  %v2161_v4 = vld [vmem:[%s2133_s2 + $0x1] sm:$0x1] }
  0x41   : > { %282 = vst [vmem:[#allocation3] sm:$0x1] %v3464_v0  ;;  %v2164_v5 = vld [vmem:[%s2133_s2 + $0xa] sm:$0x1]  ;;  %v2167_v6 = vld [vmem:[%s2133_s2 + $0x13] sm:$0x1] }
  0x42   : > { %283 = vst [vmem:[#allocation4] sm:$0x1] %v3464_v0  ;;  %v330_v7 = vand.u32 2147483647, %v2152_v1  ;;  %v331_v8 = vand.u32 2147483647, %v2155_v2 }
  0x43   : > { %284 = vst [vmem:[#allocation5] sm:$0x1] %v3464_v0  ;;  %v332_v9 = vand.u32 2147483647, %v2158_v3  ;;  %v342_v10 = vand.u32 2147483647, %v2161_v4 }
  0x44   : > { %v333_v11 = vsub.f32 0.0, %v330_v7  ;;  %v343_v12 = vand.u32 2147483647, %v2164_v5  ;;  %v344_v13 = vand.u32 2147483647, %v2167_v6  ;;  %v334_v14 = vsub.f32 0.0, %v331_v8 }
  0x45   : > { %v335_v15 = vsub.f32 0.0, %v332_v9  ;;  %v345_v16 = vsub.f32 0.0, %v342_v10  ;;  %v1579_v25 = vld [vmem:[%s2141_s30 + $0x4] sm:$0x1]  ;;  %v2177_v26 = vld [vmem:[%s2133_s2 + $0x2] sm:$0x1] }
  0x46   : > { %v336_v17 = vmul.f32 1.442695, %v333_v11  ;;  %v346_v18 = vsub.f32 0.0, %v343_v12  ;;  %v347_v19 = vsub.f32 0.0, %v344_v13  ;;  %v338_v20 = vmul.f32 1.442695, %v334_v14 }
  0x47   : > { %v340_v21 = vmul.f32 1.442695, %v335_v15  ;;  %v348_v22 = vmul.f32 1.442695, %v345_v16  ;;  %v1580_v27 = vld [vmem:[%s2141_s30 + $0xe] sm:$0x1] }
  0x48   : > { %1708 = vpow2.f32 %v336_v17  ;;  %v350_v23 = vmul.f32 1.442695, %v346_v18  ;;  %v352_v24 = vmul.f32 1.442695, %v347_v19  ;;  %v1581_v28 = vld [vmem:[%s2141_s30 + $0x18] sm:$0x1] }
  0x49   : > { %1710 = vpow2.f32 %v338_v20  ;;  %v2184_v30 = vld [vmem:[%s2133_s2 + $0x3] sm:$0x1]  ;;  %v2187_v31 = vld [vmem:[%s2141_s30 + $0x5] sm:$0x1]  ;;  %v2192_v33 = vld [vmem:[%s2141_s30 + $0xf] sm:$0x1] }
  0x4a   : > { %1712 = vpow2.f32 %v340_v21  ;;  %3546 = vst [vmem:[#allocation32_spill] sm:$0xff] %v2187_v31  ;;  %v2195_v34 = vld [vmem:[%s2141_s30 + $0x19] sm:$0x1]  ;;  %v2198_v35 = vmul.f32 %v2187_v31, %v1579_v25  ;;  %v2206_v38 = vmul.f32 %v2192_v33, %v1580_v27  ;;  %v2215_v41 = vmul.f32 1.442695, %v2177_v26  ;;  %s2278_s11 = sshll.u32 %s1986_s27, 7 }
  0x4b   : > { %1714 = vpow2.f32 %v348_v22  ;;  %3547 = vst [vmem:[#allocation33_spill] sm:$0xff] %v2192_v33  ;;  %v2209_v39 = vmul.f32 %v2195_v34, %v1581_v28  ;;  %v468_v44 = vmax.f32 %v2152_v1, 0.0  ;;  %v2225_v45 = vmul.f32 1.442695, %v2184_v30  ;;  %v304_v54 = vld [vmem:[%s2141_s30] sm:$0x1] }
  0x4c   : > { %1716 = vpow2.f32 %v350_v23  ;;  %3548 = vst [vmem:[#allocation34_spill] sm:$0xff] %v2195_v34  ;;  %v469_v49 = vmax.f32 %v2155_v2, 0.0  ;;  %v470_v53 = vmax.f32 %v2158_v3, 0.0  ;;  %v480_v57 = vmax.f32 %v2161_v4, 0.0  ;;  %s600_s6 = sadd.s32 2, %s2278_s11  ;;  %s602_s9 = sadd.s32 3, %s2278_s11 }
  0x4d   : > { %1718 = vpow2.f32 %v352_v24  ;;  %v2275_v11 = vmul.f32 %v304_v54, %v2152_v1  ;;  %vm450_vm10 = vcmp.ge.f32.partialorder %v2152_v1, 0.0  ;;  %s2335_s8 = sld [smem:[#allocation7 + %s600_s6]]  ;;  %vm459_vm15 = vcmp.ge.f32.partialorder %v2161_v4, 0.0  ;;  %s615_s19 = sadd.s32 6, %s2278_s11 }
  0x4e   : > { %v2181_v29 = vpop.eup %1708  ;;  %s2375_s10 = sld [smem:[#allocation7 + %s602_s9]]  ;;  %s598_s17 = sadd.s32 1, %s2278_s11  ;;  %v481_v54 = vmax.f32 %v2164_v5, 0.0 }
  0x4f   : > { %v2189_v32 = vpop.eup %1710  ;;  %v2201_v36 = vadd.f32 1.0, %v2181_v29  ;;  %s2388_s16 = sld [smem:[#allocation7 + %s2278_s11]]  ;;  %s611_s20 = sadd.s32 4, %s2278_s11 }
  0x50   : > { %v2203_v37 = vpop.eup %1712  ;;  %v2212_v40 = vadd.f32 1.0, %v2189_v32  ;;  %s2416_s21 = sld [smem:[#allocation7 + %s615_s19]]  ;;  %s613_s24 = sadd.s32 5, %s2278_s11 }
  0x51   : > { %v2217_v42 = vpop.eup %1714  ;;  %v2220_v43 = vadd.f32 1.0, %v2203_v37  ;;  %1720 = vrcp.f32 %v2201_v36  ;;  %v366_v47 = vand.u32 2147483647, %v2201_v36  ;;  %v368_v48 = vand.u32 2147483648, %v2201_v36  ;;  %s2429_s22 = sld [smem:[#allocation7 + %s598_s17]]  ;;  %s617_s15 = sadd.s32 7, %s2278_s11 }
  0x52   : > { %v2227_v46 = vpop.eup %1716  ;;  %1722 = vrcp.f32 %v2212_v40  ;;  %v381_v51 = vand.u32 2147483647, %v2212_v40  ;;  %v383_v52 = vand.u32 2147483648, %v2212_v40  ;;  %vm362_vm0 = vweird.f32 %v2201_v36  ;;  %s2452_s18 = sld [smem:[#allocation7 + %s611_s20]]  ;;  %s626_s3 = sadd.s32 8, %s2278_s11 }
  0x53   : > { %v2233_v50 = vpop.eup %1718  ;;  %1724 = vrcp.f32 %v2220_v43  ;;  %v396_v55 = vand.u32 2147483647, %v2220_v43  ;;  %v398_v56 = vand.u32 2147483648, %v2220_v43  ;;  %vm377_vm1 = vweird.f32 %v2212_v40  ;;  %s604_s25 = smul.f32 0.5, %s2335_s8  ;;  %s2474_s6 = sld [smem:[#allocation7 + %s613_s24]] }
  0x54   : > { %vm392_vm2 = vweird.f32 %v2220_v43  ;;  %v2247_v58 = vadd.f32 1.0, %v2217_v42  ;;  %v2250_v59 = vadd.f32 1.0, %v2227_v46  ;;  %vm2252_vm3 = vcmp.eq.f32.partialorder %v366_v47, 8.507059e+37  ;;  %s607_s9 = smul.f32 0.5, %s2375_s10  ;;  %s2483_s19 = sld [smem:[#allocation7 + %s617_s15]] }
  0x55   : > { %v2256_v61 = vor.u32 1.1754944e-38, %v368_v48  ;;  %v2258_v62 = vor.u32 1.1754944e-38, %v383_v52  ;;  %v2261_v63 = vadd.f32 1.0, %v2233_v50  ;;  %1726 = vlog2.f32 %v2201_v36  ;;  %s2494_s17 = ssub.f32 %s2388_s16, %s604_s25  ;;  %s630_s24 = sadd.s32 10, %s2278_s11 }
  0x56   : > { %vm2266_vm4 = vcmp.eq.f32.partialorder %v381_v51, 8.507059e+37  ;;  %v2270_v9 = vor.u32 1.1754944e-38, %v398_v56  ;;  %1728 = vrcp.f32 %v2247_v58  ;;  %v416_v10 = vand.u32 2147483648, %v2247_v58  ;;  %s2516_s20 = sadd.f32 %s604_s25, %s2388_s16  ;;  %s632_s16 = sadd.s32 11, %s2278_s11 }
  0x57   : > { %v2264_v7 = vpop.eup %1720  ;;  %vm2284_vm5 = vcmp.eq.f32.partialorder %v396_v55, 8.507059e+37  ;;  %vm410_vm6 = vweird.f32 %v2247_v58  ;;  %v414_v15 = vand.u32 2147483647, %v2247_v58  ;;  %1730 = vrcp.f32 %v2250_v59  ;;  %s2548_s25 = ssub.f32 %s2429_s22, %s607_s9  ;;  %s628_s28 = sadd.s32 9, %s2278_s11 }
  0x58   : > { %v2280_v12 = vpop.eup %1722  ;;  %v358_v13 = vmul.f32 %v2264_v7, %v2201_v36  ;;  %vm363_vm7 = vweird.f32 %v2264_v7  ;;  %vm425_vm9 = vweird.f32 %v2250_v59  ;;  %v2300_v20 = vor.u32 1.1754944e-38, %v416_v10  ;;  %s2561_s15 = sadd.f32 %s607_s9, %s2429_s22  ;;  %s3577_s22 = smul.f32 0.5, %s2416_s21 }
  0x59   : > { %v2291_v16 = vpop.eup %1724  ;;  %v373_v17 = vmul.f32 %v2280_v12, %v2212_v40  ;;  %vm378_vm8 = vweird.f32 %v2280_v12  ;;  %v429_v21 = vand.u32 2147483647, %v2250_v59  ;;  %v431_v23 = vand.u32 2147483648, %v2250_v59  ;;  %vm2323_vm12 = vmor %vm362_vm0, %vm363_vm7  ;;  %s2576_s7 = sld [smem:[#allocation7 + %s630_s24]]  ;;  %s645_s24 = sadd.s32 14, %s2278_s11 }
  0x5a   : > { %v359_v18 = vsub.f32 1.0, %v358_v13  ;;  %v388_v19 = vmul.f32 %v2291_v16, %v2220_v43  ;;  %vm393_vm11 = vweird.f32 %v2291_v16  ;;  %1732 = vrcp.f32 %v2261_v63  ;;  %vm2345_vm0 = vmor %vm377_vm1, %vm378_vm8  ;;  %s2584_s9 = ssub.f32 %s2452_s18, %s3577_s22  ;;  %s643_s29 = sadd.s32 13, %s2278_s11 }
  0x5b   : > { %v374_v22 = vsub.f32 1.0, %v373_v17  ;;  %v1727_v24 = vpop.eup %1726  ;;  %vm2311_vm14 = vcmp.eq.f32.partialorder %v414_v15, 8.507059e+37  ;;  %v444_v47 = vand.u32 2147483647, %v2261_v63  ;;  %vm2328_vm13 = vcmp.eq.f32.partialorder %v429_v21, 8.507059e+37  ;;  %vm2357_vm7 = vmor %vm392_vm2, %vm393_vm11  ;;  %s2591_s13 = sld [smem:[#allocation7 + %s632_s16]] }
  0x5c   : > { %v360_v25 = vmul.f32 %v2264_v7, %v359_v18  ;;  %v389_v27 = vsub.f32 1.0, %v388_v19  ;;  %v2317_v48 = vpop.eup %1728  ;;  %v2332_v55 = vor.u32 1.1754944e-38, %v431_v23  ;;  %v446_v56 = vand.u32 2147483648, %v2261_v63  ;;  %s2597_s1 = sadd.f32 %s3577_s22, %s2452_s18  ;;  %s641_s22 = sadd.s32 12, %s2278_s11 }
  0x5d   : > { %v375_v52 = vmul.f32 %v2280_v12, %v374_v22  ;;  %v2338_v10 = vpop.eup %1730  ;;  %v406_v17 = vmul.f32 %v2317_v48, %v2247_v58  ;;  %v472_v18 = vmul.f32 0.6931472, %v1727_v24  ;;  %vm411_vm1 = vweird.f32 %v2317_v48  ;;  %s2602_s16 = sld [smem:[#allocation7 + %s626_s3]]  ;;  %s3579_s3 = smul.f32 0.5, %s2483_s19 }
  0x5e   : > { %v361_v36 = vadd.f32 %v2264_v7, %v360_v25  ;;  %v390_v15 = vmul.f32 %v2291_v16, %v389_v27  ;;  %v421_v22 = vmul.f32 %v2338_v10, %v2250_v59  ;;  %vm426_vm8 = vweird.f32 %v2338_v10  ;;  %v1577_v27 = vld [vmem:[%s2141_s30 + $0xd] sm:$0x1]  ;;  %s2608_s18 = sld [smem:[#allocation7 + %s628_s28]]  ;;  %s647_s14 = sadd.s32 15, %s2278_s11 }
  0x5f   : > { %v376_v19 = vadd.f32 %v2280_v12, %v375_v52  ;;  %v407_v25 = vsub.f32 1.0, %v406_v17  ;;  %vm2370_vm2 = vcmp.eq.f32.partialorder %v444_v47, 8.507059e+37  ;;  %vm460_vm11 = vcmp.ge.f32.partialorder %v2164_v5, 0.0  ;;  %3576 = sst [smem:[#allocation35_spill]] %s2576_s7  ;;  %s634_s12 = smul.f32 0.5, %s2576_s7 }
  0x60   : > { %v365_v23 = vsel %vm2323_vm12, %v2264_v7, %v361_v36  ;;  %v391_v24 = vadd.f32 %v2291_v16, %v390_v15  ;;  %v2378_v52 = vpop.eup %1732  ;;  %v422_v47 = vsub.f32 1.0, %v421_v22  ;;  %1734 = vlog2.f32 %v2212_v40  ;;  %s2615_s26 = ssub.f32 %s2474_s6, %s3579_s3  ;;  %s656_s23 = sadd.s32 16, %s2278_s11 }
  0x61   : > { %v370_v0 = vsel %vm2252_vm3, %v2256_v61, %v365_v23  ;;  %v380_v7 = vsel %vm2345_vm0, %v2280_v12, %v376_v19  ;;  %v408_v61 = vmul.f32 %v2317_v48, %v407_v25  ;;  %v436_v12 = vmul.f32 %v2378_v52, %v2261_v63  ;;  %vm2407_vm3 = vmor %vm410_vm6, %vm411_vm1  ;;  %3578 = sst [smem:[#allocation36_spill]] %s2591_s13  ;;  %s658_s27 = sadd.s32 17, %s2278_s11 }
  0x62   : > { %v385_v51 = vsel %vm2266_vm4, %v2258_v62, %v380_v7  ;;  %v395_v60 = vsel %vm2357_vm7, %v2291_v16, %v391_v24  ;;  %v423_v8 = vmul.f32 %v2338_v10, %v422_v47  ;;  %vm441_vm4 = vweird.f32 %v2378_v52  ;;  %v1573_v7 = vld [vmem:[%s2141_s30 + $0x2] sm:$0x1]  ;;  %v1574_v47 = vld [vmem:[%s2141_s30 + $0xc] sm:$0x1]  ;;  %s2620_s28 = sld [smem:[#allocation7 + %s645_s24]] }
  0x63   : > { %v400_v40 = vsel %vm2284_vm5, %v2270_v9, %v395_v60  ;;  %v453_v16 = vmul.f32 %v2181_v29, %v370_v0  ;;  %vm461_vm12 = vcmp.ge.f32.partialorder %v2167_v6, 0.0  ;;  %v409_v9 = vadd.f32 %v2317_v48, %v408_v61  ;;  %vm2423_vm5 = vmor %vm425_vm9, %vm426_vm8  ;;  %s2632_s0 = sadd.f32 %s3579_s3, %s2474_s6  ;;  %s637_s6 = smul.f32 0.5, %s2591_s13 }
  0x64   : > { %v437_v36 = vsub.f32 1.0, %v436_v12  ;;  %v454_v13 = vmul.f32 %v2189_v32, %v385_v51  ;;  %v455_v29 = vmul.f32 %v2203_v37, %v400_v40  ;;  %v424_v15 = vadd.f32 %v2338_v10, %v423_v8  ;;  %v2519_v12 = vld [vmem:[%s2133_s2 + $0x14] sm:$0x1]  ;;  %s2637_s24 = sld [smem:[#allocation7 + %s641_s22]]  ;;  %s660_s13 = sadd.s32 18, %s2278_s11 }
  0x65   : > { %v447_v17 = vor.u32 1.1754944e-38, %v446_v56  ;;  %v2435_v19 = vsel %vm450_vm10, %v370_v0, %v453_v16  ;;  %1736 = vlog2.f32 %v2220_v43  ;;  %v413_v32 = vsel %vm2407_vm3, %v2317_v48, %v409_v9  ;;  %v305_v56 = vld [vmem:[%s2141_s30 + $0xa] sm:$0x1]  ;;  %v2538_v16 = vld [vmem:[%s2133_s2 + $0xc] sm:$0x1]  ;;  %s2644_s3 = sld [smem:[#allocation7 + %s647_s14]] }
  0x66   : > { %v438_v37 = vmul.f32 %v2378_v52, %v437_v36  ;;  %vm3571_vm6 = vcmp.ge.f32.partialorder %v2155_v2, 0.0  ;;  %vm3572_vm9 = vcmp.ge.f32.partialorder %v2158_v3, 0.0  ;;  %v1735_v43 = vpop.eup %1734  ;;  %v418_v48 = vsel %vm2311_vm14, %v2300_v20, %v413_v32  ;;  %v306_v20 = vld [vmem:[%s2141_s30 + $0x14] sm:$0x1]  ;;  %s2648_s22 = sld [smem:[#allocation7 + %s643_s29]]  ;;  %s662_s29 = sadd.s32 19, %s2278_s11 }
  0x67   : > { %v2446_v21 = vsel %vm3571_vm6, %v385_v51, %v454_v13  ;;  %v2450_v0 = vsel %vm3572_vm9, %v400_v40, %v455_v29  ;;  %v428_v22 = vsel %vm2423_vm5, %v2338_v10, %v424_v15  ;;  %vm3573_vm10 = vweird.f32 %v2261_v63  ;;  %v1575_v51 = vld [vmem:[%s2141_s30 + $0x16] sm:$0x1]  ;;  %v1576_v40 = vld [vmem:[%s2141_s30 + $0x3] sm:$0x1]  ;;  %v2551_v13 = vld [vmem:[%s2133_s2 + $0x15] sm:$0x1]  ;;  %s2658_s14 = ssub.f32 %s2602_s16, %s634_s12 }
  0x68   : > { %vm2465_vm0 = vmor %vm3573_vm10, %vm441_vm4  ;;  %v2471_v24 = vadd.f32 %v472_v18, %v468_v44  ;;  %1738 = vlog2.f32 %v2247_v58  ;;  %v433_v28 = vsel %vm2328_vm13, %v2332_v55, %v428_v22  ;;  %v439_v10 = vadd.f32 %v2378_v52, %v438_v37  ;;  %v1570_v58 = vld [vmem:[%s2141_s30 + $0x1] sm:$0x1]  ;;  %v1571_v18 = vld [vmem:[%s2141_s30 + $0xb] sm:$0x1]  ;;  %s3580_s4 = sld [smem:[#allocation59_spill]] }
  0x69   : > { %v462_v1 = vmul.f32 %v2217_v42, %v418_v48  ;;  %v474_v44 = vmul.f32 0.6931472, %v1735_v43  ;;  %v463_v25 = vmul.f32 %v2227_v46, %v433_v28  ;;  %v482_v55 = vmax.f32 %v2167_v6, 0.0  ;;  %v2497_v42 = vld [vmem:[%s2133_s2 + $0xb] sm:$0x1]  ;;  %s2668_s5 = sadd.f32 %s634_s12, %s2602_s16 }
  0x6a   : > { %1740 = vlog2.f32 %v2250_v59  ;;  %v443_v46 = vsel %vm2465_vm0, %v2378_v52, %v439_v10  ;;  %v2511_v59 = vmul.f32 %v305_v56, %v2155_v2  ;;  %v2533_v8 = vmul.f32 %v306_v20, %v2158_v3  ;;  %v1578_v29 = vld [vmem:[%s2141_s30 + $0x17] sm:$0x1]  ;;  %v1572_v37 = vld [vmem:[%s2141_s30 + $0x15] sm:$0x1]  ;;  %s2677_s7 = sadd.f32 %s637_s6, %s2608_s18  ;;  %s649_s30 = smul.f32 0.5, %s2620_s28 }
  0x6b   : > { %v2507_v60 = vsel %vm459_vm15, %v418_v48, %v462_v1  ;;  %1742 = vlog2.f32 %v2261_v63  ;;  %v1737_v61 = vpop.eup %1736  ;;  %v448_v52 = vsel %vm2370_vm2, %v447_v17, %v443_v46  ;;  %v2526_v63 = vsel %vm460_vm11, %v433_v28, %v463_v25  ;;  %s2680_s12 = sld [smem:[#allocation7 + %s656_s23]] }
  0x6c   : > { %v2530_v62 = vadd.f32 %v474_v44, %v469_v49  ;;  %v464_v9 = vmul.f32 %v2233_v50, %v448_v52  ;;  %v476_v14 = vmul.f32 0.6931472, %v1737_v61  ;;  %v495_v2 = vsub.f32 %v2471_v24, %v2275_v11  ;;  %v2565_v11 = vld [vmem:[%s2133_s2 + $0x4] sm:$0x1]  ;;  %s2682_s16 = sld [smem:[#allocation7 + %s658_s27]] }
  0x6d   : > { %v498_v49 = vmul.f32 %v1570_v58, %v2161_v4  ;;  %v499_v15 = vmul.f32 %v1571_v18, %v2164_v5  ;;  %v520_v17 = vsub.f32 %v2177_v26, %v1573_v7  ;;  %v521_v50 = vsub.f32 %v2497_v42, %v1574_v47  ;;  %s2695_s27 = ssub.f32 %s2637_s24, %s649_s30 }
  0x6e   : > { %v1739_v36 = vpop.eup %1738  ;;  %v522_v32 = vsub.f32 %v2519_v12, %v1575_v51  ;;  %v2570_v43 = vsel %vm461_vm12, %v448_v52, %v464_v9  ;;  %v479_v26 = vadd.f32 %v476_v14, %v470_v53  ;;  %v526_v48 = vsub.f32 %v2184_v30, %v1576_v40  ;;  %s2703_s23 = sadd.f32 %s649_s30, %s2637_s24  ;;  %s3581_s24 = smul.f32 0.5, %s2644_s3 }
  0x6f   : > { %v484_v56 = vmul.f32 0.6931472, %v1739_v36  ;;  %v496_v23 = vsub.f32 %v2530_v62, %v2511_v59  ;;  %v523_v24 = vand.u32 2147483647, %v520_v17  ;;  %v524_v20 = vand.u32 2147483647, %v521_v50 }
  0x70   : > { %v1741_v22 = vpop.eup %1740  ;;  %v527_v28 = vsub.f32 %v2538_v16, %v1577_v27  ;;  %v525_v10 = vand.u32 2147483647, %v522_v32  ;;  %v528_v1 = vsub.f32 %v2551_v13, %v1578_v29  ;;  %v500_v58 = vmul.f32 %v1572_v37, %v2167_v6  ;;  %v2624_v62 = vld [vmem:[%s2133_s2 + $0xd] sm:$0x1]  ;;  %v1569_v36 = vld [vmem:[%s2133_s2 + $0x16] sm:$0x1]  ;;  %s2672_s2 = ssub.f32 %s2608_s18, %s637_s6 }
  0x71   : > { %v1743_v3 = vpop.eup %1742  ;;  %v486_v53 = vmul.f32 0.6931472, %v1741_v22  ;;  %v489_v30 = vadd.f32 %v484_v56, %v480_v57  ;;  %v529_v18 = vand.u32 2147483647, %v526_v48  ;;  %v497_v57 = vsub.f32 %v479_v26, %v2533_v8  ;;  %v519_v50 = vld [vmem:[#allocation3] sm:$0x1]  ;;  %s2725_s30 = ssub.f32 %s2648_s22, %s3581_s24 }
  0x72   : > { %v488_v44 = vmul.f32 0.6931472, %v1743_v3  ;;  %v530_v25 = vand.u32 2147483647, %v527_v28  ;;  %v531_v47 = vand.u32 2147483647, %v528_v1  ;;  %1744 = vpow2.f32 %v2215_v41 }
  0x73   : > { %v490_v4 = vadd.f32 %v486_v53, %v481_v54  ;;  %v501_v7 = vsub.f32 %v489_v30, %v498_v49  ;;  %v532_v46 = vadd.f32 %v529_v18, %v523_v24  ;;  %v545_v5 = vand.u32 2147483647, %v2565_v11  ;;  %v2654_v56 = vld [vmem:[%s3580_s4] sm:$0x1]  ;;  %v2665_v24 = vld [vmem:[%s3580_s4 + $0x1] sm:$0x1] }
  0x74   : > { %v491_v51 = vadd.f32 %v488_v44, %v482_v55  ;;  %v533_v59 = vadd.f32 %v530_v25, %v524_v20  ;;  %v534_v40 = vadd.f32 %v531_v47, %v525_v10  ;;  %vm511_vm13 = vcmask 1040384   ;;  %s2690_s18 = sld [smem:[#allocation7 + %s660_s13]]  ;;  %s671_s4 = sadd.s32 20, %s2278_s11 }
  0x75   : > { %v502_v54 = vsub.f32 %v490_v4, %v499_v15  ;;  %v504_v61 = vadd.f32 %v501_v7, %v495_v2  ;;  %v535_v55 = vmul.f32 %v532_v46, %v2198_v35  ;;  %1746 = vpow2.f32 %v2225_v45  ;;  %s2707_s6 = sld [smem:[#allocation7 + %s662_s29]]  ;;  %s673_s13 = sadd.s32 21, %s2278_s11 }
  0x76   : > { %v503_v6 = vsub.f32 %v491_v51, %v500_v58  ;;  %v536_v52 = vmul.f32 %v533_v59, %v2206_v38  ;;  %v537_v27 = vmul.f32 %v534_v40, %v2209_v39  ;;  %v548_v49 = vsub.f32 0.0, %v545_v5 }
  0x77   : > { %v505_v8 = vadd.f32 %v502_v54, %v496_v23  ;;  %v508_v41 = vmul.f32 %v504_v61, %v2198_v35  ;;  %v538_v14 = vsel %vm511_vm13, %v535_v55, 0.0  ;;  %v546_v32 = vand.u32 2147483647, %v2624_v62 }
  0x78   : > { %v506_v9 = vadd.f32 %v503_v6, %v497_v57  ;;  %v539_v2 = vsel %vm511_vm13, %v536_v52, 0.0  ;;  %v541_v15 = vsel %vm511_vm13, %v537_v27, 0.0  ;;  %v1745_v37 = vpop.eup %1744  ;;  %v577_v48 = vmul.f32 1.442695, %v2497_v42  ;;  %v507_v42 = vld [vmem:[#allocation2] sm:$0x1] }
  0x79   : > { %v509_v35 = vmul.f32 %v505_v8, %v2206_v38  ;;  %v512_v29 = vsel %vm511_vm13, %v508_v41, 0.0  ;;  %v540_v45 = vadd.f32 %v539_v2, %v538_v14  ;;  %v551_v23 = vmul.f32 1.442695, %v548_v49 }
  0x7a   : > { %v510_v17 = vmul.f32 %v506_v9, %v2209_v39  ;;  %v547_v3 = vand.u32 2147483647, %v1569_v36  ;;  %v549_v30 = vsub.f32 0.0, %v546_v32  ;;  %v579_v10 = vmul.f32 1.442695, %v2519_v12  ;;  %s664_s29 = smul.f32 0.5, %s2690_s18 }
  0x7b   : > { %v513_v38 = vsel %vm511_vm13, %v509_v35, 0.0  ;;  %v542_v26 = vadd.f32 %v541_v15, %v540_v45  ;;  %v1747_v20 = vpop.eup %1746  ;;  %1748 = vpow2.f32 %v551_v23  ;;  %v727_v44 = vadd.f32 %v2654_v56, %v2435_v19 }
  0x7c   : > { %v514_v39 = vadd.f32 %v513_v38, %v512_v29  ;;  %v515_v22 = vsel %vm511_vm13, %v510_v17, 0.0  ;;  %v729_v12 = vadd.f32 %v2665_v24, %v2507_v60  ;;  %v550_v58 = vsub.f32 0.0, %v547_v3 }
  0x7d   : > { %v543_v28 = vadd.f32 %v542_v26, %v519_v50  ;;  %1750 = vpow2.f32 %v577_v48  ;;  %v731_v18 = vmul.f32 0.90625, %v1745_v37  ;;  %v732_v25 = vmul.f32 0.703125, %v1747_v20 }
  0x7e   : > { %v516_v53 = vadd.f32 %v515_v22, %v514_v39  ;;  %v553_v4 = vmul.f32 1.442695, %v549_v30  ;;  %1752 = vpow2.f32 %v579_v10  ;;  %v728_v19 = vmul.f32 0.25, %v727_v44 }
  0x7f   : > { %544 = vst [vmem:[#allocation3] sm:$0x1] %v543_v28  ;;  %v730_v60 = vmul.f32 0.25, %v729_v12  ;;  %v2698_v57 = vmul.f32 1.442695, %v2538_v16  ;;  %v733_v7 = vmul.f32 0.5, %v731_v18  ;;  %v2705_v51 = vmul.f32 %v732_v25, %v731_v18 }
  0x80   : > { %v517_v1 = vadd.f32 %v516_v53, %v507_v42  ;;  %v736_v47 = vmul.f32 0.5, %v732_v25  ;;  %v2711_v46 = vstv %s2516_s20  ;;  %v2714_v59 = vstv %s2494_s17  ;;  %s675_s20 = sadd.s32 22, %s2278_s11 }
  0x81   : > { %v2717_v16 = vstv %s2561_s15  ;;  %v2720_v5 = vstv %s2597_s1  ;;  %v2728_v54 = vsub.f32 %v728_v19, %v733_v7  ;;  %v2730_v61 = vadd.f32 %v733_v7, %v728_v19  ;;  %v1749_v55 = vpop.eup %1748  ;;  %s3582_s1 = smov %s3581_s24  ;;  %s677_s15 = sadd.s32 23, %s2278_s11 }
  0x82   : > { %518 = vst [vmem:[#allocation2] sm:$0x1] %v517_v1  ;;  %v2733_v40 = vstv %s2548_s25  ;;  %v2736_v6 = vstv %s2584_s9  ;;  %1754 = vpow2.f32 %v553_v4  ;;  %v555_v52 = vmul.f32 1.442695, %v550_v58  ;;  %s2741_s17 = sadd.f32 %s3582_s1, %s2648_s22  ;;  %s3583_s9 = smul.f32 %s2375_s10, %s2335_s8 }
  0x83   : > { %v2744_v8 = vsub.f32 %v730_v60, %v736_v47  ;;  %v2746_v41 = vadd.f32 %v736_v47, %v730_v60  ;;  %v2748_v27 = vpop.eup %1750  ;;  %s2750_s25 = sld [smem:[#allocation7 + %s671_s4]]  ;;  %v741_v9 = vmin.f32 %v2730_v61, %v2711_v46  ;;  %v743_v14 = vmax.f32 %v2728_v54, %v2714_v59  ;;  %s686_s22 = sadd.s32 24, %s2278_s11 }
  0x84   : > { %v2760_v2 = vstv %s3583_s9  ;;  %v760_v49 = vmin.f32 %v2730_v61, %v2720_v5  ;;  %v2764_v36 = vpop.eup %1752  ;;  %s2766_s4 = sld [smem:[#allocation7 + %s673_s13]]  ;;  %v762_v45 = vmax.f32 %v2728_v54, %v2736_v6  ;;  %v2776_v15 = vstv %s2632_s0  ;;  %s688_s8 = sadd.s32 25, %s2278_s11 }
  0x85   : > { %3584 = vst [vmem:[#allocation37_spill] sm:$0xff] %v2764_v36  ;;  %v747_v35 = vmin.f32 %v2746_v41, %v2717_v16  ;;  %v749_v29 = vmax.f32 %v2744_v8, %v2733_v40  ;;  %v560_v17 = vadd.f32 1.0, %v1749_v55  ;;  %v744_v50 = vsub.f32 %v741_v9, %v743_v14  ;;  %s2785_s10 = sld [smem:[#allocation8 + %s2278_s11]] }
  0x86   : > { %v766_v32 = vmin.f32 %v2746_v41, %v2776_v15  ;;  %v2782_v37 = vstv %s2615_s26  ;;  %s2788_s13 = sld [smem:[#allocation7 + %s675_s20]]  ;;  %v754_v26 = vadd.f32 %v2760_v2, %v2705_v51  ;;  %v763_v48 = vsub.f32 %v760_v49, %v762_v45  ;;  %s3587_s26 = smul.f32 %s2483_s19, %s2416_s21 }
  0x87   : > { %v750_v38 = vsub.f32 %v747_v35, %v749_v29  ;;  %s3585_s0 = sld [smem:[#allocation35_spill]]  ;;  %v768_v39 = vmax.f32 %v2744_v8, %v2782_v37  ;;  %v745_v22 = vmax.f32 %v744_v50, 0.0  ;;  %v2802_v20 = vstv %s2668_s5  ;;  %s667_s20 = smul.f32 0.5, %s2707_s6 }
  0x88   : > { %s3586_s24 = sld [smem:[#allocation36_spill]]  ;;  %v2799_v23 = vstv %s3587_s26  ;;  %v2805_v42 = vstv %s2658_s14  ;;  %v1755_v28 = vpop.eup %1754  ;;  %v764_v53 = vmax.f32 %v763_v48, 0.0  ;;  %v2811_v10 = vstv %s2677_s7  ;;  %s690_s14 = sadd.s32 26, %s2278_s11 }
  0x89   : > { %s2794_s1 = sld [smem:[#allocation7 + %s677_s15]]  ;;  %v751_v3 = vmax.f32 %v750_v38, 0.0  ;;  %v769_v30 = vsub.f32 %v766_v32, %v768_v39  ;;  %1756 = vpow2.f32 %v555_v52  ;;  %v779_v44 = vmin.f32 %v2730_v61, %v2802_v20 }
  0x8a   : > { %s2808_s9 = sld [smem:[#allocation7 + %s686_s22]]  ;;  %v781_v12 = vmax.f32 %v2728_v54, %v2805_v42  ;;  %vm587_vm14 = vcmp.gt.f32.partialorder %v2187_v31, 0.0  ;;  %v773_v25 = vadd.f32 %v2799_v23, %v2705_v51  ;;  %1758 = vlog2.f32 %v560_v17 }
  0x8b   : > { %s2816_s19 = sld [smem:[#allocation7 + %s688_s8]]  ;;  %v752_v58 = vmul.f32 %v751_v3, %v745_v22  ;;  %v770_v18 = vmax.f32 %v769_v30, 0.0  ;;  %v785_v19 = vmin.f32 %v2746_v41, %v2811_v10  ;;  %v2839_v60 = vstv %s2672_s2  ;;  %s705_s8 = sadd.s32 30, %s2278_s11 }
  0x8c   : > { %s2826_s7 = ssub.f32 %s2680_s12, %s664_s29  ;;  %v782_v4 = vsub.f32 %v779_v44, %v781_v12  ;;  %v585_v47 = vmul.f32 1.442695, %v2551_v13  ;;  %1760 = vpow2.f32 %v2698_v57  ;;  %vm588_vm15 = vcmp.gt.f32.partialorder %v2192_v33, 0.0  ;;  %s679_s22 = smul.f32 0.5, %s2788_s13 }
  0x8d   : > { %s2834_s5 = sadd.f32 %s664_s29, %s2680_s12  ;;  %s692_s12 = sadd.s32 27, %s2278_s11  ;;  %v755_v55 = vsub.f32 %v754_v26, %v752_v58  ;;  %v771_v52 = vmul.f32 %v770_v18, %v764_v53  ;;  %v3588_v9 = vmov 0.0   ;;  %v787_v13 = vmax.f32 %v2744_v8, %v2839_v60 }
  0x8e   : > { %s640_s21 = smul.f32 %s3586_s24, %s3585_s0  ;;  %s2846_s15 = ssub.f32 %s2682_s16, %s667_s20  ;;  %v2854_v14 = vsel %vm587_vm14, 1.0, %v3588_v9  ;;  %v561_v49 = vadd.f32 1.0, %v1755_v28  ;;  %v783_v17 = vmax.f32 %v782_v4, 0.0  ;;  %v2872_v32 = vstv %s2703_s23 }
  0x8f   : > { %s2856_s2 = sld [smem:[#allocation7 + %s690_s14]]  ;;  %v756_v57 = vmul.f32 0.7, %v755_v55  ;;  %v774_v35 = vsub.f32 %v773_v25, %v771_v52  ;;  %v1757_v45 = vpop.eup %1756  ;;  %s655_s29 = smul.f32 %s2644_s3, %s2620_s28  ;;  %v788_v50 = vsub.f32 %v785_v19, %v787_v13  ;;  %v2875_v38 = vstv %s2695_s27 }
  0x90   : > { %v2865_v29 = vstv %s640_s21  ;;  %s2869_s26 = sld [smem:[#allocation7 + %s692_s12]]  ;;  %1762 = vpow2.f32 %v585_v47  ;;  %v2880_v26 = vsel %vm588_vm15, 1.0, %v3588_v9  ;;  %s701_s24 = sadd.s32 28, %s2278_s11  ;;  %v1759_v22 = vpop.eup %1758  ;;  %v798_v53 = vmin.f32 %v2730_v61, %v2872_v32 }
  0x91   : > { %3589 = vst [vmem:[#allocation38_spill] sm:$0xff] %v2880_v26  ;;  %s2885_s0 = sadd.f32 %s667_s20, %s2682_s16  ;;  %v757_v48 = vsub.f32 %v752_v58, %v756_v57  ;;  %v775_v39 = vmul.f32 0.7, %v774_v35  ;;  %s707_s27 = sadd.s32 31, %s2278_s11  ;;  %v789_v28 = vmax.f32 %v788_v50, 0.0  ;;  %v792_v3 = vadd.f32 %v2865_v29, %v2705_v51 }
  0x92   : > { %s2888_s23 = sld [smem:[#allocation7 + %s705_s8]]  ;;  %v800_v30 = vmax.f32 %v2728_v54, %v2875_v38  ;;  %v2897_v44 = vadd.f32 1.0, %v1757_v45  ;;  %1764 = vlog2.f32 %v561_v49  ;;  %s682_s20 = smul.f32 0.5, %s2794_s1  ;;  %v2905_v18 = vpop.eup %1760  ;;  %v2915_v19 = vstv %s2741_s17 }
  0x93   : > { %s2902_s16 = ssub.f32 %s2750_s25, %s679_s22  ;;  %v758_v12 = vmax.f32 %v757_v48, -1.0  ;;  %v776_v58 = vsub.f32 %v771_v52, %v775_v39  ;;  %s670_s21 = smul.f32 %s2707_s6, %s2690_s18  ;;  %v790_v25 = vmul.f32 %v789_v28, %v783_v17  ;;  %v2918_v47 = vstv %s2725_s30 }
  0x94   : > { %3590 = vst [vmem:[#allocation39_spill] sm:$0xff] %v2897_v44  ;;  %s2912_s14 = sadd.f32 %s679_s22, %s2750_s25  ;;  %v801_v4 = vsub.f32 %v798_v53, %v800_v30  ;;  %v2920_v55 = vmul.f32 0.6931472, %v1759_v22  ;;  %s703_s12 = sadd.s32 29, %s2278_s11  ;;  %v804_v13 = vmin.f32 %v2746_v41, %v2915_v19  ;;  %v806_v49 = vmax.f32 %v2744_v8, %v2918_v47 }
  0x95   : > { %3591 = vst [vmem:[#allocation40_spill] sm:$0xff] %v2918_v47  ;;  %s2923_s8 = sld [smem:[#allocation7 + %s707_s27]]  ;;  %v777_v52 = vmax.f32 %v758_v12, %v776_v58  ;;  %s694_s25 = smul.f32 0.5, %s2856_s2  ;;  %v793_v57 = vsub.f32 %v792_v3, %v790_v25  ;;  %v2937_v45 = vstv %s655_s29  ;;  %v2940_v17 = vstv %s2834_s5 }
  0x96   : > { %s2932_s30 = sld [smem:[#allocation7 + %s701_s24]]  ;;  %v802_v35 = vmax.f32 %v801_v4, 0.0  ;;  %3592 = vst [vmem:[#allocation41_spill] sm:$0xff] %v2937_v45  ;;  %v2942_v50 = vpop.eup %1762  ;;  %v807_v48 = vsub.f32 %v804_v13, %v806_v49  ;;  %v811_v39 = vadd.f32 %v2937_v45, %v2705_v51  ;;  %v817_v22 = vmin.f32 %v2730_v61, %v2940_v17  ;;  %s697_s28 = smul.f32 0.5, %s2869_s26 }
  0x97   : > { %3593 = vst [vmem:[#allocation42_spill] sm:$0xff] %v2940_v17  ;;  %s2945_s17 = ssub.f32 %s2766_s4, %s682_s20  ;;  %v2952_v28 = vstv %s2826_s7  ;;  %v794_v3 = vmul.f32 0.7, %v793_v57  ;;  %v2959_v30 = vstv %s2885_s0  ;;  %v2962_v12 = vstv %s2846_s15  ;;  %s685_s3 = smul.f32 %s2794_s1, %s2788_s13 }
  0x98   : > { %3594 = vst [vmem:[#allocation43_spill] sm:$0xff] %v2942_v50  ;;  %s684_s11 = sadd.f32 %s682_s20, %s2766_s4  ;;  %v819_v53 = vmax.f32 %v2728_v54, %v2952_v28  ;;  %v1765_v58 = vpop.eup %1764  ;;  %v808_v4 = vmax.f32 %v807_v48, 0.0  ;;  %v823_v13 = vmin.f32 %v2746_v41, %v2959_v30  ;;  %v825_v49 = vmax.f32 %v2744_v8, %v2962_v12  ;;  %s709_s7 = smul.f32 0.5, %s2888_s23 }
  0x99   : > { %3595 = vst [vmem:[#allocation44_spill] sm:$0xff] %v2952_v28  ;;  %s2966_s5 = sld [smem:[#allocation7 + %s703_s12]]  ;;  %v2975_v57 = vstv %s670_s21  ;;  %v795_v7 = vsub.f32 %v790_v25, %v794_v3  ;;  %v2984_v48 = vstv %s2912_s14  ;;  %v2992_v26 = vstv %s2902_s16  ;;  %s700_s22 = smul.f32 %s2869_s26, %s2856_s2 }
  0x9a   : > { %3596 = vst [vmem:[#allocation45_spill] sm:$0xff] %v2959_v30  ;;  %s696_s4 = sadd.f32 %s694_s25, %s2808_s9  ;;  %v820_v1 = vsub.f32 %v817_v22, %v819_v53  ;;  %v830_v34 = vadd.f32 %v2975_v57, %v2705_v51  ;;  %v809_v33 = vmul.f32 %v808_v4, %v802_v35  ;;  %v826_v31 = vsub.f32 %v823_v13, %v825_v49  ;;  %p1595_p4 = scmp.le.s32.totalorder %s2785_s10, 0 }
  0x9b   : > { %3597 = vst [vmem:[#allocation46_spill] sm:$0xff] %v2962_v12  ;;  %s695_s15 = ssub.f32 %s2808_s9, %s694_s25  ;;  %v836_v44 = vmin.f32 %v2730_v61, %v2984_v48  ;;  %v796_v25 = vmax.f32 %v777_v52, %v795_v7  ;;  %v838_v3 = vmax.f32 %v2728_v54, %v2992_v26  ;;  %v2997_v53 = vstv %s684_s11  ;;  %s712_s9 = smul.f32 0.5, %s2923_s8 }
  0x9c   : > { %3598 = vst [vmem:[#allocation47_spill] sm:$0xff] %v2975_v57  ;;  %s699_s18 = sadd.f32 %s697_s28, %s2816_s19  ;;  %v821_v22 = vmax.f32 %v820_v1, 0.0  ;;  %v812_v35 = vsub.f32 %v811_v39, %v809_v33  ;;  %v827_v4 = vmax.f32 %v826_v31, 0.0  ;;  %v842_v13 = vmin.f32 %v2746_v41, %v2997_v53  ;;  %s715_s2 = smul.f32 %s2923_s8, %s2888_s23 }
  0x9d   : > { %3599 = vst [vmem:[#allocation48_spill] sm:$0xff] %v2984_v48  ;;  %s698_s6 = ssub.f32 %s2816_s19, %s697_s28  ;;  %v3004_v49 = vstv %s2945_s17  ;;  %v839_v1 = vsub.f32 %v836_v44, %v838_v3  ;;  %v3016_v52 = vstv %s685_s3  ;;  %v3018_v50 = vstv %s696_s4 }
  0x9e   : > { %3600 = vst [vmem:[#allocation49_spill] sm:$0xff] %v2992_v26  ;;  %s711_s29 = sadd.f32 %s709_s7, %s2932_s30  ;;  %v844_v7 = vmax.f32 %v2744_v8, %v3004_v49  ;;  %v813_v31 = vmul.f32 0.7, %v812_v35  ;;  %v828_v39 = vmul.f32 %v827_v4, %v821_v22  ;;  %v849_v36 = vadd.f32 %v3016_v52, %v2705_v51 }
  0x9f   : > { %3601 = vst [vmem:[#allocation50_spill] sm:$0xff] %v2997_v53  ;;  %v855_v53 = vmin.f32 %v2730_v61, %v3018_v50  ;;  %s710_s19 = ssub.f32 %s2932_s30, %s709_s7  ;;  %v840_v44 = vmax.f32 %v839_v1, 0.0  ;;  %v3027_v26 = vstv %s695_s15 }
  0xa0   : > { %3602 = vst [vmem:[#allocation51_spill] sm:$0xff] %v3004_v49  ;;  %v845_v3 = vsub.f32 %v842_v13, %v844_v7  ;;  %v3029_v49 = vstv %s699_s18  ;;  %s713_s13 = ssub.f32 %s2966_s5, %s712_s9  ;;  %v814_v48 = vsub.f32 %v809_v33, %v813_v31  ;;  %v831_v35 = vsub.f32 %v830_v34, %v828_v39 }
  0xa1   : > { %3603 = vst [vmem:[#allocation52_spill] sm:$0xff] %v3016_v52  ;;  %v857_v22 = vmax.f32 %v2728_v54, %v3027_v26  ;;  %v861_v4 = vmin.f32 %v2746_v41, %v3029_v49  ;;  %s714_s1 = sadd.f32 %s712_s9, %s2966_s5  ;;  %v3039_v13 = vstv %s700_s22  ;;  %v3041_v1 = vstv %s711_s29 }
  0xa2   : > { %3604 = vst [vmem:[#allocation53_spill] sm:$0xff] %v3018_v50  ;;  %v846_v52 = vmax.f32 %v845_v3, 0.0  ;;  %v3037_v50 = vstv %s698_s6  ;;  %v815_v7 = vmax.f32 %v796_v25, %v814_v48  ;;  %v832_v57 = vmul.f32 0.7, %v831_v35  ;;  %s3639_s26 = sld [smem:[#allocation30_spill]] }
  0xa3   : > { %3605 = vst [vmem:[#allocation54_spill] sm:$0xff] %v3027_v26  ;;  %v858_v12 = vsub.f32 %v855_v53, %v857_v22  ;;  %v863_v33 = vmax.f32 %v2744_v8, %v3037_v50  ;;  %v566_v34 = vmul.f32 0.6931472, %v1765_v58  ;;  %v3049_v26 = vstv %s710_s19  ;;  %s3640_s0 = sld [smem:[#allocation31_spill]] }
  0xa4   : > { %3606 = vst [vmem:[#allocation55_spill] sm:$0xff] %v3029_v49  ;;  %v847_v31 = vmul.f32 %v846_v52, %v840_v44  ;;  %v874_v49 = vmin.f32 %v2730_v61, %v3041_v1  ;;  %v833_v3 = vsub.f32 %v828_v39, %v832_v57  ;;  %v876_v45 = vmax.f32 %v2728_v54, %v3049_v26  ;;  %s3641_s24 = sld [smem:[#allocation29_spill]] }
  0xa5   : > { %v859_v30 = vmax.f32 %v858_v12, 0.0  ;;  %v864_v28 = vsub.f32 %v861_v4, %v863_v33  ;;  %v868_v25 = vadd.f32 %v3039_v13, %v2705_v51  ;;  %v3055_v53 = vstv %s714_s1  ;;  %s3642_s16 = sld [smem:[#allocation59_spill]] }
  0xa6   : > { %v850_v48 = vsub.f32 %v849_v36, %v847_v31  ;;  %v3057_v58 = vstv %s713_s13  ;;  %v834_v52 = vmax.f32 %v815_v7, %v833_v3  ;;  %v877_v35 = vsub.f32 %v874_v49, %v876_v45  ;;  %s3643_s21 = sld [smem:[#allocation30_spill]] (!%p1595_p4) }
  0xa7   : > { %v865_v44 = vmax.f32 %v864_v28, 0.0  ;;  %v880_v61 = vmin.f32 %v2746_v41, %v3055_v53  ;;  %v3607_v12 = vmax.f32 %v2565_v11, 0.0  ;;  %v882_v36 = vmax.f32 %v2744_v8, %v3057_v58  ;;  %s3644_s10 = sld [smem:[#allocation31_spill]] (!%p1595_p4) }
  0xa8   : > { %v851_v54 = vmul.f32 0.7, %v850_v48  ;;  %v3068_v39 = vstv %s715_s2  ;;  %v878_v4 = vmax.f32 %v877_v35, 0.0  ;;  %v899_v28 = vadd.f32 %v2654_v56, %v2446_v21 }
  0xa9   : > { %v3064_v57 = vadd.f32 %v2920_v55, %v3607_v12  ;;  %v866_v22 = vmul.f32 %v865_v44, %v859_v30  ;;  %v901_v45 = vadd.f32 %v2665_v24, %v2526_v63  ;;  %v883_v49 = vsub.f32 %v880_v61, %v882_v36 }
  0xaa   : > { %v852_v41 = vsub.f32 %v847_v31, %v851_v54  ;;  %v903_v11 = vmul.f32 1.21875, %v2748_v27  ;;  %v904_v55 = vmul.f32 1.546875, %v2905_v18  ;;  %v887_v8 = vadd.f32 %v3068_v39, %v2705_v51  ;;  %v3614_v31 = vld [vmem:[#allocation47_spill] sm:$0xff]  ;;  %s273_s20 = scalar_lea.vmem [#allocation14], %s3641_s24 }
  0xab   : > { %v869_v7 = vsub.f32 %v868_v25, %v866_v22  ;;  %v900_v33 = vmul.f32 0.25, %v899_v28  ;;  %v902_v3 = vmul.f32 0.25, %v901_v45  ;;  %v884_v48 = vmax.f32 %v883_v49, 0.0 }
  0xac   : > { %v853_v30 = vmax.f32 %v834_v52, %v852_v41  ;;  %v905_v44 = vmul.f32 0.5, %v903_v11  ;;  %v908_v35 = vmul.f32 0.5, %v904_v55  ;;  %v3608_v21 = vmax.f32 %v2624_v62, 0.0 }
  0xad   : > { %v870_v63 = vmul.f32 0.7, %v869_v7  ;;  %v3083_v27 = vmul.f32 %v904_v55, %v903_v11  ;;  %v885_v18 = vmul.f32 %v884_v48, %v878_v4 }
  0xae   : > { %v3080_v12 = vadd.f32 %v566_v34, %v3608_v21  ;;  %v3085_v25 = vsub.f32 %v900_v33, %v905_v44  ;;  %v3087_v61 = vadd.f32 %v905_v44, %v900_v33  ;;  %v3089_v51 = vsub.f32 %v902_v3, %v908_v35 }
  0xaf   : > { %v871_v52 = vsub.f32 %v866_v22, %v870_v63  ;;  %v3091_v54 = vadd.f32 %v908_v35, %v902_v3  ;;  %v921_v62 = vadd.f32 %v3083_v27, %v2760_v2  ;;  %v3097_v34 = vadd.f32 %v2654_v56, %v2450_v0 }
  0xb0   : > { %3609 = vst [vmem:[#allocation56_spill] sm:$0xff] %v3080_v12  ;;  %v888_v36 = vsub.f32 %v887_v8, %v885_v18  ;;  %v912_v4 = vmin.f32 %v3087_v61, %v2711_v46  ;;  %v913_v28 = vmax.f32 %v3085_v25, %v2714_v59  ;;  %v917_v45 = vmax.f32 %v3089_v51, %v2733_v40 }
  0xb1   : > { %v872_v22 = vmax.f32 %v853_v30, %v871_v52  ;;  %v916_v41 = vmin.f32 %v3091_v54, %v2717_v16  ;;  %v926_v49 = vmin.f32 %v3087_v61, %v2720_v5  ;;  %v927_v0 = vmax.f32 %v3085_v25, %v2736_v6 }
  0xb2   : > { %v889_v56 = vmul.f32 0.7, %v888_v36  ;;  %v914_v11 = vsub.f32 %v912_v4, %v913_v28  ;;  %v930_v55 = vmin.f32 %v3091_v54, %v2776_v15  ;;  %v931_v7 = vmax.f32 %v3089_v51, %v2782_v37 }
  0xb3   : > { %v918_v8 = vsub.f32 %v916_v41, %v917_v45  ;;  %v928_v33 = vsub.f32 %v926_v49, %v927_v0  ;;  %v940_v3 = vmin.f32 %v3087_v61, %v2802_v20  ;;  %v941_v30 = vmax.f32 %v3085_v25, %v2805_v42 }
  0xb4   : > { %v890_v48 = vsub.f32 %v885_v18, %v889_v56  ;;  %v915_v44 = vmax.f32 %v914_v11, 0.0  ;;  %v932_v35 = vsub.f32 %v930_v55, %v931_v7  ;;  %v944_v21 = vmin.f32 %v3091_v54, %v2811_v10 }
  0xb5   : > { %v919_v63 = vmax.f32 %v918_v8, 0.0  ;;  %v929_v52 = vmax.f32 %v928_v33, 0.0  ;;  %v942_v36 = vsub.f32 %v940_v3, %v941_v30  ;;  %v945_v4 = vmax.f32 %v3089_v51, %v2839_v60 }
  0xb6   : > { %v891_v28 = vmax.f32 %v872_v22, %v890_v48  ;;  %v933_v45 = vmax.f32 %v932_v35, 0.0  ;;  %v935_v41 = vadd.f32 %v3083_v27, %v2799_v23  ;;  %v954_v49 = vmin.f32 %v3087_v61, %v2872_v32 }
  0xb7   : > { %v920_v18 = vmul.f32 %v919_v63, %v915_v44  ;;  %v943_v0 = vmax.f32 %v942_v36, 0.0  ;;  %v946_v56 = vsub.f32 %v944_v21, %v945_v4  ;;  %v955_v11 = vmax.f32 %v3085_v25, %v2875_v38 }
  0xb8   : > { %vm892_vm7 = vcmp.le.f32.partialorder %v891_v28, 0.0  ;;  %v934_v55 = vmul.f32 %v933_v45, %v929_v52  ;;  %v958_v7 = vmin.f32 %v3091_v54, %v2915_v19  ;;  %v959_v22 = vmax.f32 %v3089_v51, %v2918_v47  ;;  %v3610_v45 = vld [vmem:[#allocation41_spill] sm:$0xff]  ;;  %v3617_v47 = vld [vmem:[#allocation50_spill] sm:$0xff] }
  0xb9   : > { %v922_v8 = vsub.f32 %v921_v62, %v920_v18  ;;  %v947_v33 = vmax.f32 %v946_v56, 0.0  ;;  %v949_v3 = vadd.f32 %v3083_v27, %v2865_v29  ;;  %v956_v30 = vsub.f32 %v954_v49, %v955_v11  ;;  %v3611_v49 = vld [vmem:[#allocation44_spill] sm:$0xff] }
  0xba   : > { %v1590_v48 = vsel %vm892_vm7, 1.0, %v3588_v9  ;;  %v936_v44 = vsub.f32 %v935_v41, %v934_v55  ;;  %v960_v35 = vsub.f32 %v958_v7, %v959_v22  ;;  %v3138_v21 = vadd.f32 %v2665_v24, %v2570_v43  ;;  %v3612_v22 = vld [vmem:[#allocation45_spill] sm:$0xff]  ;;  %v3613_v24 = vld [vmem:[#allocation46_spill] sm:$0xff] }
  0xbb   : > { %v923_v63 = vmul.f32 0.7, %v922_v8  ;;  %v948_v52 = vmul.f32 %v947_v33, %v943_v0  ;;  %v957_v36 = vmax.f32 %v956_v30, 0.0  ;;  %v968_v4 = vmin.f32 %v3087_v61, %v2940_v17 }
  0xbc   : > { %v937_v62 = vmul.f32 0.7, %v936_v44  ;;  %v961_v28 = vmax.f32 %v960_v35, 0.0  ;;  %v963_v56 = vadd.f32 %v3083_v27, %v3610_v45  ;;  %v969_v11 = vmax.f32 %v3085_v25, %v3611_v49  ;;  %v3615_v45 = vld [vmem:[#allocation48_spill] sm:$0xff] }
  0xbd   : > { %v924_v41 = vsub.f32 %v920_v18, %v923_v63  ;;  %v950_v7 = vsub.f32 %v949_v3, %v948_v52  ;;  %v972_v43 = vmin.f32 %v3091_v54, %v3612_v22  ;;  %v973_v0 = vmax.f32 %v3089_v51, %v3613_v24  ;;  %v3616_v63 = vld [vmem:[#allocation49_spill] sm:$0xff] }
  0xbe   : > { %v938_v8 = vsub.f32 %v934_v55, %v937_v62  ;;  %v962_v33 = vmul.f32 %v961_v28, %v957_v36  ;;  %v970_v30 = vsub.f32 %v968_v4, %v969_v11  ;;  %v977_v44 = vadd.f32 %v3083_v27, %v3614_v31  ;;  %v3618_v62 = vld [vmem:[#allocation51_spill] sm:$0xff]  ;;  %v3621_v31 = vld [vmem:[#allocation54_spill] sm:$0xff] }
  0xbf   : > { %v925_v35 = vmax.f32 %v924_v41, -1.0  ;;  %v951_v12 = vmul.f32 0.7, %v950_v7  ;;  %v974_v17 = vsub.f32 %v972_v43, %v973_v0  ;;  %v982_v49 = vmin.f32 %v3087_v61, %v3615_v45  ;;  %v3620_v0 = vld [vmem:[#allocation53_spill] sm:$0xff] }
  0xc0   : > { %v964_v18 = vsub.f32 %v963_v56, %v962_v33  ;;  %v971_v3 = vmax.f32 %v970_v30, 0.0  ;;  %v983_v22 = vmax.f32 %v3085_v25, %v3616_v63  ;;  %v986_v24 = vmin.f32 %v3091_v54, %v3617_v47 }
  0xc1   : > { %v939_v55 = vmax.f32 %v925_v35, %v938_v8  ;;  %v952_v36 = vsub.f32 %v948_v52, %v951_v12  ;;  %v975_v4 = vmax.f32 %v974_v17, 0.0  ;;  %v987_v28 = vmax.f32 %v3089_v51, %v3618_v62  ;;  %v3622_v17 = vld [vmem:[#allocation55_spill] sm:$0xff] }
  0xc2   : > { %v3619_v11 = vsub.f32 1.0, %v2854_v14  ;;  %v965_v7 = vmul.f32 0.7, %v964_v18  ;;  %v984_v43 = vsub.f32 %v982_v49, %v983_v22  ;;  %v996_v56 = vmin.f32 %v3087_v61, %v3620_v0  ;;  %v3623_v49 = vld [vmem:[#allocation52_spill] sm:$0xff] }
  0xc3   : > { %v953_v30 = vmax.f32 %v939_v55, %v952_v36  ;;  %v976_v45 = vmul.f32 %v975_v4, %v971_v3  ;;  %v988_v63 = vsub.f32 %v986_v24, %v987_v28  ;;  %v997_v47 = vmax.f32 %v3085_v25, %v3621_v31 }
  0xc4   : > { %v896_v41 = vmul.f32 %v1590_v48, %v3619_v11  ;;  %v966_v8 = vsub.f32 %v962_v33, %v965_v7  ;;  %v985_v12 = vmax.f32 %v984_v43, 0.0  ;;  %v1000_v52 = vmin.f32 %v3091_v54, %v3622_v17 }
  0xc5   : > { %v1001_v14 = vmax.f32 %v3089_v51, %v3037_v50  ;;  %v978_v48 = vsub.f32 %v977_v44, %v976_v45  ;;  %v989_v35 = vmax.f32 %v988_v63, 0.0  ;;  %v991_v22 = vadd.f32 %v3083_v27, %v3623_v49 }
  0xc6   : > { %v998_v18 = vsub.f32 %v996_v56, %v997_v47  ;;  %v967_v55 = vmax.f32 %v953_v30, %v966_v8  ;;  %v1010_v24 = vmin.f32 %v3087_v61, %v3041_v1  ;;  %v1011_v33 = vmax.f32 %v3085_v25, %v3049_v26 }
  0xc7   : > { %v1002_v3 = vsub.f32 %v1000_v52, %v1001_v14  ;;  %v979_v36 = vmul.f32 0.7, %v978_v48  ;;  %v990_v4 = vmul.f32 %v989_v35, %v985_v12  ;;  %v1014_v11 = vmin.f32 %v3091_v54, %v3055_v53  ;;  %v3624_v52 = vld [vmem:[#allocation37_spill] sm:$0xff] }
  0xc8   : > { %v999_v28 = vmax.f32 %v998_v18, 0.0  ;;  %v1005_v63 = vadd.f32 %v3083_v27, %v3039_v13  ;;  %v1012_v7 = vsub.f32 %v1010_v24, %v1011_v33  ;;  %v1015_v47 = vmax.f32 %v3089_v51, %v3057_v58  ;;  %v3625_v18 = vld [vmem:[#allocation43_spill] sm:$0xff]  ;;  %v3626_v33 = vld [vmem:[#allocation38_spill] sm:$0xff] }
  0xc9   : > { %v1003_v44 = vmax.f32 %v1002_v3, 0.0  ;;  %v3183_v43 = vmul.f32 %v896_v41, %v3064_v57  ;;  %v980_v61 = vsub.f32 %v976_v45, %v979_v36  ;;  %v992_v56 = vsub.f32 %v991_v22, %v990_v4 }
  0xca   : > { %v1032_v25 = vmul.f32 0.25, %v3097_v34  ;;  %v1013_v8 = vmax.f32 %v1012_v7, 0.0  ;;  %v1016_v12 = vsub.f32 %v1014_v11, %v1015_v47  ;;  %v1035_v54 = vmul.f32 2.9140625, %v3624_v52 }
  0xcb   : > { %v1004_v30 = vmul.f32 %v1003_v44, %v999_v28  ;;  %v981_v14 = vmax.f32 %v967_v55, %v980_v61  ;;  %v993_v48 = vmul.f32 0.7, %v992_v56  ;;  %v1034_v35 = vmul.f32 0.25, %v3138_v21 }
  0xcc   : > { %v1036_v3 = vmul.f32 2.546875, %v3625_v18  ;;  %v1017_v51 = vmax.f32 %v1016_v12, 0.0  ;;  %v1019_v41 = vadd.f32 %v3083_v27, %v3068_v39  ;;  %v1037_v45 = vmul.f32 0.5, %v1035_v54 }
  0xcd   : > { %v1006_v24 = vsub.f32 %v1005_v63, %v1004_v30  ;;  %v994_v22 = vsub.f32 %v990_v4, %v993_v48  ;;  %v1027_v34 = vsub.f32 1.0, %v3626_v33 }
  0xce   : > { %v1040_v36 = vmul.f32 0.5, %v1036_v3  ;;  %v3192_v28 = vmul.f32 %v1036_v3, %v1035_v54  ;;  %v1018_v44 = vmul.f32 %v1017_v51, %v1013_v8  ;;  %v3194_v55 = vsub.f32 %v1032_v25, %v1037_v45 }
  0xcf   : > { %v1007_v11 = vmul.f32 0.7, %v1006_v24  ;;  %v3196_v7 = vadd.f32 %v1037_v45, %v1032_v25  ;;  %v995_v21 = vmax.f32 %v981_v14, %v994_v22 }
  0xd0   : > { %v3198_v47 = vsub.f32 %v1034_v35, %v1040_v36  ;;  %v3200_v63 = vadd.f32 %v1040_v36, %v1034_v35  ;;  %v1053_v27 = vadd.f32 %v3192_v28, %v2760_v2  ;;  %v1020_v61 = vsub.f32 %v1019_v41, %v1018_v44 }
  0xd1   : > { %v1008_v4 = vsub.f32 %v1004_v30, %v1007_v11  ;;  %v1044_v56 = vmin.f32 %v3196_v7, %v2711_v46  ;;  %v1045_v8 = vmax.f32 %v3194_v55, %v2714_v59  ;;  %v1058_v52 = vmin.f32 %v3196_v7, %v2720_v5 }
  0xd2   : > { %v1048_v25 = vmin.f32 %v3200_v63, %v2717_v16  ;;  %v1049_v12 = vmax.f32 %v3198_v47, %v2733_v40  ;;  %v1059_v2 = vmax.f32 %v3194_v55, %v2736_v6  ;;  %v1021_v54 = vmul.f32 0.7, %v1020_v61 }
  0xd3   : > { %v1009_v30 = vmax.f32 %v995_v21, %v1008_v4  ;;  %v1046_v14 = vsub.f32 %v1044_v56, %v1045_v8  ;;  %v1062_v46 = vmin.f32 %v3200_v63, %v2776_v15  ;;  %v1063_v16 = vmax.f32 %v3198_v47, %v2782_v37  ;;  %v3627_v56 = vld [vmem:[#allocation40_spill] sm:$0xff] }
  0xd4   : > { %v1050_v48 = vsub.f32 %v1048_v25, %v1049_v12  ;;  %v1060_v59 = vsub.f32 %v1058_v52, %v1059_v2  ;;  %v1067_v40 = vadd.f32 %v3192_v28, %v2799_v23  ;;  %v1022_v35 = vsub.f32 %v1018_v44, %v1021_v54  ;;  %v3629_v2 = vld [vmem:[#allocation42_spill] sm:$0xff] }
  0xd5   : > { %v1047_v18 = vmax.f32 %v1046_v14, 0.0  ;;  %v1072_v5 = vmin.f32 %v3196_v7, %v2802_v20  ;;  %v1073_v6 = vmax.f32 %v3194_v55, %v2805_v42  ;;  %v1064_v51 = vsub.f32 %v1062_v46, %v1063_v16  ;;  %v3631_v46 = vld [vmem:[#allocation44_spill] sm:$0xff]  ;;  %v3632_v16 = vld [vmem:[#allocation45_spill] sm:$0xff] }
  0xd6   : > { %v1051_v3 = vmax.f32 %v1050_v48, 0.0  ;;  %v1061_v24 = vmax.f32 %v1060_v59, 0.0  ;;  %v1076_v15 = vmin.f32 %v3200_v63, %v2811_v10  ;;  %v1023_v41 = vmax.f32 %v1009_v30, %v1022_v35 }
  0xd7   : > { %v1074_v45 = vsub.f32 %v1072_v5, %v1073_v6  ;;  %v1077_v37 = vmax.f32 %v3198_v47, %v2839_v60  ;;  %v1081_v23 = vadd.f32 %v3192_v28, %v2865_v29  ;;  %v1065_v33 = vmax.f32 %v1064_v51, 0.0 }
  0xd8   : > { %v1052_v22 = vmul.f32 %v1051_v3, %v1047_v18  ;;  %v1086_v20 = vmin.f32 %v3196_v7, %v2872_v32  ;;  %v1087_v42 = vmax.f32 %v3194_v55, %v2875_v38  ;;  %vm1024_vm1 = vcmp.le.f32.partialorder %v1023_v41, 0.0  ;;  %v3628_v32 = vld [vmem:[#allocation41_spill] sm:$0xff]  ;;  %v3633_v18 = vld [vmem:[#allocation46_spill] sm:$0xff] }
  0xd9   : > { %v1075_v36 = vmax.f32 %v1074_v45, 0.0  ;;  %v1078_v11 = vsub.f32 %v1076_v15, %v1077_v37  ;;  %v1090_v10 = vmin.f32 %v3200_v63, %v2915_v19  ;;  %v1591_v44 = vsel %vm1024_vm1, 1.0, %v3588_v9  ;;  %v3630_v19 = vld [vmem:[#allocation56_spill] sm:$0xff]  ;;  %v3634_v45 = vld [vmem:[#allocation47_spill] sm:$0xff] }
  0xda   : > { %v1054_v60 = vsub.f32 %v1053_v27, %v1052_v22  ;;  %v1066_v21 = vmul.f32 %v1065_v33, %v1061_v24  ;;  %v1088_v4 = vsub.f32 %v1086_v20, %v1087_v42  ;;  %v1028_v29 = vmul.f32 %v1591_v44, %v1027_v34  ;;  %v3635_v42 = vld [vmem:[#allocation48_spill] sm:$0xff]  ;;  %v3636_v44 = vld [vmem:[#allocation49_spill] sm:$0xff] }
  0xdb   : > { %v1079_v61 = vmax.f32 %v1078_v11, 0.0  ;;  %v1091_v8 = vmax.f32 %v3198_v47, %v3627_v56  ;;  %v1095_v25 = vadd.f32 %v3192_v28, %v3628_v32  ;;  %v1100_v30 = vmin.f32 %v3196_v7, %v3629_v2 }
  0xdc   : > { %v1055_v38 = vmul.f32 0.7, %v1054_v60  ;;  %v1068_v12 = vsub.f32 %v1067_v40, %v1066_v21  ;;  %v1089_v52 = vmax.f32 %v1088_v4, 0.0  ;;  %v1029_v54 = vmul.f32 %v1028_v29, %v3630_v19  ;;  %v3638_v4 = vld [vmem:[#allocation39_spill] sm:$0xff] }
  0xdd   : > { %v1080_v14 = vmul.f32 %v1079_v61, %v1075_v36  ;;  %v1092_v27 = vsub.f32 %v1090_v10, %v1091_v8  ;;  %v1101_v34 = vmax.f32 %v3194_v55, %v3631_v46  ;;  %v1104_v35 = vmin.f32 %v3200_v63, %v3632_v16 }
  0xde   : > { %v1056_v48 = vsub.f32 %v1052_v22, %v1055_v38  ;;  %v1069_v59 = vmul.f32 0.7, %v1068_v12  ;;  %v1105_v5 = vmax.f32 %v3198_v47, %v3633_v18  ;;  %v3253_v40 = vadd.f32 %v1029_v54, %v3183_v43 }
  0xdf   : > { %v1082_v6 = vsub.f32 %v1081_v23, %v1080_v14  ;;  %v1093_v3 = vmax.f32 %v1092_v27, 0.0  ;;  %v1102_v24 = vsub.f32 %v1100_v30, %v1101_v34  ;;  %v1109_v37 = vadd.f32 %v3192_v28, %v3634_v45  ;;  %v3637_v23 = vld [vmem:[#allocation50_spill] sm:$0xff] }
  0xe0   : > { %v1057_v51 = vmax.f32 %v1056_v48, -1.0  ;;  %v1070_v15 = vsub.f32 %v1066_v21, %v1069_v59  ;;  %v1106_v41 = vsub.f32 %v1104_v35, %v1105_v5  ;;  %v1114_v36 = vmin.f32 %v3196_v7, %v3635_v42 }
  0xe1   : > { %v1083_v22 = vmul.f32 0.7, %v1082_v6  ;;  %v1094_v33 = vmul.f32 %v1093_v3, %v1089_v52  ;;  %v1103_v20 = vmax.f32 %v1102_v24, 0.0  ;;  %v1115_v43 = vmax.f32 %v3194_v55, %v3636_v44  ;;  %v1768_v3 = vld [vmem:[%s3639_s26 + $0x16] sm:$0x1] }
  0xe2   : > { %v1071_v11 = vmax.f32 %v1057_v51, %v1070_v15  ;;  %v1107_v10 = vmax.f32 %v1106_v41, 0.0  ;;  %v1118_v60 = vmin.f32 %v3200_v63, %v3637_v23  ;;  %1766 = vlog2.f32 %v3638_v4  ;;  %v1772_v4 = vld [vmem:[%s3640_s0 + $0x5] sm:$0x1] }
  0xe3   : > { %v1084_v21 = vsub.f32 %v1080_v14, %v1083_v22  ;;  %v1096_v29 = vsub.f32 %v1095_v25, %v1094_v33  ;;  %v1119_v61 = vmax.f32 %v3198_v47, %v3618_v62  ;;  %v1116_v8 = vsub.f32 %v1114_v36, %v1115_v43  ;;  %v1771_v36 = vld [vmem:[%s3639_s26 + $0xd] sm:$0x1] }
  0xe4   : > { %v1108_v56 = vmul.f32 %v1107_v10, %v1103_v20  ;;  %v1128_v32 = vmin.f32 %v3196_v7, %v3620_v0  ;;  %v1129_v38 = vmax.f32 %v3194_v55, %v3621_v31  ;;  %v1132_v30 = vmin.f32 %v3200_v63, %v3622_v17  ;;  %v1770_v20 = vld [vmem:[%s3639_s26 + $0x4] sm:$0x1] }
  0xe5   : > { %v1085_v12 = vmax.f32 %v1071_v11, %v1084_v21  ;;  %v1097_v52 = vmul.f32 0.7, %v1096_v29  ;;  %v1120_v2 = vsub.f32 %v1118_v60, %v1119_v61  ;;  %v1117_v14 = vmax.f32 %v1116_v8, 0.0  ;;  %v1773_v29 = vld [vmem:[%s3640_s0 + $0xf] sm:$0x1] }
  0xe6   : > { %v1110_v54 = vsub.f32 %v1109_v37, %v1108_v56  ;;  %v1130_v25 = vsub.f32 %v1128_v32, %v1129_v38  ;;  %v1133_v62 = vmax.f32 %v3198_v47, %v3037_v50  ;;  %v1123_v0 = vadd.f32 %v3192_v28, %v3623_v49  ;;  %v1769_v37 = vld [vmem:[%s3640_s0 + $0x19] sm:$0x1] }
  0xe7   : > { %v1098_v27 = vsub.f32 %v1094_v33, %v1097_v52  ;;  %v1121_v46 = vmax.f32 %v1120_v2, 0.0  ;;  %v1142_v31 = vmin.f32 %v3196_v7, %v3041_v1  ;;  %v1143_v17 = vmax.f32 %v3194_v55, %v3049_v26 }
  0xe8   : > { %v1111_v34 = vmul.f32 0.7, %v1110_v54  ;;  %v1131_v48 = vmax.f32 %v1130_v25, 0.0  ;;  %v1134_v59 = vsub.f32 %v1132_v30, %v1133_v62  ;;  %v1767_v16 = vpop.eup %1766  ;;  %v1146_v50 = vmin.f32 %v3200_v63, %v3055_v53  ;;  %v1593_v25 = vld [vmem:[%s3642_s16 + $0x2] sm:$0x1] }
  0xe9   : > { %v1099_v35 = vmax.f32 %v1085_v12, %v1098_v27  ;;  %v1122_v18 = vmul.f32 %v1121_v46, %v1117_v14  ;;  %v1147_v5 = vmax.f32 %v3198_v47, %v3057_v58  ;;  %v1137_v1 = vadd.f32 %v3192_v28, %v3039_v13 }
  0xea   : > { %v1112_v6 = vsub.f32 %v1108_v56, %v1111_v34  ;;  %v1135_v49 = vmax.f32 %v1134_v59, 0.0  ;;  %v1144_v7 = vsub.f32 %v1142_v31, %v1143_v17  ;;  %v559_v24 = vmax.f32 %v1768_v3, 0.0 }
  0xeb   : > { %v1124_v26 = vsub.f32 %v1123_v0, %v1122_v18  ;;  %v1148_v55 = vsub.f32 %v1146_v50, %v1147_v5  ;;  %v568_v51 = vmul.f32 0.6931472, %v1767_v16  ;;  %v1151_v58 = vadd.f32 %v3192_v28, %v3068_v39  ;;  %v1166_v0 = vld [vmem:[#allocation4] sm:$0x1] }
  0xec   : > { %v1113_v15 = vmax.f32 %v1099_v35, %v1112_v6  ;;  %v1136_v41 = vmul.f32 %v1135_v49, %v1131_v48  ;;  %v1145_v53 = vmax.f32 %v1144_v7, 0.0  ;;  %vm589_vm8 = vcmp.gt.f32.partialorder %v1769_v37, 0.0 }
  0xed   : > { %v1125_v63 = vmul.f32 0.7, %v1124_v26  ;;  %v1149_v45 = vmax.f32 %v1148_v55, 0.0  ;;  %v571_v33 = vadd.f32 %v568_v51, %v559_v24  ;;  %v716_v42 = vsub.f32 %v3064_v57, %v1770_v20 }
  0xee   : > { %v1138_v47 = vsub.f32 %v1137_v1, %v1136_v41  ;;  %v717_v11 = vsub.f32 %v3630_v19, %v1771_v36  ;;  %v1588_v39 = vsel %vm589_vm8, 1.0, %v3588_v9 }
  0xef   : > { %v1126_v13 = vsub.f32 %v1122_v18, %v1125_v63  ;;  %v1150_v22 = vmul.f32 %v1149_v45, %v1145_v53  ;;  %v718_v60 = vsub.f32 %v571_v33, %v1768_v3  ;;  %v719_v21 = vmul.f32 %v1772_v4, %v716_v42 }
  0xf0   : > { %v1139_v10 = vmul.f32 0.7, %v1138_v47  ;;  %v720_v61 = vmul.f32 %v1773_v29, %v717_v11  ;;  %v1159_v38 = vsub.f32 1.0, %v1588_v39 }
  0xf1   : > { %v1127_v44 = vmax.f32 %v1113_v15, %v1126_v13  ;;  %v1152_v43 = vsub.f32 %v1151_v58, %v1150_v22  ;;  %v721_v57 = vmul.f32 %v1769_v37, %v718_v60  ;;  %v722_v12 = vsel %vm511_vm13, %v719_v21, 0.0 }
  0xf2   : > { %v1140_v23 = vsub.f32 %v1136_v41, %v1139_v10  ;;  %v723_v19 = vsel %vm511_vm13, %v720_v61, 0.0 }
  0xf3   : > { %v1153_v28 = vmul.f32 0.7, %v1152_v43  ;;  %v724_v2 = vadd.f32 %v723_v19, %v722_v12  ;;  %v725_v54 = vsel %vm511_vm13, %v721_v57, 0.0 }
  0xf4   : > { %v1141_v56 = vmax.f32 %v1127_v44, %v1140_v23 }
  0xf5   : > { %v1154_v8 = vsub.f32 %v1150_v22, %v1153_v28  ;;  %v726_v62 = vadd.f32 %v725_v54, %v724_v2 }
  0xf7   : > { %v1155_v32 = vmax.f32 %v1141_v56, %v1154_v8 }
  0xf9   : > { %vm1156_vm2 = vcmp.le.f32.partialorder %v1155_v32, 0.0 }
  0xfa   : > { %v1592_v52 = vsel %vm1156_vm2, 1.0, %v3588_v9 }
  0xfb   : > { %v1160_v30 = vmul.f32 %v1592_v52, %v1159_v38 }
  0xfd   : > { %v1161_v14 = vmul.f32 %v1160_v30, %v571_v33 }
  0xff   : > { %v1162_v27 = vadd.f32 %v1161_v14, %v3253_v40 }
 0x101   : > { %v1165_v46 = vmul.f32 %v1593_v25, %v1162_v27 }
 0x103   : > { %v1167_v31 = vadd.f32 %v1165_v46, %v726_v62  ;;  %1181 = sbr.rel (%p1595_p4) target bundleno = 324 (0x144), region = 48 }
 0x105   : > { %v1168_v34 = vadd.f32 %v1167_v31, %v1166_v0 }
 0x107   : > { %1169 = vst [vmem:[#allocation4] sm:$0x1] %v1168_v34 }
 0x108   : > { %v3308_v9 = vld [vmem:[%s3643_s21 + $0x5] sm:$0x1]  ;;  %v3311_v48 = vld [vmem:[%s3643_s21 + $0xe] sm:$0x1]  ;;  %v3314_v40 = vld [vmem:[%s3643_s21 + $0x17] sm:$0x1] }
 0x109   : > { %v1193_v59 = vand.u32 2147483647, %v3308_v9  ;;  %v1194_v17 = vand.u32 2147483647, %v3311_v48  ;;  %v1195_v16 = vand.u32 2147483647, %v3314_v40 }
 0x10a   : > { %v3320_v18 = vld [vmem:[%s3643_s21 + $0x6] sm:$0x1]  ;;  %v3323_v6 = vld [vmem:[%s3643_s21 + $0xf] sm:$0x1]  ;;  %v3326_v49 = vld [vmem:[%s3643_s21 + $0x18] sm:$0x1] }
 0x10b   : > { %v1196_v35 = vsub.f32 0.0, %v1193_v59  ;;  %v1197_v50 = vsub.f32 0.0, %v1194_v17  ;;  %v1198_v5 = vsub.f32 0.0, %v1195_v16  ;;  %v1237_v24 = vand.u32 2147483647, %v3320_v18 }
 0x10c   : > { %v1238_v26 = vand.u32 2147483647, %v3323_v6  ;;  %v1239_v55 = vand.u32 2147483647, %v3326_v49  ;;  %v3332_v15 = vld [vmem:[%s3643_s21 + $0x7] sm:$0x1] }
 0x10d   : > { %v1199_v1 = vmul.f32 1.442695, %v1196_v35  ;;  %v1201_v7 = vmul.f32 1.442695, %v1197_v50  ;;  %v1203_v3 = vmul.f32 1.442695, %v1198_v5 }
 0x10e   : > { %v1240_v51 = vsub.f32 0.0, %v1237_v24  ;;  %v1241_v41 = vsub.f32 0.0, %v1238_v26  ;;  %v1242_v53 = vsub.f32 0.0, %v1239_v55  ;;  %v3335_v63 = vld [vmem:[%s3643_s21 + $0x10] sm:$0x1]  ;;  %v1190_v16 = vmax.f32 %v3308_v9, 0.0 }
 0x10f   : > { %1774 = vpow2.f32 %v1199_v1  ;;  %v3338_v45 = vld [vmem:[%s3643_s21 + $0x19] sm:$0x1]  ;;  %v1281_v13 = vand.u32 2147483647, %v3332_v15  ;;  %v1282_v22 = vand.u32 2147483647, %v3335_v63 }
 0x110   : > { %1776 = vpow2.f32 %v1201_v7  ;;  %v1243_v58 = vmul.f32 1.442695, %v1240_v51  ;;  %v1245_v47 = vmul.f32 1.442695, %v1241_v41  ;;  %v1247_v37 = vmul.f32 1.442695, %v1242_v53 }
 0x111   : > { %1778 = vpow2.f32 %v1203_v3  ;;  %v1283_v33 = vand.u32 2147483647, %v3338_v45  ;;  %v1284_v42 = vsub.f32 0.0, %v1281_v13  ;;  %v1285_v10 = vsub.f32 0.0, %v1282_v22  ;;  %v3344_v44 = vld [vmem:[%s3643_s21 + $0x8] sm:$0x1] }
 0x112   : > { %1780 = vpow2.f32 %v1243_v58  ;;  %v3347_v43 = vld [vmem:[%s3643_s21 + $0x11] sm:$0x1]  ;;  %v3350_v4 = vld [vmem:[%s3643_s21 + $0x1a] sm:$0x1]  ;;  %v1325_v61 = vand.u32 2147483647, %v3344_v44 }
 0x113   : > { %1782 = vpow2.f32 %v1245_v47  ;;  %v1286_v28 = vsub.f32 0.0, %v1283_v33  ;;  %v1287_v60 = vmul.f32 1.442695, %v1284_v42  ;;  %v1289_v29 = vmul.f32 1.442695, %v1285_v10 }
 0x114   : > { %1784 = vpow2.f32 %v1247_v37  ;;  %v1326_v8 = vand.u32 2147483647, %v3347_v43  ;;  %v1327_v32 = vand.u32 2147483647, %v3350_v4  ;;  %v1328_v19 = vsub.f32 0.0, %v1325_v61 }
 0x115   : > { %v1775_v20 = vpop.eup %1774  ;;  %v1291_v12 = vmul.f32 1.442695, %v1286_v28  ;;  %v1599_v27 = vld [vmem:[%s3644_s10 + $0x6] sm:$0x1]  ;;  %v1600_v31 = vld [vmem:[%s3644_s10 + $0x10] sm:$0x1] }
 0x116   : > { %v1777_v36 = vpop.eup %1776  ;;  %v1205_v11 = vadd.f32 1.0, %v1775_v20  ;;  %v1329_v30 = vsub.f32 0.0, %v1326_v8  ;;  %v1330_v54 = vsub.f32 0.0, %v1327_v32  ;;  %v1331_v25 = vmul.f32 1.442695, %v1328_v19 }
 0x117   : > { %v1779_v23 = vpop.eup %1778  ;;  %v1206_v39 = vadd.f32 1.0, %v1777_v36  ;;  %v1601_v34 = vld [vmem:[%s3644_s10 + $0x1a] sm:$0x1]  ;;  %v1191_v50 = vmax.f32 %v3311_v48, 0.0  ;;  %v1192_v5 = vmax.f32 %v3314_v40, 0.0  ;;  %v3362_v1 = vmul.f32 %v1599_v27, %v3308_v9 }
 0x118   : > { %v1207_v21 = vadd.f32 1.0, %v1779_v23  ;;  %1786 = vlog2.f32 %v1205_v11  ;;  %v1781_v56 = vpop.eup %1780  ;;  %v1333_v46 = vmul.f32 1.442695, %v1329_v30  ;;  %v1335_v59 = vmul.f32 1.442695, %v1330_v54 }
 0x119   : > { %1788 = vlog2.f32 %v1206_v39  ;;  %v1783_v38 = vpop.eup %1782  ;;  %v1249_v57 = vadd.f32 1.0, %v1781_v56  ;;  %v3365_v3 = vmul.f32 %v1600_v31, %v3311_v48  ;;  %v3368_v24 = vmul.f32 %v1601_v34, %v3314_v40  ;;  %v1605_v26 = vld [vmem:[%s3644_s10 + $0x7] sm:$0x1]  ;;  %v1606_v55 = vld [vmem:[%s3644_s10 + $0x11] sm:$0x1] }
 0x11a   : > { %1790 = vlog2.f32 %v1207_v21  ;;  %v1785_v52 = vpop.eup %1784  ;;  %v1250_v2 = vadd.f32 1.0, %v1783_v38  ;;  %v1607_v58 = vld [vmem:[%s3644_s10 + $0x1b] sm:$0x1]  ;;  %v1234_v47 = vmax.f32 %v3320_v18, 0.0  ;;  %v1235_v48 = vmax.f32 %v3323_v6, 0.0 }
 0x11b   : > { %1792 = vpow2.f32 %v1287_v60  ;;  %v1251_v14 = vadd.f32 1.0, %v1785_v52  ;;  %v1236_v33 = vmax.f32 %v3326_v49, 0.0  ;;  %v1261_v42 = vmul.f32 %v1605_v26, %v3320_v18  ;;  %v1611_v36 = vld [vmem:[%s3644_s10 + $0x8] sm:$0x1]  ;;  %v1612_v60 = vld [vmem:[%s3644_s10 + $0x12] sm:$0x1] }
 0x11c   : > { %1794 = vpow2.f32 %v1289_v29  ;;  %v1262_v39 = vmul.f32 %v1606_v55, %v3323_v6  ;;  %v1263_v28 = vmul.f32 %v1607_v58, %v3326_v49  ;;  %v1278_v56 = vmax.f32 %v3332_v15, 0.0  ;;  %v1618_v55 = vld [vmem:[%s3644_s10 + $0x13] sm:$0x1] }
 0x11d   : > { %1796 = vlog2.f32 %v1249_v57  ;;  %v1279_v18 = vmax.f32 %v3335_v63, 0.0  ;;  %v1305_v6 = vmul.f32 %v1611_v36, %v3332_v15  ;;  %v1306_v49 = vmul.f32 %v1612_v60, %v3335_v63  ;;  %v1613_v15 = vld [vmem:[%s3644_s10 + $0x1c] sm:$0x1] }
 0x11e   : > { %v1787_v62 = vpop.eup %1786  ;;  %1798 = vlog2.f32 %v1250_v2 }
 0x11f   : > { %v1789_v0 = vpop.eup %1788  ;;  %1800 = vlog2.f32 %v1251_v14  ;;  %v1209_v53 = vmul.f32 0.6931472, %v1787_v62 }
 0x120   : > { %v1791_v17 = vpop.eup %1790  ;;  %1802 = vpow2.f32 %v1291_v12  ;;  %v1211_v13 = vmul.f32 0.6931472, %v1789_v0 }
 0x121   : > { %v1793_v35 = vpop.eup %1792  ;;  %1804 = vpow2.f32 %v1331_v25  ;;  %v1213_v10 = vmul.f32 0.6931472, %v1791_v17  ;;  %v1214_v29 = vadd.f32 %v1209_v53, %v1190_v16  ;;  %v1280_v16 = vmax.f32 %v3338_v45, 0.0 }
 0x122   : > { %v1795_v7 = vpop.eup %1794  ;;  %v1293_v51 = vadd.f32 1.0, %v1793_v35  ;;  %1806 = vpow2.f32 %v1333_v46  ;;  %v1215_v38 = vadd.f32 %v1211_v13, %v1191_v50  ;;  %v1617_v50 = vld [vmem:[%s3644_s10 + $0x9] sm:$0x1] }
 0x123   : > { %v1797_v41 = vpop.eup %1796  ;;  %v1294_v9 = vadd.f32 1.0, %v1795_v7  ;;  %1808 = vpow2.f32 %v1335_v59  ;;  %v1216_v30 = vadd.f32 %v1213_v10, %v1192_v5  ;;  %v1220_v62 = vsub.f32 %v1214_v29, %v3362_v1 }
 0x124   : > { %v1799_v37 = vpop.eup %1798  ;;  %v1253_v22 = vmul.f32 0.6931472, %v1797_v41  ;;  %1810 = vlog2.f32 %v1293_v51  ;;  %v1221_v0 = vsub.f32 %v1215_v38, %v3365_v3  ;;  %v1307_v7 = vmul.f32 %v1613_v15, %v3338_v45  ;;  %v3645_v38 = vld [vmem:[#allocation32_spill] sm:$0xff] }
 0x125   : > { %v1801_v40 = vpop.eup %1800  ;;  %v1255_v20 = vmul.f32 0.6931472, %v1799_v37  ;;  %1812 = vlog2.f32 %v1294_v9  ;;  %v1222_v59 = vsub.f32 %v1216_v30, %v3368_v24  ;;  %v1322_v3 = vmax.f32 %v3344_v44, 0.0 }
 0x126   : > { %v1803_v11 = vpop.eup %1802  ;;  %v1257_v23 = vmul.f32 0.6931472, %v1801_v40  ;;  %v1258_v61 = vadd.f32 %v1253_v22, %v1234_v47  ;;  %v1619_v47 = vld [vmem:[%s3644_s10 + $0x1d] sm:$0x1]  ;;  %v1323_v24 = vmax.f32 %v3347_v43, 0.0  ;;  %v1324_v37 = vmax.f32 %v3350_v4, 0.0 }
 0x127   : > { %v1805_v21 = vpop.eup %1804  ;;  %v1295_v8 = vadd.f32 1.0, %v1803_v11  ;;  %v1259_v57 = vadd.f32 %v1255_v20, %v1235_v48  ;;  %v1349_v48 = vmul.f32 %v1617_v50, %v3344_v44  ;;  %v1350_v20 = vmul.f32 %v1618_v55, %v3347_v43 }
 0x128   : > { %v1807_v32 = vpop.eup %1806  ;;  %v1337_v12 = vadd.f32 1.0, %v1805_v21  ;;  %v1260_v54 = vadd.f32 %v1257_v23, %v1236_v33  ;;  %v1264_v27 = vsub.f32 %v1258_v61, %v1261_v42  ;;  %v1351_v10 = vmul.f32 %v1619_v47, %v3350_v4 }
 0x129   : > { %v1809_v19 = vpop.eup %1808  ;;  %1814 = vlog2.f32 %v1295_v8  ;;  %v1338_v52 = vadd.f32 1.0, %v1807_v32  ;;  %v1265_v31 = vsub.f32 %v1259_v57, %v1262_v39 }
 0x12a   : > { %v1811_v2 = vpop.eup %1810  ;;  %v1339_v14 = vadd.f32 1.0, %v1809_v19  ;;  %1816 = vlog2.f32 %v1337_v12  ;;  %v1266_v17 = vsub.f32 %v1260_v54, %v1263_v28  ;;  %v1267_v1 = vadd.f32 %v1264_v27, %v1220_v62  ;;  %v3647_v12 = vld [vmem:[#allocation34_spill] sm:$0xff] }
 0x12b   : > { %v1813_v25 = vpop.eup %1812  ;;  %v1297_v46 = vmul.f32 0.6931472, %v1811_v2  ;;  %1818 = vlog2.f32 %v1338_v52  ;;  %v1268_v41 = vadd.f32 %v1265_v31, %v1221_v0  ;;  %v1358_v2 = vld [vmem:[#allocation5] sm:$0x1] }
 0x12c   : > { %v1299_v34 = vmul.f32 0.6931472, %v1813_v25  ;;  %1820 = vlog2.f32 %v1339_v14  ;;  %v1269_v40 = vadd.f32 %v1266_v17, %v1222_v59 }
 0x12d   : > { %v1302_v63 = vadd.f32 %v1297_v46, %v1278_v56 }
 0x12e   : > { %v1303_v35 = vadd.f32 %v1299_v34, %v1279_v18  ;;  %v3646_v18 = vld [vmem:[#allocation33_spill] sm:$0xff] }
 0x12f   : > { %v1815_v5 = vpop.eup %1814  ;;  %v1308_v26 = vsub.f32 %v1302_v63, %v1305_v6 }
 0x130   : > { %v1817_v51 = vpop.eup %1816  ;;  %v1301_v53 = vmul.f32 0.6931472, %v1815_v5  ;;  %v1309_v58 = vsub.f32 %v1303_v35, %v1306_v49 }
 0x131   : > { %v1819_v9 = vpop.eup %1818  ;;  %v1341_v13 = vmul.f32 0.6931472, %v1817_v51  ;;  %v1311_v42 = vadd.f32 %v1308_v26, %v1267_v1 }
 0x132   : > { %v1821_v22 = vpop.eup %1820  ;;  %v1304_v45 = vadd.f32 %v1301_v53, %v1280_v16  ;;  %v1343_v33 = vmul.f32 0.6931472, %v1819_v9  ;;  %v1312_v39 = vadd.f32 %v1309_v58, %v1268_v41 }
 0x133   : > { %v1345_v36 = vmul.f32 0.6931472, %v1821_v22  ;;  %v1346_v11 = vadd.f32 %v1341_v13, %v1322_v3 }
 0x134   : > { %v1310_v23 = vsub.f32 %v1304_v45, %v1307_v7  ;;  %v1347_v28 = vadd.f32 %v1343_v33, %v1323_v24 }
 0x135   : > { %v1348_v60 = vadd.f32 %v1345_v36, %v1324_v37  ;;  %v1352_v21 = vsub.f32 %v1346_v11, %v1349_v48 }
 0x136   : > { %v1313_v29 = vadd.f32 %v1310_v23, %v1269_v40  ;;  %v1353_v61 = vsub.f32 %v1347_v28, %v1350_v20 }
 0x137   : > { %v1354_v56 = vsub.f32 %v1348_v60, %v1351_v10  ;;  %v1355_v44 = vadd.f32 %v1352_v21, %v1311_v42 }
 0x138   : > { %v1356_v8 = vadd.f32 %v1353_v61, %v1312_v39 }
 0x139   : > { %v1357_v32 = vadd.f32 %v1354_v56, %v1313_v29  ;;  %v1359_v57 = vmul.f32 %v3645_v38, %v1355_v44 }
 0x13a   : > { %v1360_v43 = vmul.f32 %v3646_v18, %v1356_v8 }
 0x13b   : > { %v1361_v19 = vmul.f32 %v3647_v12, %v1357_v32  ;;  %v1362_v6 = vsel %vm511_vm13, %v1359_v57, 0.0 }
 0x13c   : > { %v1363_v4 = vsel %vm511_vm13, %v1360_v43, 0.0 }
 0x13d   : > { %v1364_v49 = vadd.f32 %v1363_v4, %v1362_v6  ;;  %v1365_v52 = vsel %vm511_vm13, %v1361_v19, 0.0 }
 0x13f   : > { %v1366_v30 = vadd.f32 %v1365_v52, %v1364_v49 }
 0x141   : > { %v1367_v54 = vadd.f32 %v1366_v30, %v1358_v2 }
 0x143   : > { %1368 = vst [vmem:[#allocation5] sm:$0x1] %v1367_v54 }
 0x144 PF: > { %v1372_v25 = vld [vmem:[#allocation2] sm:$0x1]  ;;  %v1384_v0 = vld [vmem:[#allocation3] sm:$0x1]  ;;  %s3648_s14 = sld [smem:[#allocation22_spill]]  ;;  %vm1420_vm11 = vcmask 7168  }
 0x145   : > { %v1373_v27 = vsel %vm511_vm13, %v1372_v25, 0.0  ;;  %v1385_v15 = vsel %vm511_vm13, %v1384_v0, 0.0  ;;  %s3649_s12 = sld [smem:[#allocation29_spill]]  ;;  %s3416_s28 = sshll.u32 %s273_s20, 4  ;;  %vm1422_vm3 = vcmask 15360   ;;  %vm1424_vm4 = vcmask 23552   ;;  %s1440_s28 = int_to_ptr.vmem [resolvable:$true] %s3416_s28 }
 0x146   : > { %1374 = vadd.xlane.f32.xlu0 %v1373_v27  ;;  %s3650_s30 = sld [smem:[#allocation60_spill]]  ;;  %vm1426_vm12 = vcmask 24576  }
 0x14a   : > { %v1396_v14 = vld [vmem:[#allocation4] sm:$0x1]  ;;  %v1408_v46 = vld [vmem:[#allocation5] sm:$0x1] }
 0x14b   : > { %v1397_v62 = vsel %vm511_vm13, %v1396_v14, 0.0  ;;  %v1409_v31 = vsel %vm511_vm13, %v1408_v46, 0.0  ;;  %s1429_s18 = scalar_lea.sflag [#allocation11], %s3649_s12 }
 0x14c   : > { %1398 = vadd.xlane.f32.xlu1 %v1397_v62  ;;  %s1437_s17 = scalar_lea.hbm %s3650_s30, %s3648_s14  ;;  %s1926_s19 = scalar_lea.hbm %s3650_s30, 2 }
 0x14d   : > { %s3418_s5 = sshll.u32 %s1437_s17, 4  ;;  %s1442_s5 = int_to_ptr.hbm [resolvable:$true] %s3418_s5 }
 0x14e   : > { %1386 = vadd.xlane.f32.xlu0 %v1385_v15  ;;  %s1920_s6 = sshra.s32 %s1442_s5, 4  ;;  %s1921_s6 = int_to_ptr.hbm [resolvable:$true] %s1920_s6 }
 0x14f   : > { %s1922_s9 = scalar_lea.hbm %s1921_s6, 1  ;;  %p1927_p8 = scmp.lt.s32.totalorder %s1921_s6, %s3650_s30 }
 0x150   : > { %p1923_p5 = scmp.ne.s32.totalorder %s1921_s6, %s1922_s9  ;;  %p1928_p10 = scmp.lt.s32.totalorder %s1926_s19, %s1922_s9 }
 0x152   : > { %p1924_p6 = pnand %p1923_p5, %p2088_p9  ;;  %p1929_p13 = por %p1928_p10, %p1927_p8 }
 0x154   : > { %1410 = vadd.xlane.f32.xlu1 %v1409_v31  ;;  %p1925_p7 = pneg %p1924_p6 }
 0x156   : > { %p1930_p0 = pnand %p1929_p13, %p1925_p7 }
 0x1b9   : > { %v1375_v63 = vpop.xlane.xlu0 %1374 }
 0x1ba   : > { %v1376_v17 = vrot.slane %v1375_v63, 4 }
 0x1bc   : > { %v1377_v16 = vadd.f32 %v1376_v17, %v1375_v63 }
 0x1be   : > { %v1378_v50 = vrot.slane %v1377_v16, 2 }
 0x1bf   : > { %v1399_v34 = vpop.xlane.xlu1 %1398 }
 0x1c0   : > { %v1400_v59 = vrot.slane %v1399_v34, 4  ;;  %v1379_v5 = vadd.f32 %v1378_v50, %v1377_v16 }
 0x1c1   : > { %v1387_v26 = vpop.xlane.xlu0 %1386 }
 0x1c2   : > { %v1401_v35 = vadd.f32 %v1400_v59, %v1399_v34  ;;  %v1388_v3 = vrot.slane %v1387_v26, 4  ;;  %v1380_v51 = vrot.slane %v1379_v5, 1 }
 0x1c4   : > { %v1402_v1 = vrot.slane %v1401_v35, 2  ;;  %v1389_v53 = vadd.f32 %v1388_v3, %v1387_v26  ;;  %v1381_v58 = vadd.f32 %v1380_v51, %v1379_v5 }
 0x1c6   : > { %v1403_v47 = vadd.f32 %v1402_v1, %v1401_v35  ;;  %v1390_v9 = vrot.slane %v1389_v53, 2  ;;  %1628 = vpush %v1381_v58 }
 0x1c7   : > { %v1411_v7 = vpop.xlane.xlu1 %1410 }
 0x1c8   : > { %v1412_v55 = vrot.slane %v1411_v7, 4  ;;  %v1391_v13 = vadd.f32 %v1390_v9, %v1389_v53  ;;  %v1404_v48 = vrot.slane %v1403_v47, 1 }
 0x1ca   : > { %v1413_v41 = vadd.f32 %v1412_v55, %v1411_v7  ;;  %v1392_v22 = vrot.slane %v1391_v13, 1  ;;  %v1405_v20 = vadd.f32 %v1404_v48, %v1403_v47 }
 0x1cc   : > { %v1414_v24 = vrot.slane %v1413_v41, 2  ;;  %v1393_v45 = vadd.f32 %v1392_v22, %v1391_v13 }
 0x1ce   : > { %v1415_v37 = vadd.f32 %v1414_v24, %v1413_v41  ;;  %1630 = vpush %v1393_v45 }
 0x1cf   : > { %1632 = vpush %v1405_v20 }
 0x1d0   : > { %v1416_v40 = vrot.slane %v1415_v37, 1 }
 0x1d2   : > { %v1417_v33 = vadd.f32 %v1416_v40, %v1415_v37 }
 0x1d4   : > { %1634 = vpush %v1417_v33 }
 0x1f7   : > { %s1629_s11 = spop %1628 }
 0x1f8   : > { %v1383_v42 = vstv %s1629_s11 }
 0x1ff   : > { %s1631_s3 = spop %1630 }
 0x200   : > { %v1395_v36 = vstv %s1631_s3  ;;  %s1633_s4 = spop %1632 }
 0x201   : > { %v1421_v11 = vsel %vm1420_vm11, %v1383_v42, %v1395_v36  ;;  %v1407_v10 = vstv %s1633_s4 }
 0x202   : > { %v1423_v23 = vsel %vm1422_vm3, %v1421_v11, %v1407_v10 }
 0x205   : > { %s1635_s15 = spop %1634 }
 0x206   : > { %v1419_v39 = vstv %s1635_s15 }
 0x207   : > { %v1425_v28 = vsel %vm1424_vm4, %v1423_v23, %v1419_v39 }
 0x208   : > { %1427 = vst.msk [vmem:[%s273_s20] sm:$0x1] %vm1426_vm12, %v1425_v28 }
 0x209   : > { %1933 = shalt.err (!%p1930_p0)
}
 0x20a   : > { %1640 = dma.vmem_to_hbm [thread:$0]  (%p2088_p9), %s1440_s28, 16, %s1442_s5, %s1429_s18  }
 0x20b PF: > { %s3652_s2 = sld [smem:[#allocation19_spill]]  ;;  %p1650_p1 = pnand %p1556_p12, %p2095_p11 }
 0x20c   : > { %s3654_s0 = sld [smem:[#allocation24_spill]] }
 0x20d   : > { %p1651_p2 = pneg %p1650_p1 }
 0x211   : > { %s1453_s24 = sand.u32 1, %s3652_s2  }
 0x212   : > { %s1454_s23 = scalar_lea.sflag [#allocation11], %s1453_s24 }
 0x213   : > { %1969 = dma.done.wait (%p1651_p2), %s1454_s23, 16  }
 0x214   : > { %1971 = vsyncadd (%p1651_p2), %s1454_s23, 4294967280  ;;  %s37_s29 = sadd.s32 1, %s3654_s0   ;;  %s3655_s0 = sld [smem:[#allocation20_spill]] }
 0x215   : > { %p34_p3 = scmp.ge.s32.totalorder %s37_s29, 4   ;;  %s3656_s26 = sld [smem:[#allocation21_spill]] }
 0x216   : > { %s3657_s1 = sld [smem:[#allocation27_spill]] }
 0x217   : > { %s3658_s27 = sld [smem:[#allocation23_spill]]  ;;  %36 = sbr.rel (!%p34_p3) target bundleno = 18 (0x12), region = 124 }
 0x218   : > { %s3659_s28 = sld [smem:[#allocation25_spill]] }
 0x21c   :  { %1459 = vsyncpa [#allocation10], 1 }
 0x21d   :  { %1461 = vsyncpa [#allocation10 + $0x1], 1 }
 0x21e   :  { %1462 = vsyncpa [#allocation13], 1 }
 0x21f   :  { %1464 = vsyncpa [#allocation13 + $0x1], 1 }
 0x220   :  { %1465 = vsyncpa [#allocation11], 1 }
 0x221   :  { %1467 = vsyncpa [#allocation11 + $0x1], 1 }

</bundles_post_ra>
